<compile_context>
chip_gen: v7x
topology: tpu7x:2x2x1
jax: 0.10.0
libtpu: 0.0.40
codegen_flags: <defaults>
</compile_context>

<pallas_src>
from functools import partial

import jax
import jax.numpy as jnp
from jax.experimental import pallas as pl
from jax.experimental.pallas import tpu as pltpu

EPS = 1e-5      # PyTorch BatchNorm2d default eps
LANE = 128      # lane width -> channel padding granularity

# ---------------------------------------------------------------------------
# Generation-aware budgets (v7x: 64 MiB VMEM/TC; v5e/v6e: 128 MiB).
# ---------------------------------------------------------------------------
try:
    _VMEM_CAP = int(getattr(pltpu.get_tpu_info(), "vmem_capacity_bytes",
                            128 * 1024 * 1024))
except Exception:  # defensive: fall back to the large-VMEM defaults
    _VMEM_CAP = 128 * 1024 * 1024
_BIG_VMEM = _VMEM_CAP >= 100 * 1024 * 1024
_VMEM_LIMIT = (48 if _BIG_VMEM else 40) * 1024 * 1024
_MM_ROW_CAP = 512 if _BIG_VMEM else 256      # M-tile rows for matmul passes
_EW_ROW_CAP = 1024 if _BIG_VMEM else 512     # M-tile rows for pure elementwise pass
_CONV2_ROW_CAP = 256                         # keep conv2 f32 accumulator small


# ---------------------------------------------------------------------------
# Small static helpers (trace-time Python)
# ---------------------------------------------------------------------------
def _round_up(v, m):
    return ((v + m - 1) // m) * m


def _pick_tm(m, cap):
    """M-tile rows: multiple of 128 (clean MXU granules on all generations)."""
    return min(cap, _round_up(m, 128))


def _pick_tho(ho, wo, row_cap=_CONV2_ROW_CAP):
    """Output-H rows per conv2 grid step; prefer sublane-aligned tho*wo."""
    cands = [t for t in range(1, ho + 1) if ho % t == 0 and t * wo <= row_cap]
    if not cands:
        return 1
    for align in (16, 8, 1):
        good = [t for t in cands if (t * wo) % align == 0]
        if good:
            return max(good)
    return max(cands)


def _cparams(sem):
    return pltpu.CompilerParams(dimension_semantics=sem,
                                vmem_limit_bytes=_VMEM_LIMIT)


def _col_stats(y):
    """(2, C) block of per-column [sum; sum of squares] (f32)."""
    return jnp.concatenate([jnp.sum(y, axis=0, keepdims=True),
                            jnp.sum(y * y, axis=0, keepdims=True)], axis=0)


def _bn_affine(st, gamma, beta, m):
    """Finalize BN scale/shift rows (1, C) in plain JAX from (sum, sum_sq) stats."""
    inv_m = 1.0 / m
    mu = st[0:1, :] * inv_m
    # TODO(synk): E[y^2]-mu^2 can cancel for |mean|>>std; clamp keeps rsqrt finite.
    var = jnp.maximum(st[1:2, :] * inv_m - mu * mu, 0.0)
    scale = gamma * jax.lax.rsqrt(var + EPS)
    shift = beta - mu * scale
    return scale, shift


# ---------------------------------------------------------------------------
# Pallas kernels
# ---------------------------------------------------------------------------
def _matmul_stats_kernel(x_ref, w_ref, y_ref, st_ref):
    """conv1 pass: y = x @ w (bf16 in, f32 acc), y stored bf16, BN stats in f32."""
    @pl.when(pl.program_id(0) == 0)
    def _():
        st_ref[...] = jnp.zeros_like(st_ref)

    y = jnp.dot(x_ref[...], w_ref[...], preferred_element_type=jnp.float32)
    y_ref[...] = y.astype(y_ref.dtype)
    st_ref[...] += _col_stats(y)


def _conv2_kernel(slab_ref, w_ref, y_ref, st_ref, acc_ref, *, stride, tho, wo, cin):
    """3x3 conv (stride, pad=1) from duplication-free polyphase slabs resident in
    VMEM; one (tho*wo, cin)@(cin, cout) matmul per tap accumulated in an f32 VMEM
    scratch, plus BN2 stats accumulation."""
    n = pl.program_id(0)
    hb = pl.program_id(1)

    @pl.when(jnp.logical_and(n == 0, hb == 0))
    def _():
        st_ref[...] = jnp.zeros_like(st_ref)

    h0 = hb * tho
    cout = y_ref.shape[-1]

    if wo % 8 == 0:
        acc_ref[...] = jnp.zeros_like(acc_ref)
        for ky in range(3):
            for kx in range(3):
                p = (ky % stride) * stride + (kx % stride)
                oy, ox = ky // stride, kx // stride
                win = slab_ref[p, 0, pl.ds(h0 + oy, tho), pl.ds(ox, wo), :]
                acc_ref[...] += jnp.dot(win.reshape(tho * wo, cin),
                                        w_ref[ky * 3 + kx],
                                        preferred_element_type=jnp.float32)
        acc = acc_ref[...]
        y_ref[...] = acc.astype(y_ref.dtype)
        st_ref[...] += _col_stats(acc)
    else:
        # TODO(synk): fallback for Wo % 8 != 0 keeps per-output-row matmuls
        # (underfeeds the MXU); unused by the demo shapes.
        s0 = jnp.zeros((1, cout), jnp.float32)
        s1 = jnp.zeros((1, cout), jnp.float32)
        for t in range(tho):
            acc = jnp.zeros((wo, cout), jnp.float32)
            for ky in range(3):
                for kx in range(3):
                    p = (ky % stride) * stride + (kx % stride)
                    oy, ox = ky // stride, kx // stride
                    tap = slab_ref[p, 0, pl.ds(h0 + t + oy, 1), pl.ds(ox, wo), :]
                    acc += jnp.dot(tap[0], w_ref[ky * 3 + kx],
                                   preferred_element_type=jnp.float32)
            y_ref[pl.ds(t * wo, wo), :] = acc.astype(y_ref.dtype)
            s0 = s0 + jnp.sum(acc, axis=0, keepdims=True)
            s1 = s1 + jnp.sum(acc * acc, axis=0, keepdims=True)
        st_ref[...] += jnp.concatenate([s0, s1], axis=0)


def _conv3_sc_kernel(y2_ref, sc2_ref, sh2_ref, w3_ref, xs_ref, wsc_ref,
                     y3_ref, ysc_ref, st3_ref, stsc_ref, *, valid_rows, tm):
    """BN2-apply+ReLU fused into conv3 (1x1) plus the conv-shortcut matmul;
    accumulates BN3 / BNsc stats."""
    @pl.when(pl.program_id(0) == 0)
    def _():
        st3_ref[...] = jnp.zeros_like(st3_ref)
        stsc_ref[...] = jnp.zeros_like(stsc_ref)

    out2 = jnp.maximum(y2_ref[...].astype(jnp.float32) * sc2_ref[...] + sh2_ref[...],
                       0.0)
    if valid_rows is not None:   # mask padded tail rows (static trace-time switch)
        rid = pl.program_id(0) * tm + jax.lax.broadcasted_iota(jnp.int32, (tm, 1), 0)
        out2 = jnp.where(rid < valid_rows, out2, 0.0)
    out2 = out2.astype(jnp.bfloat16)
    y3 = jnp.dot(out2, w3_ref[...], preferred_element_type=jnp.float32)
    ysc = jnp.dot(xs_ref[...], wsc_ref[...], preferred_element_type=jnp.float32)
    y3_ref[...] = y3.astype(y3_ref.dtype)
    ysc_ref[...] = ysc.astype(ysc_ref.dtype)
    st3_ref[...] += _col_stats(y3)
    stsc_ref[...] += _col_stats(ysc)


def _conv3_id_kernel(y2_ref, sc2_ref, sh2_ref, w3_ref, y3_ref, st3_ref,
                     *, valid_rows, tm):
    @pl.when(pl.program_id(0) == 0)
    def _():
        st3_ref[...] = jnp.zeros_like(st3_ref)

    out2 = jnp.maximum(y2_ref[...].astype(jnp.float32) * sc2_ref[...] + sh2_ref[...],
                       0.0)
    if valid_rows is not None:
        rid = pl.program_id(0) * tm + jax.lax.broadcasted_iota(jnp.int32, (tm, 1), 0)
        out2 = jnp.where(rid < valid_rows, out2, 0.0)
    out2 = out2.astype(jnp.bfloat16)
    y3 = jnp.dot(out2, w3_ref[...], preferred_element_type=jnp.float32)
    y3_ref[...] = y3.astype(y3_ref.dtype)
    st3_ref[...] += _col_stats(y3)


def _final_sc_kernel(y3_ref, s3_ref, h3_ref, ysc_ref, ss_ref, hs_ref, o_ref):
    out = (y3_ref[...].astype(jnp.float32) * s3_ref[...] + h3_ref[...]
           + ysc_ref[...].astype(jnp.float32) * ss_ref[...] + hs_ref[...])
    o_ref[...] = jnp.maximum(out, 0.0).astype(o_ref.dtype)


def _final_id_kernel(y3_ref, s3_ref, h3_ref, x_ref, o_ref):
    out = y3_ref[...].astype(jnp.float32) * s3_ref[...] + h3_ref[...] + x_ref[...]
    o_ref[...] = jnp.maximum(out, 0.0).astype(o_ref.dtype)


# ---------------------------------------------------------------------------
# One-time parameter preparation (mask fold, transpose, pad, bf16 cast)
# ---------------------------------------------------------------------------
def prepare_params(params, in_planes, planes):
    cout = 4 * planes
    cin_p = _round_up(in_planes, LANE)
    cpl = _round_up(planes, LANE)
    cpe = _round_up(cout, LANE)

    def pad2(w, r, c):
        return jnp.pad(w, ((0, r - w.shape[0]), (0, c - w.shape[1])))

    def row(v, c):
        return jnp.pad(v.astype(jnp.float32).reshape(1, -1),
                       ((0, 0), (0, c - v.shape[0])))

    w1 = (params["w1"] * params["m1"]).reshape(planes, in_planes).T
    w2 = jnp.transpose(params["w2"] * params["m2"], (2, 3, 1, 0))   # (ky,kx,in,out)
    w2 = w2.reshape(9, planes, planes)
    w3 = (params["w3"] * params["m3"]).reshape(cout, planes).T

    prep = {
        "w1": pad2(w1, cin_p, cpl).astype(jnp.bfloat16),
        "w2": jnp.pad(w2, ((0, 0), (0, cpl - planes), (0, cpl - planes))
                      ).astype(jnp.bfloat16),
        "w3": pad2(w3, cpl, cpe).astype(jnp.bfloat16),
        "g1": row(params["g1"], cpl), "b1": row(params["b1"], cpl),
        "g2": row(params["g2"], cpl), "b2": row(params["b2"], cpl),
        "g3": row(params["g3"], cpe), "b3": row(params["b3"], cpe),
    }
    if "wsc" in params:
        wsc = (params["wsc"] * params["msc"]).reshape(cout, in_planes).T
        prep["wsc"] = pad2(wsc, cin_p, cpe).astype(jnp.bfloat16)
        prep["gsc"] = row(params["gsc"], cpe)
        prep["bsc"] = row(params["bsc"], cpe)
    return prep


# ---------------------------------------------------------------------------
# Forward pass
# ---------------------------------------------------------------------------
@partial(jax.jit, static_argnames=("planes", "stride"))
def bottleneck_forward(x_nchw, prep, *, planes, stride):
    N, Cin, H, W = x_nchw.shape
    cout = 4 * planes
    cin_p = prep["w1"].shape[0]
    cpl = prep["w1"].shape[1]
    cpe = prep["w3"].shape[1]
    Ho = (H - 1) // stride + 1
    Wo = (W - 1) // stride + 1
    M1 = N * H * W
    M2 = N * Ho * Wo

    tm1 = _pick_tm(M1, _MM_ROW_CAP)
    tm2 = _pick_tm(M2, _MM_ROW_CAP)
    M1p = _round_up(M1, tm1)
    M2p = _round_up(M2, tm2)

    # Layout plumbing: NCHW -> lane-dense (rows, padded channels), bf16 for the MXU.
    x_nhwc = jnp.transpose(x_nchw, (0, 2, 3, 1))
    x_bf = jnp.pad(x_nhwc, ((0, 0), (0, 0), (0, 0), (0, cin_p - Cin))
                   ).astype(jnp.bfloat16)
    x_flat = x_bf.reshape(M1, cin_p)
    if M1p != M1:
        x_flat = jnp.pad(x_flat, ((0, M1p - M1), (0, 0)))   # zero rows: stats-neutral

    def row_tile(t, c):
        return pl.BlockSpec((t, c), lambda i: (i, 0))

    def const_rows(r, c):
        return pl.BlockSpec((r, c), lambda i: (0, 0))

    # ---- conv1 (1x1): matmul + BN1 stats accumulator (y1 stored bf16) ----------
    y1, st1 = pl.pallas_call(
        _matmul_stats_kernel,
        grid=(M1p // tm1,),
        in_specs=[row_tile(tm1, cin_p), const_rows(cin_p, cpl)],
        out_specs=(row_tile(tm1, cpl), const_rows(2, cpl)),
        out_shape=(jax.ShapeDtypeStruct((M1p, cpl), jnp.bfloat16),
                   jax.ShapeDtypeStruct((2, cpl), jnp.float32)),
        compiler_params=_cparams(("arbitrary",)),
    )(x_flat, prep["w1"])

    # ---- BN1 apply + ReLU fused into the XLA op that builds conv2's input -------
    # (pad zeros applied AFTER relu, exactly like PyTorch's conv2 padding).
    scale1, shift1 = _bn_affine(st1, prep["g1"], prep["b1"], M1)
    out1 = jnp.maximum(y1[:M1].astype(jnp.float32) * scale1 + shift1, 0.0)
    out1 = out1.astype(jnp.bfloat16).reshape(N, H, W, cpl)

    # ---- conv2 (3x3, stride, pad=1): duplication-free polyphase slabs -----------
    slab_h = Ho + 2 // stride
    slab_w = Wo + 2 // stride
    Hpad = stride * slab_h
    Wpad = stride * slab_w
    pad_img = jnp.pad(out1, ((0, 0), (1, Hpad - H - 1), (1, Wpad - W - 1), (0, 0)))
    if stride == 1:
        slabs = pad_img[None]
    else:
        slabs = jnp.stack([pad_img[:, py::stride, px::stride, :]
                           for py in range(stride) for px in range(stride)], axis=0)

    tho = _pick_tho(Ho, Wo)
    nhb = Ho // tho
    rows2 = tho * Wo

    y2, st2 = pl.pallas_call(
        partial(_conv2_kernel, stride=stride, tho=tho, wo=Wo, cin=cpl),
        grid=(N, nhb),
        in_specs=[pl.BlockSpec((stride * stride, 1, slab_h, slab_w, cpl),
                               lambda n, hb: (0, n, 0, 0, 0)),
                  pl.BlockSpec((9, cpl, cpl), lambda n, hb: (0, 0, 0))],
        out_specs=(pl.BlockSpec((rows2, cpl), lambda n, hb: (n * nhb + hb, 0)),
                   pl.BlockSpec((2, cpl), lambda n, hb: (0, 0))),
        out_shape=(jax.ShapeDtypeStruct((M2p, cpl), jnp.bfloat16),
                   jax.ShapeDtypeStruct((2, cpl), jnp.float32)),
        scratch_shapes=[pltpu.VMEM((rows2, cpl), jnp.float32)],
        compiler_params=_cparams(("arbitrary", "arbitrary")),
    )(slabs, prep["w2"])

    scale2, shift2 = _bn_affine(st2, prep["g2"], prep["b2"], M2)
    has_sc = (stride != 1) or (Cin != cout)
    valid_rows = M2 if M2p != M2 else None
    grid3 = (M2p // tm2,)

    # elementwise tile for the final pass (larger on big-VMEM generations)
    tf = tm2
    while tf * 2 <= _EW_ROW_CAP and M2p % (tf * 2) == 0:
        tf *= 2

    if has_sc:
        xs = x_bf[:, ::stride, ::stride, :].reshape(M2, cin_p)
        if M2p != M2:
            xs = jnp.pad(xs, ((0, M2p - M2), (0, 0)))
        y3, ysc, st3, stsc = pl.pallas_call(
            partial(_conv3_sc_kernel, valid_rows=valid_rows, tm=tm2),
            grid=grid3,
            in_specs=[row_tile(tm2, cpl), const_rows(1, cpl), const_rows(1, cpl),
                      const_rows(cpl, cpe), row_tile(tm2, cin_p),
                      const_rows(cin_p, cpe)],
            out_specs=(row_tile(tm2, cpe), row_tile(tm2, cpe),
                       const_rows(2, cpe), const_rows(2, cpe)),
            out_shape=(jax.ShapeDtypeStruct((M2p, cpe), jnp.bfloat16),
                       jax.ShapeDtypeStruct((M2p, cpe), jnp.bfloat16),
                       jax.ShapeDtypeStruct((2, cpe), jnp.float32),
                       jax.ShapeDtypeStruct((2, cpe), jnp.float32)),
            compiler_params=_cparams(("arbitrary",)),
        )(y2, scale2, shift2, prep["w3"], xs, prep["wsc"])

        scale3, shift3 = _bn_affine(st3, prep["g3"], prep["b3"], M2)
        scsc, shsc = _bn_affine(stsc, prep["gsc"], prep["bsc"], M2)

        out_p = pl.pallas_call(
            _final_sc_kernel,
            grid=(M2p // tf,),
            in_specs=[row_tile(tf, cpe), const_rows(1, cpe), const_rows(1, cpe),
                      row_tile(tf, cpe), const_rows(1, cpe), const_rows(1, cpe)],
            out_specs=row_tile(tf, cpe),
            out_shape=jax.ShapeDtypeStruct((M2p, cpe), jnp.float32),
            compiler_params=_cparams(("parallel",)),
        )(y3, scale3, shift3, ysc, scsc, shsc)
    else:
        y3, st3 = pl.pallas_call(
            partial(_conv3_id_kernel, valid_rows=valid_rows, tm=tm2),
            grid=grid3,
            in_specs=[row_tile(tm2, cpl), const_rows(1, cpl), const_rows(1, cpl),
                      const_rows(cpl, cpe)],
            out_specs=(row_tile(tm2, cpe), const_rows(2, cpe)),
            out_shape=(jax.ShapeDtypeStruct((M2p, cpe), jnp.bfloat16),
                       jax.ShapeDtypeStruct((2, cpe), jnp.float32)),
            compiler_params=_cparams(("arbitrary",)),
        )(y2, scale2, shift2, prep["w3"])

        scale3, shift3 = _bn_affine(st3, prep["g3"], prep["b3"], M2)
        # f32 identity residual: do not bf16-round the skip connection.
        x_res = jnp.pad(x_nhwc.astype(jnp.float32),
                        ((0, 0), (0, 0), (0, 0), (0, cpe - Cin))).reshape(M2, cpe)
        if M2p != M2:
            x_res = jnp.pad(x_res, ((0, M2p - M2), (0, 0)))

        out_p = pl.pallas_call(
            _final_id_kernel,
            grid=(M2p // tf,),
            in_specs=[row_tile(tf, cpe), const_rows(1, cpe), const_rows(1, cpe),
                      row_tile(tf, cpe)],
            out_specs=row_tile(tf, cpe),
            out_shape=jax.ShapeDtypeStruct((M2p, cpe), jnp.float32),
            compiler_params=_cparams(("parallel",)),
        )(y3, scale3, shift3, x_res)

    # Epilogue: both slices are no-ops for tile-aligned M2 and cout % 128 == 0.
    out = out_p[:M2, :cout].reshape(N, Ho, Wo, cout)
    return jnp.transpose(out, (0, 3, 1, 2))        # NHWC -> NCHW


# ---------------------------------------------------------------------------
# Pure-JAX f32 reference (self-check)
# ---------------------------------------------------------------------------
def _ref_forward(x, params, stride):
    def conv(z, w, s, pad):
        return jax.lax.conv_general_dilated(
            z, w, (s, s), pad, dimension_numbers=("NCHW", "OIHW", "NCHW"))

    def bn(y, g, b):
        mu = jnp.mean(y, axis=(0, 2, 3), keepdims=True)
        var = jnp.mean((y - mu) ** 2, axis=(0, 2, 3), keepdims=True)
        return ((y - mu) / jnp.sqrt(var + EPS) * g.reshape(1, -1, 1, 1)
                + b.reshape(1, -1, 1, 1))

    planes = params["w1"].shape[0]
    cout = 4 * planes
    out = jax.nn.relu(bn(conv(x, params["w1"] * params["m1"], 1, "VALID"),
                         params["g1"], params["b1"]))
    out = jax.nn.relu(bn(conv(out, params["w2"] * params["m2"], stride,
                              ((1, 1), (1, 1))), params["g2"], params["b2"]))
    out = bn(conv(out, params["w3"] * params["m3"], 1, "VALID"),
             params["g3"], params["b3"])
    if stride != 1 or x.shape[1] != cout:
        sc = bn(conv(x, params["wsc"] * params["msc"], stride, "VALID"),
                params["gsc"], params["bsc"])
    else:
        sc = x
    return jax.nn.relu(out + sc)


# ---------------------------------------------------------------------------
# Deterministic parameter init + demo run
# ---------------------------------------------------------------------------
def _init_params(key, in_planes, planes):
    cout = 4 * planes
    ks = jax.random.split(key, 12)

    def wn(k, shape, fan_in):
        return jax.random.normal(k, shape, jnp.float32) / jnp.sqrt(fan_in)

    return {
        "w1": wn(ks[0], (planes, in_planes, 1, 1), in_planes),
        "m1": jnp.ones((planes, in_planes, 1, 1), jnp.float32),
        "g1": 1.0 + 0.1 * jax.random.normal(ks[1], (planes,), jnp.float32),
        "b1": 0.1 * jax.random.normal(ks[2], (planes,), jnp.float32),
        "w2": wn(ks[3], (planes, planes, 3, 3), 9 * planes),
        "m2": jnp.ones((planes, planes, 3, 3), jnp.float32),
        "g2": 1.0 + 0.1 * jax.random.normal(ks[4], (planes,), jnp.float32),
        "b2": 0.1 * jax.random.normal(ks[5], (planes,), jnp.float32),
        "w3": wn(ks[6], (cout, planes, 1, 1), planes),
        "m3": jnp.ones((cout, planes, 1, 1), jnp.float32),
        "g3": 1.0 + 0.1 * jax.random.normal(ks[7], (cout,), jnp.float32),
        "b3": 0.1 * jax.random.normal(ks[8], (cout,), jnp.float32),
        "wsc": wn(ks[9], (cout, in_planes, 1, 1), in_planes),
        "msc": jnp.ones((cout, in_planes, 1, 1), jnp.float32),
        "gsc": 1.0 + 0.1 * jax.random.normal(ks[10], (cout,), jnp.float32),
        "bsc": 0.1 * jax.random.normal(ks[11], (cout,), jnp.float32),
    }


def _check(out, ref, tag):
    max_err = float(jnp.max(jnp.abs(out - ref)))
    rel_err = float(jnp.sqrt(jnp.sum((out - ref) ** 2) /
                             (jnp.sum(ref ** 2) + 1e-12)))
    # bf16 MXU inputs + bf16 intermediates -> tolerance relaxed vs f32 reference.
    assert max_err < 2e-1 and rel_err < 3e-2, (tag, max_err, rel_err)


if __name__ == "__main__":
    key = jax.random.PRNGKey(0)
    k1, k2, k3, k4 = jax.random.split(key, 4)

    # Case 1: conv-projection shortcut (stride=2, Cin != 4*planes).
    N, in_planes, planes, stride, H, W = 4, 16, 8, 2, 16, 16
    params = _init_params(k1, in_planes, planes)
    prep = prepare_params(params, in_planes, planes)
    x = jax.random.normal(k2, (N, in_planes, H, W), jnp.float32)
    out = jax.block_until_ready(
        bottleneck_forward(x, prep, planes=planes, stride=stride))
    ref = _ref_forward(x, params, stride)
    assert out.shape == ref.shape == (N, 4 * planes, H // stride, W // stride)
    _check(out, ref, "conv-shortcut")

    # Case 2: identity shortcut (stride=1, Cin == 4*planes).
    N, in_planes, planes, stride, H, W = 2, 32, 8, 1, 16, 16
    params = _init_params(k3, in_planes, planes)
    prep = prepare_params(params, in_planes, planes)
    x = jax.random.normal(k4, (N, in_planes, H, W), jnp.float32)
    out = jax.block_until_ready(
        bottleneck_forward(x, prep, planes=planes, stride=stride))
    ref = _ref_forward(x, params, stride)
    assert out.shape == ref.shape == (N, 4 * planes, H, W)
    _check(out, ref, "identity-shortcut")

    print("KERNEL_OK")
</pallas_src>

<mosaic_0001>
module attributes {stable_mosaic.version = 11 : i64} {
  func.func @_matmul_stats_kernel(%arg0: i32, %arg1: memref<512x128xbf16, #tpu.memory_space<vmem>>, %arg2: memref<128x128xbf16, #tpu.memory_space<vmem>>, %arg3: memref<512x128xbf16, #tpu.memory_space<vmem>>, %arg4: memref<2x128xf32, #tpu.memory_space<vmem>>) attributes {dimension_semantics = [#tpu.dimension_semantics<arbitrary>], iteration_bounds = array<i64: 2>, scalar_prefetch = 0 : i64, scratch_operands = 0 : i64, tpu.core_type = #tpu.core_type<tc>, window_params = [{transform_indices = @transform_0, window_bounds = array<i64: 512, 128>}, {pipeline_mode = #tpu.pipeline_mode<synchronous>, transform_indices = @transform_1, window_bounds = array<i64: 128, 128>}, {transform_indices = @transform_2, window_bounds = array<i64: 512, 128>}, {pipeline_mode = #tpu.pipeline_mode<synchronous>, transform_indices = @transform_3, window_bounds = array<i64: 2, 128>}]} {
    %c0_i32 = arith.constant 0 : i32
    %0 = arith.cmpi eq, %arg0, %c0_i32 : i32
    %1 = arith.extui %0 : i1 to i32
    %c0_i32_0 = arith.constant 0 : i32
    %2 = arith.cmpi ne, %1, %c0_i32_0 : i32
    scf.if %2 {
      %cst_12 = arith.constant 0.000000e+00 : f32
      %17 = vector.broadcast %cst_12 : f32 to vector<2x128xf32>
      %c0_13 = arith.constant 0 : index
      %c0_14 = arith.constant 0 : index
      %18 = vector.load %arg4[%c0_13, %c0_14] : memref<2x128xf32, #tpu.memory_space<vmem>>, vector<2x128xf32>
      tpu.vector_store %arg4[%c0_13, %c0_14], %17 {strides = array<i32>} : memref<2x128xf32, #tpu.memory_space<vmem>>, vector<2x128xf32>,
    } else {
    }
    %c0 = arith.constant 0 : index
    %c0_1 = arith.constant 0 : index
    %3 = vector.load %arg1[%c0, %c0_1] : memref<512x128xbf16, #tpu.memory_space<vmem>>, vector<512x128xbf16>
    %c0_2 = arith.constant 0 : index
    %c0_3 = arith.constant 0 : index
    %4 = vector.load %arg2[%c0_2, %c0_3] : memref<128x128xbf16, #tpu.memory_space<vmem>>, vector<128x128xbf16>
    %cst = arith.constant dense<0.000000e+00> : vector<512x128xf32>
    %5 = tpu.matmul %3, %4, %cst {dimension_numbers = #tpu.dot_dimension_numbers<[1], [0], [0], [1], [0, 0, 1, 1], [], []>} : vector<512x128xbf16>, vector<128x128xbf16>, vector<512x128xf32> -> vector<512x128xf32>
    %6 = arith.truncf %5 : vector<512x128xf32> to vector<512x128xbf16>
    %c0_4 = arith.constant 0 : index
    %c0_5 = arith.constant 0 : index
    %7 = vector.load %arg3[%c0_4, %c0_5] : memref<512x128xbf16, #tpu.memory_space<vmem>>, vector<512x128xbf16>
    tpu.vector_store %arg3[%c0_4, %c0_5], %6 {strides = array<i32>} : memref<512x128xbf16, #tpu.memory_space<vmem>>, vector<512x128xbf16>,
    %c0_6 = arith.constant 0 : index
    %c0_7 = arith.constant 0 : index
    %8 = vector.load %arg4[%c0_6, %c0_7] : memref<2x128xf32, #tpu.memory_space<vmem>>, vector<2x128xf32>
    %cst_8 = arith.constant dense<0.000000e+00> : vector<128xf32>
    %9 = vector.multi_reduction <add>, %5, %cst_8 [0] : vector<512x128xf32> to vector<128xf32>
    %10 = vector.shape_cast %9 : vector<128xf32> to vector<1x128xf32>
    %11 = arith.mulf %5, %5 : vector<512x128xf32>
    %cst_9 = arith.constant dense<0.000000e+00> : vector<128xf32>
    %12 = vector.multi_reduction <add>, %11, %cst_9 [0] : vector<512x128xf32> to vector<128xf32>
    %13 = vector.shape_cast %12 : vector<128xf32> to vector<1x128xf32>
    %14 = tpu.concatenate %10, %13 in 0 : vector<1x128xf32>, vector<1x128xf32> -> vector<2x128xf32>
    %15 = arith.addf %8, %14 : vector<2x128xf32>
    %c0_10 = arith.constant 0 : index
    %c0_11 = arith.constant 0 : index
    %16 = vector.load %arg4[%c0_10, %c0_11] : memref<2x128xf32, #tpu.memory_space<vmem>>, vector<2x128xf32>
    tpu.vector_store %arg4[%c0_10, %c0_11], %15 {strides = array<i32>} : memref<2x128xf32, #tpu.memory_space<vmem>>, vector<2x128xf32>,
    return
  }
  func.func @transform_0(%arg0: i32) -> (i32, i32) {
    %c0_i32 = arith.constant 0 : i32
    %c0_i32_0 = arith.constant 0 : i32
    return %arg0, %c0_i32 : i32, i32
  }
  func.func @transform_1(%arg0: i32) -> (i32, i32) {
    %c0_i32 = arith.constant 0 : i32
    %c0_i32_0 = arith.constant 0 : i32
    %c0_i32_1 = arith.constant 0 : i32
    return %c0_i32, %c0_i32_0 : i32, i32
  }
  func.func @transform_2(%arg0: i32) -> (i32, i32) {
    %c0_i32 = arith.constant 0 : i32
    %c0_i32_0 = arith.constant 0 : i32
    return %arg0, %c0_i32 : i32, i32
  }
  func.func @transform_3(%arg0: i32) -> (i32, i32) {
    %c0_i32 = arith.constant 0 : i32
    %c0_i32_0 = arith.constant 0 : i32
    %c0_i32_1 = arith.constant 0 : i32
    return %c0_i32, %c0_i32_0 : i32, i32
  }
}

module attributes {stable_mosaic.version = 11 : i64} {
  func.func @_conv2_kernel(%arg0: i32, %arg1: i32, %arg2: memref<4x1x9x9x128xbf16, #tpu.memory_space<vmem>>, %arg3: memref<9x128x128xbf16, #tpu.memory_space<vmem>>, %arg4: memref<64x128xbf16, #tpu.memory_space<vmem>>, %arg5: memref<2x128xf32, #tpu.memory_space<vmem>>, %arg6: memref<64x128xf32, #tpu.memory_space<vmem>>) attributes {dimension_semantics = [#tpu.dimension_semantics<arbitrary>, #tpu.dimension_semantics<arbitrary>], iteration_bounds = array<i64: 4, 1>, scalar_prefetch = 0 : i64, scratch_operands = 1 : i64, tpu.core_type = #tpu.core_type<tc>, window_params = [{transform_indices = @transform_0, window_bounds = array<i64: 4, 1, 9, 9, 128>}, {pipeline_mode = #tpu.pipeline_mode<synchronous>, transform_indices = @transform_1, window_bounds = array<i64: 9, 128, 128>}, {transform_indices = @transform_2, window_bounds = array<i64: 64, 128>}, {pipeline_mode = #tpu.pipeline_mode<synchronous>, transform_indices = @transform_3, window_bounds = array<i64: 2, 128>}]} {
    %c0_i32 = arith.constant 0 : i32
    %0 = arith.cmpi eq, %arg0, %c0_i32 : i32
    %c0_i32_0 = arith.constant 0 : i32
    %1 = arith.cmpi eq, %arg1, %c0_i32_0 : i32
    %2 = arith.andi %0, %1 : i1
    %3 = arith.extui %2 : i1 to i32
    %c0_i32_1 = arith.constant 0 : i32
    %4 = arith.cmpi ne, %3, %c0_i32_1 : i32
    scf.if %4 {
      %cst_121 = arith.constant 0.000000e+00 : f32
      %119 = vector.broadcast %cst_121 : f32 to vector<2x128xf32>
      %c0_122 = arith.constant 0 : index
      %c0_123 = arith.constant 0 : index
      %120 = vector.load %arg5[%c0_122, %c0_123] : memref<2x128xf32, #tpu.memory_space<vmem>>, vector<2x128xf32>
      tpu.vector_store %arg5[%c0_122, %c0_123], %119 {strides = array<i32>} : memref<2x128xf32, #tpu.memory_space<vmem>>, vector<2x128xf32>,
    } else {
    }
    %c8_i32 = arith.constant 8 : i32
    %5 = arith.muli %arg1, %c8_i32 : i32
    %cst = arith.constant 0.000000e+00 : f32
    %6 = vector.broadcast %cst : f32 to vector<64x128xf32>
    %c0 = arith.constant 0 : index
    %c0_2 = arith.constant 0 : index
    %7 = vector.load %arg6[%c0, %c0_2] : memref<64x128xf32, #tpu.memory_space<vmem>>, vector<64x128xf32>
    tpu.vector_store %arg6[%c0, %c0_2], %6 {strides = array<i32>} : memref<64x128xf32, #tpu.memory_space<vmem>>, vector<64x128xf32>,
    %c0_i32_3 = arith.constant 0 : i32
    %8 = arith.addi %5, %c0_i32_3 : i32
    %c0_4 = arith.constant 0 : index
    %c0_5 = arith.constant 0 : index
    %9 = arith.index_cast %8 : i32 to index
    %c0_6 = arith.constant 0 : index
    %c0_7 = arith.constant 0 : index
    %10 = vector.load %arg2[%c0_4, %c0_5, %9, %c0_6, %c0_7] : memref<4x1x9x9x128xbf16, #tpu.memory_space<vmem>>, vector<1x1x8x8x128xbf16>
    %11 = vector.shape_cast %10 : vector<1x1x8x8x128xbf16> to vector<8x8x128xbf16>
    %c0_8 = arith.constant 0 : index
    %c0_9 = arith.constant 0 : index
    %12 = vector.load %arg6[%c0_8, %c0_9] : memref<64x128xf32, #tpu.memory_space<vmem>>, vector<64x128xf32>
    %13 = vector.shape_cast %11 : vector<8x8x128xbf16> to vector<64x128xbf16>
    %c0_10 = arith.constant 0 : index
    %c0_11 = arith.constant 0 : index
    %c0_12 = arith.constant 0 : index
    %14 = vector.load %arg3[%c0_10, %c0_11, %c0_12] : memref<9x128x128xbf16, #tpu.memory_space<vmem>>, vector<1x128x128xbf16>
    %15 = vector.shape_cast %14 : vector<1x128x128xbf16> to vector<128x128xbf16>
    %cst_13 = arith.constant dense<0.000000e+00> : vector<64x128xf32>
    %16 = tpu.matmul %13, %15, %cst_13 {dimension_numbers = #tpu.dot_dimension_numbers<[1], [0], [0], [1], [0, 0, 1, 1], [], []>} : vector<64x128xbf16>, vector<128x128xbf16>, vector<64x128xf32> -> vector<64x128xf32>
    %17 = arith.addf %12, %16 : vector<64x128xf32>
    %c0_14 = arith.constant 0 : index
    %c0_15 = arith.constant 0 : index
    %18 = vector.load %arg6[%c0_14, %c0_15] : memref<64x128xf32, #tpu.memory_space<vmem>>, vector<64x128xf32>
    tpu.vector_store %arg6[%c0_14, %c0_15], %17 {strides = array<i32>} : memref<64x128xf32, #tpu.memory_space<vmem>>, vector<64x128xf32>,
    %c0_i32_16 = arith.constant 0 : i32
    %19 = arith.addi %5, %c0_i32_16 : i32
    %c1 = arith.constant 1 : index
    %c0_17 = arith.constant 0 : index
    %20 = arith.index_cast %19 : i32 to index
    %c0_18 = arith.constant 0 : index
    %c0_19 = arith.constant 0 : index
    %21 = vector.load %arg2[%c1, %c0_17, %20, %c0_18, %c0_19] : memref<4x1x9x9x128xbf16, #tpu.memory_space<vmem>>, vector<1x1x8x8x128xbf16>
    %22 = vector.shape_cast %21 : vector<1x1x8x8x128xbf16> to vector<8x8x128xbf16>
    %c0_20 = arith.constant 0 : index
    %c0_21 = arith.constant 0 : index
    %23 = vector.load %arg6[%c0_20, %c0_21] : memref<64x128xf32, #tpu.memory_space<vmem>>, vector<64x128xf32>
    %24 = vector.shape_cast %22 : vector<8x8x128xbf16> to vector<64x128xbf16>
    %c1_22 = arith.constant 1 : index
    %c0_23 = arith.constant 0 : index
    %c0_24 = arith.constant 0 : index
    %25 = vector.load %arg3[%c1_22, %c0_23, %c0_24] : memref<9x128x128xbf16, #tpu.memory_space<vmem>>, vector<1x128x128xbf16>
    %26 = vector.shape_cast %25 : vector<1x128x128xbf16> to vector<128x128xbf16>
    %cst_25 = arith.constant dense<0.000000e+00> : vector<64x128xf32>
    %27 = tpu.matmul %24, %26, %cst_25 {dimension_numbers = #tpu.dot_dimension_numbers<[1], [0], [0], [1], [0, 0, 1, 1], [], []>} : vector<64x128xbf16>, vector<128x128xbf16>, vector<64x128xf32> -> vector<64x128xf32>
    %28 = arith.addf %23, %27 : vector<64x128xf32>
    %c0_26 = arith.constant 0 : index
    %c0_27 = arith.constant 0 : index
    %29 = vector.load %arg6[%c0_26, %c0_27] : memref<64x128xf32, #tpu.memory_space<vmem>>, vector<64x128xf32>
    tpu.vector_store %arg6[%c0_26, %c0_27], %28 {strides = array<i32>} : memref<64x128xf32, #tpu.memory_space<vmem>>, vector<64x128xf32>,
    %c0_i32_28 = arith.constant 0 : i32
    %30 = arith.addi %5, %c0_i32_28 : i32
    %c0_29 = arith.constant 0 : index
    %c0_30 = arith.constant 0 : index
    %31 = arith.index_cast %30 : i32 to index
    %c1_31 = arith.constant 1 : index
    %c0_32 = arith.constant 0 : index
    %32 = vector.load %arg2[%c0_29, %c0_30, %31, %c1_31, %c0_32] : memref<4x1x9x9x128xbf16, #tpu.memory_space<vmem>>, vector<1x1x8x8x128xbf16>
    %33 = vector.shape_cast %32 : vector<1x1x8x8x128xbf16> to vector<8x8x128xbf16>
    %c0_33 = arith.constant 0 : index
    %c0_34 = arith.constant 0 : index
    %34 = vector.load %arg6[%c0_33, %c0_34] : memref<64x128xf32, #tpu.memory_space<vmem>>, vector<64x128xf32>
    %35 = vector.shape_cast %33 : vector<8x8x128xbf16> to vector<64x128xbf16>
    %c2 = arith.constant 2 : index
    %c0_35 = arith.constant 0 : index
    %c0_36 = arith.constant 0 : index
    %36 = vector.load %arg3[%c2, %c0_35, %c0_36] : memref<9x128x128xbf16, #tpu.memory_space<vmem>>, vector<1x128x128xbf16>
    %37 = vector.shape_cast %36 : vector<1x128x128xbf16> to vector<128x128xbf16>
    %cst_37 = arith.constant dense<0.000000e+00> : vector<64x128xf32>
    %38 = tpu.matmul %35, %37, %cst_37 {dimension_numbers = #tpu.dot_dimension_numbers<[1], [0], [0], [1], [0, 0, 1, 1], [], []>} : vector<64x128xbf16>, vector<128x128xbf16>, vector<64x128xf32> -> vector<64x128xf32>
    %39 = arith.addf %34, %38 : vector<64x128xf32>
    %c0_38 = arith.constant 0 : index
    %c0_39 = arith.constant 0 : index
    %40 = vector.load %arg6[%c0_38, %c0_39] : memref<64x128xf32, #tpu.memory_space<vmem>>, vector<64x128xf32>
    tpu.vector_store %arg6[%c0_38, %c0_39], %39 {strides = array<i32>} : memref<64x128xf32, #tpu.memory_space<vmem>>, vector<64x128xf32>,
    %c0_i32_40 = arith.constant 0 : i32
    %41 = arith.addi %5, %c0_i32_40 : i32
    %c2_41 = arith.constant 2 : index
    %c0_42 = arith.constant 0 : index
    %42 = arith.index_cast %41 : i32 to index
    %c0_43 = arith.constant 0 : index
    %c0_44 = arith.constant 0 : index
    %43 = vector.load %arg2[%c2_41, %c0_42, %42, %c0_43, %c0_44] : memref<4x1x9x9x128xbf16, #tpu.memory_space<vmem>>, vector<1x1x8x8x128xbf16>
    %44 = vector.shape_cast %43 : vector<1x1x8x8x128xbf16> to vector<8x8x128xbf16>
    %c0_45 = arith.constant 0 : index
    %c0_46 = arith.constant 0 : index
    %45 = vector.load %arg6[%c0_45, %c0_46] : memref<64x128xf32, #tpu.memory_space<vmem>>, vector<64x128xf32>
    %46 = vector.shape_cast %44 : vector<8x8x128xbf16> to vector<64x128xbf16>
    %c3 = arith.constant 3 : index
    %c0_47 = arith.constant 0 : index
    %c0_48 = arith.constant 0 : index
    %47 = vector.load %arg3[%c3, %c0_47, %c0_48] : memref<9x128x128xbf16, #tpu.memory_space<vmem>>, vector<1x128x128xbf16>
    %48 = vector.shape_cast %47 : vector<1x128x128xbf16> to vector<128x128xbf16>
    %cst_49 = arith.constant dense<0.000000e+00> : vector<64x128xf32>
    %49 = tpu.matmul %46, %48, %cst_49 {dimension_numbers = #tpu.dot_dimension_numbers<[1], [0], [0], [1], [0, 0, 1, 1], [], []>} : vector<64x128xbf16>, vector<128x128xbf16>, vector<64x128xf32> -> vector<64x128xf32>
    %50 = arith.addf %45, %49 : vector<64x128xf32>
    %c0_50 = arith.constant 0 : index
    %c0_51 = arith.constant 0 : index
    %51 = vector.load %arg6[%c0_50, %c0_51] : memref<64x128xf32, #tpu.memory_space<vmem>>, vector<64x128xf32>
    tpu.vector_store %arg6[%c0_50, %c0_51], %50 {strides = array<i32>} : memref<64x128xf32, #tpu.memory_space<vmem>>, vector<64x128xf32>,
    %c0_i32_52 = arith.constant 0 : i32
    %52 = arith.addi %5, %c0_i32_52 : i32
    %c3_53 = arith.constant 3 : index
    %c0_54 = arith.constant 0 : index
    %53 = arith.index_cast %52 : i32 to index
    %c0_55 = arith.constant 0 : index
    %c0_56 = arith.constant 0 : index
    %54 = vector.load %arg2[%c3_53, %c0_54, %53, %c0_55, %c0_56] : memref<4x1x9x9x128xbf16, #tpu.memory_space<vmem>>, vector<1x1x8x8x128xbf16>
    %55 = vector.shape_cast %54 : vector<1x1x8x8x128xbf16> to vector<8x8x128xbf16>
    %c0_57 = arith.constant 0 : index
    %c0_58 = arith.constant 0 : index
    %56 = vector.load %arg6[%c0_57, %c0_58] : memref<64x128xf32, #tpu.memory_space<vmem>>, vector<64x128xf32>
    %57 = vector.shape_cast %55 : vector<8x8x128xbf16> to vector<64x128xbf16>
    %c4 = arith.constant 4 : index
    %c0_59 = arith.constant 0 : index
    %c0_60 = arith.constant 0 : index
    %58 = vector.load %arg3[%c4, %c0_59, %c0_60] : memref<9x128x128xbf16, #tpu.memory_space<vmem>>, vector<1x128x128xbf16>
    %59 = vector.shape_cast %58 : vector<1x128x128xbf16> to vector<128x128xbf16>
    %cst_61 = arith.constant dense<0.000000e+00> : vector<64x128xf32>
    %60 = tpu.matmul %57, %59, %cst_61 {dimension_numbers = #tpu.dot_dimension_numbers<[1], [0], [0], [1], [0, 0, 1, 1], [], []>} : vector<64x128xbf16>, vector<128x128xbf16>, vector<64x128xf32> -> vector<64x128xf32>
    %61 = arith.addf %56, %60 : vector<64x128xf32>
    %c0_62 = arith.constant 0 : index
    %c0_63 = arith.constant 0 : index
    %62 = vector.load %arg6[%c0_62, %c0_63] : memref<64x128xf32, #tpu.memory_space<vmem>>, vector<64x128xf32>
    tpu.vector_store %arg6[%c0_62, %c0_63], %61 {strides = array<i32>} : memref<64x128xf32, #tpu.memory_space<vmem>>, vector<64x128xf32>,
    %c0_i32_64 = arith.constant 0 : i32
    %63 = arith.addi %5, %c0_i32_64 : i32
    %c2_65 = arith.constant 2 : index
    %c0_66 = arith.constant 0 : index
    %64 = arith.index_cast %63 : i32 to index
    %c1_67 = arith.constant 1 : index
    %c0_68 = arith.constant 0 : index
    %65 = vector.load %arg2[%c2_65, %c0_66, %64, %c1_67, %c0_68] : memref<4x1x9x9x128xbf16, #tpu.memory_space<vmem>>, vector<1x1x8x8x128xbf16>
    %66 = vector.shape_cast %65 : vector<1x1x8x8x128xbf16> to vector<8x8x128xbf16>
    %c0_69 = arith.constant 0 : index
    %c0_70 = arith.constant 0 : index
    %67 = vector.load %arg6[%c0_69, %c0_70] : memref<64x128xf32, #tpu.memory_space<vmem>>, vector<64x128xf32>
    %68 = vector.shape_cast %66 : vector<8x8x128xbf16> to vector<64x128xbf16>
    %c5 = arith.constant 5 : index
    %c0_71 = arith.constant 0 : index
    %c0_72 = arith.constant 0 : index
    %69 = vector.load %arg3[%c5, %c0_71, %c0_72] : memref<9x128x128xbf16, #tpu.memory_space<vmem>>, vector<1x128x128xbf16>
    %70 = vector.shape_cast %69 : vector<1x128x128xbf16> to vector<128x128xbf16>
    %cst_73 = arith.constant dense<0.000000e+00> : vector<64x128xf32>
    %71 = tpu.matmul %68, %70, %cst_73 {dimension_numbers = #tpu.dot_dimension_numbers<[1], [0], [0], [1], [0, 0, 1, 1], [], []>} : vector<64x128xbf16>, vector<128x128xbf16>, vector<64x128xf32> -> vector<64x128xf32>
    %72 = arith.addf %67, %71 : vector<64x128xf32>
    %c0_74 = arith.constant 0 : index
    %c0_75 = arith.constant 0 : index
    %73 = vector.load %arg6[%c0_74, %c0_75] : memref<64x128xf32, #tpu.memory_space<vmem>>, vector<64x128xf32>
    tpu.vector_store %arg6[%c0_74, %c0_75], %72 {strides = array<i32>} : memref<64x128xf32, #tpu.memory_space<vmem>>, vector<64x128xf32>,
    %c1_i32 = arith.constant 1 : i32
    %74 = arith.addi %5, %c1_i32 : i32
    %c0_76 = arith.constant 0 : index
    %c0_77 = arith.constant 0 : index
    %75 = arith.index_cast %74 : i32 to index
    %c0_78 = arith.constant 0 : index
    %c0_79 = arith.constant 0 : index
    %76 = vector.load %arg2[%c0_76, %c0_77, %75, %c0_78, %c0_79] : memref<4x1x9x9x128xbf16, #tpu.memory_space<vmem>>, vector<1x1x8x8x128xbf16>
    %77 = vector.shape_cast %76 : vector<1x1x8x8x128xbf16> to vector<8x8x128xbf16>
    %c0_80 = arith.constant 0 : index
    %c0_81 = arith.constant 0 : index
    %78 = vector.load %arg6[%c0_80, %c0_81] : memref<64x128xf32, #tpu.memory_space<vmem>>, vector<64x128xf32>
    %79 = vector.shape_cast %77 : vector<8x8x128xbf16> to vector<64x128xbf16>
    %c6 = arith.constant 6 : index
    %c0_82 = arith.constant 0 : index
    %c0_83 = arith.constant 0 : index
    %80 = vector.load %arg3[%c6, %c0_82, %c0_83] : memref<9x128x128xbf16, #tpu.memory_space<vmem>>, vector<1x128x128xbf16>
    %81 = vector.shape_cast %80 : vector<1x128x128xbf16> to vector<128x128xbf16>
    %cst_84 = arith.constant dense<0.000000e+00> : vector<64x128xf32>
    %82 = tpu.matmul %79, %81, %cst_84 {dimension_numbers = #tpu.dot_dimension_numbers<[1], [0], [0], [1], [0, 0, 1, 1], [], []>} : vector<64x128xbf16>, vector<128x128xbf16>, vector<64x128xf32> -> vector<64x128xf32>
    %83 = arith.addf %78, %82 : vector<64x128xf32>
    %c0_85 = arith.constant 0 : index
    %c0_86 = arith.constant 0 : index
    %84 = vector.load %arg6[%c0_85, %c0_86] : memref<64x128xf32, #tpu.memory_space<vmem>>, vector<64x128xf32>
    tpu.vector_store %arg6[%c0_85, %c0_86], %83 {strides = array<i32>} : memref<64x128xf32, #tpu.memory_space<vmem>>, vector<64x128xf32>,
    %c1_i32_87 = arith.constant 1 : i32
    %85 = arith.addi %5, %c1_i32_87 : i32
    %c1_88 = arith.constant 1 : index
    %c0_89 = arith.constant 0 : index
    %86 = arith.index_cast %85 : i32 to index
    %c0_90 = arith.constant 0 : index
    %c0_91 = arith.constant 0 : index
    %87 = vector.load %arg2[%c1_88, %c0_89, %86, %c0_90, %c0_91] : memref<4x1x9x9x128xbf16, #tpu.memory_space<vmem>>, vector<1x1x8x8x128xbf16>
    %88 = vector.shape_cast %87 : vector<1x1x8x8x128xbf16> to vector<8x8x128xbf16>
    %c0_92 = arith.constant 0 : index
    %c0_93 = arith.constant 0 : index
    %89 = vector.load %arg6[%c0_92, %c0_93] : memref<64x128xf32, #tpu.memory_space<vmem>>, vector<64x128xf32>
    %90 = vector.shape_cast %88 : vector<8x8x128xbf16> to vector<64x128xbf16>
    %c7 = arith.constant 7 : index
    %c0_94 = arith.constant 0 : index
    %c0_95 = arith.constant 0 : index
    %91 = vector.load %arg3[%c7, %c0_94, %c0_95] : memref<9x128x128xbf16, #tpu.memory_space<vmem>>, vector<1x128x128xbf16>
    %92 = vector.shape_cast %91 : vector<1x128x128xbf16> to vector<128x128xbf16>
    %cst_96 = arith.constant dense<0.000000e+00> : vector<64x128xf32>
    %93 = tpu.matmul %90, %92, %cst_96 {dimension_numbers = #tpu.dot_dimension_numbers<[1], [0], [0], [1], [0, 0, 1, 1], [], []>} : vector<64x128xbf16>, vector<128x128xbf16>, vector<64x128xf32> -> vector<64x128xf32>
    %94 = arith.addf %89, %93 : vector<64x128xf32>
    %c0_97 = arith.constant 0 : index
    %c0_98 = arith.constant 0 : index
    %95 = vector.load %arg6[%c0_97, %c0_98] : memref<64x128xf32, #tpu.memory_space<vmem>>, vector<64x128xf32>
    tpu.vector_store %arg6[%c0_97, %c0_98], %94 {strides = array<i32>} : memref<64x128xf32, #tpu.memory_space<vmem>>, vector<64x128xf32>,
    %c1_i32_99 = arith.constant 1 : i32
    %96 = arith.addi %5, %c1_i32_99 : i32
    %c0_100 = arith.constant 0 : index
    %c0_101 = arith.constant 0 : index
    %97 = arith.index_cast %96 : i32 to index
    %c1_102 = arith.constant 1 : index
    %c0_103 = arith.constant 0 : index
    %98 = vector.load %arg2[%c0_100, %c0_101, %97, %c1_102, %c0_103] : memref<4x1x9x9x128xbf16, #tpu.memory_space<vmem>>, vector<1x1x8x8x128xbf16>
    %99 = vector.shape_cast %98 : vector<1x1x8x8x128xbf16> to vector<8x8x128xbf16>
    %c0_104 = arith.constant 0 : index
    %c0_105 = arith.constant 0 : index
    %100 = vector.load %arg6[%c0_104, %c0_105] : memref<64x128xf32, #tpu.memory_space<vmem>>, vector<64x128xf32>
    %101 = vector.shape_cast %99 : vector<8x8x128xbf16> to vector<64x128xbf16>
    %c8 = arith.constant 8 : index
    %c0_106 = arith.constant 0 : index
    %c0_107 = arith.constant 0 : index
    %102 = vector.load %arg3[%c8, %c0_106, %c0_107] : memref<9x128x128xbf16, #tpu.memory_space<vmem>>, vector<1x128x128xbf16>
    %103 = vector.shape_cast %102 : vector<1x128x128xbf16> to vector<128x128xbf16>
    %cst_108 = arith.constant dense<0.000000e+00> : vector<64x128xf32>
    %104 = tpu.matmul %101, %103, %cst_108 {dimension_numbers = #tpu.dot_dimension_numbers<[1], [0], [0], [1], [0, 0, 1, 1], [], []>} : vector<64x128xbf16>, vector<128x128xbf16>, vector<64x128xf32> -> vector<64x128xf32>
    %105 = arith.addf %100, %104 : vector<64x128xf32>
    %c0_109 = arith.constant 0 : index
    %c0_110 = arith.constant 0 : index
    %106 = vector.load %arg6[%c0_109, %c0_110] : memref<64x128xf32, #tpu.memory_space<vmem>>, vector<64x128xf32>
    tpu.vector_store %arg6[%c0_109, %c0_110], %105 {strides = array<i32>} : memref<64x128xf32, #tpu.memory_space<vmem>>, vector<64x128xf32>,
    %c0_111 = arith.constant 0 : index
    %c0_112 = arith.constant 0 : index
    %107 = vector.load %arg6[%c0_111, %c0_112] : memref<64x128xf32, #tpu.memory_space<vmem>>, vector<64x128xf32>
    %108 = arith.truncf %107 : vector<64x128xf32> to vector<64x128xbf16>
    %c0_113 = arith.constant 0 : index
    %c0_114 = arith.constant 0 : index
    %109 = vector.load %arg4[%c0_113, %c0_114] : memref<64x128xbf16, #tpu.memory_space<vmem>>, vector<64x128xbf16>
    tpu.vector_store %arg4[%c0_113, %c0_114], %108 {strides = array<i32>} : memref<64x128xbf16, #tpu.memory_space<vmem>>, vector<64x128xbf16>,
    %c0_115 = arith.constant 0 : index
    %c0_116 = arith.constant 0 : index
    %110 = vector.load %arg5[%c0_115, %c0_116] : memref<2x128xf32, #tpu.memory_space<vmem>>, vector<2x128xf32>
    %cst_117 = arith.constant dense<0.000000e+00> : vector<128xf32>
    %111 = vector.multi_reduction <add>, %107, %cst_117 [0] : vector<64x128xf32> to vector<128xf32>
    %112 = vector.shape_cast %111 : vector<128xf32> to vector<1x128xf32>
    %113 = arith.mulf %107, %107 : vector<64x128xf32>
    %cst_118 = arith.constant dense<0.000000e+00> : vector<128xf32>
    %114 = vector.multi_reduction <add>, %113, %cst_118 [0] : vector<64x128xf32> to vector<128xf32>
    %115 = vector.shape_cast %114 : vector<128xf32> to vector<1x128xf32>
    %116 = tpu.concatenate %112, %115 in 0 : vector<1x128xf32>, vector<1x128xf32> -> vector<2x128xf32>
    %117 = arith.addf %110, %116 : vector<2x128xf32>
    %c0_119 = arith.constant 0 : index
    %c0_120 = arith.constant 0 : index
    %118 = vector.load %arg5[%c0_119, %c0_120] : memref<2x128xf32, #tpu.memory_space<vmem>>, vector<2x128xf32>
    tpu.vector_store %arg5[%c0_119, %c0_120], %117 {strides = array<i32>} : memref<2x128xf32, #tpu.memory_space<vmem>>, vector<2x128xf32>,
    return
  }
  func.func @transform_0(%arg0: i32, %arg1: i32) -> (i32, i32, i32, i32, i32) {
    %c0_i32 = arith.constant 0 : i32
    %c0_i32_0 = arith.constant 0 : i32
    %c0_i32_1 = arith.constant 0 : i32
    %c0_i32_2 = arith.constant 0 : i32
    %c0_i32_3 = arith.constant 0 : i32
    return %c0_i32, %arg0, %c0_i32_0, %c0_i32_1, %c0_i32_2 : i32, i32, i32, i32, i32
  }
  func.func @transform_1(%arg0: i32, %arg1: i32) -> (i32, i32, i32) {
    %c0_i32 = arith.constant 0 : i32
    %c0_i32_0 = arith.constant 0 : i32
    %c0_i32_1 = arith.constant 0 : i32
    %c0_i32_2 = arith.constant 0 : i32
    return %c0_i32, %c0_i32_0, %c0_i32_1 : i32, i32, i32
  }
  func.func @transform_2(%arg0: i32, %arg1: i32) -> (i32, i32) {
    %c1_i32 = arith.constant 1 : i32
    %0 = arith.muli %arg0, %c1_i32 : i32
    %1 = arith.addi %0, %arg1 : i32
    %c0_i32 = arith.constant 0 : i32
    %c0_i32_0 = arith.constant 0 : i32
    return %1, %c0_i32 : i32, i32
  }
  func.func @transform_3(%arg0: i32, %arg1: i32) -> (i32, i32) {
    %c0_i32 = arith.constant 0 : i32
    %c0_i32_0 = arith.constant 0 : i32
    %c0_i32_1 = arith.constant 0 : i32
    return %c0_i32, %c0_i32_0 : i32, i32
  }
}

module attributes {stable_mosaic.version = 11 : i64} {
  func.func @_conv3_sc_kernel(%arg0: i32, %arg1: memref<256x128xbf16, #tpu.memory_space<vmem>>, %arg2: memref<1x128xf32, #tpu.memory_space<vmem>>, %arg3: memref<1x128xf32, #tpu.memory_space<vmem>>, %arg4: memref<128x128xbf16, #tpu.memory_space<vmem>>, %arg5: memref<256x128xbf16, #tpu.memory_space<vmem>>, %arg6: memref<128x128xbf16, #tpu.memory_space<vmem>>, %arg7: memref<256x128xbf16, #tpu.memory_space<vmem>>, %arg8: memref<256x128xbf16, #tpu.memory_space<vmem>>, %arg9: memref<2x128xf32, #tpu.memory_space<vmem>>, %arg10: memref<2x128xf32, #tpu.memory_space<vmem>>) attributes {dimension_semantics = [#tpu.dimension_semantics<arbitrary>], iteration_bounds = array<i64: 1>, scalar_prefetch = 0 : i64, scratch_operands = 0 : i64, tpu.core_type = #tpu.core_type<tc>, window_params = [{transform_indices = @transform_0, window_bounds = array<i64: 256, 128>}, {pipeline_mode = #tpu.pipeline_mode<synchronous>, transform_indices = @transform_1, window_bounds = array<i64: 1, 128>}, {pipeline_mode = #tpu.pipeline_mode<synchronous>, transform_indices = @transform_2, window_bounds = array<i64: 1, 128>}, {pipeline_mode = #tpu.pipeline_mode<synchronous>, transform_indices = @transform_3, window_bounds = array<i64: 128, 128>}, {transform_indices = @transform_4, window_bounds = array<i64: 256, 128>}, {pipeline_mode = #tpu.pipeline_mode<synchronous>, transform_indices = @transform_5, window_bounds = array<i64: 128, 128>}, {transform_indices = @transform_6, window_bounds = array<i64: 256, 128>}, {transform_indices = @transform_7, window_bounds = array<i64: 256, 128>}, {pipeline_mode = #tpu.pipeline_mode<synchronous>, transform_indices = @transform_8, window_bounds = array<i64: 2, 128>}, {pipeline_mode = #tpu.pipeline_mode<synchronous>, transform_indices = @transform_9, window_bounds = array<i64: 2, 128>}]} {
    %c0_i32 = arith.constant 0 : i32
    %0 = arith.cmpi eq, %arg0, %c0_i32 : i32
    %1 = arith.extui %0 : i1 to i32
    %c0_i32_0 = arith.constant 0 : i32
    %2 = arith.cmpi ne, %1, %c0_i32_0 : i32
    scf.if %2 {
      %cst_30 = arith.constant 0.000000e+00 : f32
      %41 = vector.broadcast %cst_30 : f32 to vector<2x128xf32>
      %c0_31 = arith.constant 0 : index
      %c0_32 = arith.constant 0 : index
      %42 = vector.load %arg9[%c0_31, %c0_32] : memref<2x128xf32, #tpu.memory_space<vmem>>, vector<2x128xf32>
      tpu.vector_store %arg9[%c0_31, %c0_32], %41 {strides = array<i32>} : memref<2x128xf32, #tpu.memory_space<vmem>>, vector<2x128xf32>,
      %cst_33 = arith.constant 0.000000e+00 : f32
      %43 = vector.broadcast %cst_33 : f32 to vector<2x128xf32>
      %c0_34 = arith.constant 0 : index
      %c0_35 = arith.constant 0 : index
      %44 = vector.load %arg10[%c0_34, %c0_35] : memref<2x128xf32, #tpu.memory_space<vmem>>, vector<2x128xf32>
      tpu.vector_store %arg10[%c0_34, %c0_35], %43 {strides = array<i32>} : memref<2x128xf32, #tpu.memory_space<vmem>>, vector<2x128xf32>,
    } else {
    }
    %c0 = arith.constant 0 : index
    %c0_1 = arith.constant 0 : index
    %3 = vector.load %arg1[%c0, %c0_1] : memref<256x128xbf16, #tpu.memory_space<vmem>>, vector<256x128xbf16>
    %4 = arith.extf %3 : vector<256x128xbf16> to vector<256x128xf32>
    %c0_2 = arith.constant 0 : index
    %c0_3 = arith.constant 0 : index
    %5 = vector.load %arg2[%c0_2, %c0_3] : memref<1x128xf32, #tpu.memory_space<vmem>>, vector<1x128xf32>
    %6 = vector.broadcast %5 : vector<1x128xf32> to vector<256x128xf32>
    %7 = arith.mulf %4, %6 : vector<256x128xf32>
    %c0_4 = arith.constant 0 : index
    %c0_5 = arith.constant 0 : index
    %8 = vector.load %arg3[%c0_4, %c0_5] : memref<1x128xf32, #tpu.memory_space<vmem>>, vector<1x128xf32>
    %9 = vector.broadcast %8 : vector<1x128xf32> to vector<256x128xf32>
    %10 = arith.addf %7, %9 : vector<256x128xf32>
    %cst = arith.constant 0.000000e+00 : f32
    %11 = vector.broadcast %cst : f32 to vector<256x128xf32>
    %12 = arith.maximumf %10, %11 : vector<256x128xf32>
    %13 = arith.truncf %12 : vector<256x128xf32> to vector<256x128xbf16>
    %c0_6 = arith.constant 0 : index
    %c0_7 = arith.constant 0 : index
    %14 = vector.load %arg4[%c0_6, %c0_7] : memref<128x128xbf16, #tpu.memory_space<vmem>>, vector<128x128xbf16>
    %cst_8 = arith.constant dense<0.000000e+00> : vector<256x128xf32>
    %15 = tpu.matmul %13, %14, %cst_8 {dimension_numbers = #tpu.dot_dimension_numbers<[1], [0], [0], [1], [0, 0, 1, 1], [], []>} : vector<256x128xbf16>, vector<128x128xbf16>, vector<256x128xf32> -> vector<256x128xf32>
    %c0_9 = arith.constant 0 : index
    %c0_10 = arith.constant 0 : index
    %16 = vector.load %arg5[%c0_9, %c0_10] : memref<256x128xbf16, #tpu.memory_space<vmem>>, vector<256x128xbf16>
    %c0_11 = arith.constant 0 : index
    %c0_12 = arith.constant 0 : index
    %17 = vector.load %arg6[%c0_11, %c0_12] : memref<128x128xbf16, #tpu.memory_space<vmem>>, vector<128x128xbf16>
    %cst_13 = arith.constant dense<0.000000e+00> : vector<256x128xf32>
    %18 = tpu.matmul %16, %17, %cst_13 {dimension_numbers = #tpu.dot_dimension_numbers<[1], [0], [0], [1], [0, 0, 1, 1], [], []>} : vector<256x128xbf16>, vector<128x128xbf16>, vector<256x128xf32> -> vector<256x128xf32>
    %19 = arith.truncf %15 : vector<256x128xf32> to vector<256x128xbf16>
    %c0_14 = arith.constant 0 : index
    %c0_15 = arith.constant 0 : index
    %20 = vector.load %arg7[%c0_14, %c0_15] : memref<256x128xbf16, #tpu.memory_space<vmem>>, vector<256x128xbf16>
    tpu.vector_store %arg7[%c0_14, %c0_15], %19 {strides = array<i32>} : memref<256x128xbf16, #tpu.memory_space<vmem>>, vector<256x128xbf16>,
    %21 = arith.truncf %18 : vector<256x128xf32> to vector<256x128xbf16>
    %c0_16 = arith.constant 0 : index
    %c0_17 = arith.constant 0 : index
    %22 = vector.load %arg8[%c0_16, %c0_17] : memref<256x128xbf16, #tpu.memory_space<vmem>>, vector<256x128xbf16>
    tpu.vector_store %arg8[%c0_16, %c0_17], %21 {strides = array<i32>} : memref<256x128xbf16, #tpu.memory_space<vmem>>, vector<256x128xbf16>,
    %c0_18 = arith.constant 0 : index
    %c0_19 = arith.constant 0 : index
    %23 = vector.load %arg9[%c0_18, %c0_19] : memref<2x128xf32, #tpu.memory_space<vmem>>, vector<2x128xf32>
    %cst_20 = arith.constant dense<0.000000e+00> : vector<128xf32>
    %24 = vector.multi_reduction <add>, %15, %cst_20 [0] : vector<256x128xf32> to vector<128xf32>
    %25 = vector.shape_cast %24 : vector<128xf32> to vector<1x128xf32>
    %26 = arith.mulf %15, %15 : vector<256x128xf32>
    %cst_21 = arith.constant dense<0.000000e+00> : vector<128xf32>
    %27 = vector.multi_reduction <add>, %26, %cst_21 [0] : vector<256x128xf32> to vector<128xf32>
    %28 = vector.shape_cast %27 : vector<128xf32> to vector<1x128xf32>
    %29 = tpu.concatenate %25, %28 in 0 : vector<1x128xf32>, vector<1x128xf32> -> vector<2x128xf32>
    %30 = arith.addf %23, %29 : vector<2x128xf32>
    %c0_22 = arith.constant 0 : index
    %c0_23 = arith.constant 0 : index
    %31 = vector.load %arg9[%c0_22, %c0_23] : memref<2x128xf32, #tpu.memory_space<vmem>>, vector<2x128xf32>
    tpu.vector_store %arg9[%c0_22, %c0_23], %30 {strides = array<i32>} : memref<2x128xf32, #tpu.memory_space<vmem>>, vector<2x128xf32>,
    %c0_24 = arith.constant 0 : index
    %c0_25 = arith.constant 0 : index
    %32 = vector.load %arg10[%c0_24, %c0_25] : memref<2x128xf32, #tpu.memory_space<vmem>>, vector<2x128xf32>
    %cst_26 = arith.constant dense<0.000000e+00> : vector<128xf32>
    %33 = vector.multi_reduction <add>, %18, %cst_26 [0] : vector<256x128xf32> to vector<128xf32>
    %34 = vector.shape_cast %33 : vector<128xf32> to vector<1x128xf32>
    %35 = arith.mulf %18, %18 : vector<256x128xf32>
    %cst_27 = arith.constant dense<0.000000e+00> : vector<128xf32>
    %36 = vector.multi_reduction <add>, %35, %cst_27 [0] : vector<256x128xf32> to vector<128xf32>
    %37 = vector.shape_cast %36 : vector<128xf32> to vector<1x128xf32>
    %38 = tpu.concatenate %34, %37 in 0 : vector<1x128xf32>, vector<1x128xf32> -> vector<2x128xf32>
    %39 = arith.addf %32, %38 : vector<2x128xf32>
    %c0_28 = arith.constant 0 : index
    %c0_29 = arith.constant 0 : index
    %40 = vector.load %arg10[%c0_28, %c0_29] : memref<2x128xf32, #tpu.memory_space<vmem>>, vector<2x128xf32>
    tpu.vector_store %arg10[%c0_28, %c0_29], %39 {strides = array<i32>} : memref<2x128xf32, #tpu.memory_space<vmem>>, vector<2x128xf32>,
    return
  }
  func.func @transform_0(%arg0: i32) -> (i32, i32) {
    %c0_i32 = arith.constant 0 : i32
    %c0_i32_0 = arith.constant 0 : i32
    return %arg0, %c0_i32 : i32, i32
  }
  func.func @transform_1(%arg0: i32) -> (i32, i32) {
    %c0_i32 = arith.constant 0 : i32
    %c0_i32_0 = arith.constant 0 : i32
    %c0_i32_1 = arith.constant 0 : i32
    return %c0_i32, %c0_i32_0 : i32, i32
  }
  func.func @transform_2(%arg0: i32) -> (i32, i32) {
    %c0_i32 = arith.constant 0 : i32
    %c0_i32_0 = arith.constant 0 : i32
    %c0_i32_1 = arith.constant 0 : i32
    return %c0_i32, %c0_i32_0 : i32, i32
  }
  func.func @transform_3(%arg0: i32) -> (i32, i32) {
    %c0_i32 = arith.constant 0 : i32
    %c0_i32_0 = arith.constant 0 : i32
    %c0_i32_1 = arith.constant 0 : i32
    return %c0_i32, %c0_i32_0 : i32, i32
  }
  func.func @transform_4(%arg0: i32) -> (i32, i32) {
    %c0_i32 = arith.constant 0 : i32
    %c0_i32_0 = arith.constant 0 : i32
    return %arg0, %c0_i32 : i32, i32
  }
  func.func @transform_5(%arg0: i32) -> (i32, i32) {
    %c0_i32 = arith.constant 0 : i32
    %c0_i32_0 = arith.constant 0 : i32
    %c0_i32_1 = arith.constant 0 : i32
    return %c0_i32, %c0_i32_0 : i32, i32
  }
  func.func @transform_6(%arg0: i32) -> (i32, i32) {
    %c0_i32 = arith.constant 0 : i32
    %c0_i32_0 = arith.constant 0 : i32
    return %arg0, %c0_i32 : i32, i32
  }
  func.func @transform_7(%arg0: i32) -> (i32, i32) {
    %c0_i32 = arith.constant 0 : i32
    %c0_i32_0 = arith.constant 0 : i32
    return %arg0, %c0_i32 : i32, i32
  }
  func.func @transform_8(%arg0: i32) -> (i32, i32) {
    %c0_i32 = arith.constant 0 : i32
    %c0_i32_0 = arith.constant 0 : i32
    %c0_i32_1 = arith.constant 0 : i32
    return %c0_i32, %c0_i32_0 : i32, i32
  }
  func.func @transform_9(%arg0: i32) -> (i32, i32) {
    %c0_i32 = arith.constant 0 : i32
    %c0_i32_0 = arith.constant 0 : i32
    %c0_i32_1 = arith.constant 0 : i32
    return %c0_i32, %c0_i32_0 : i32, i32
  }
}

module attributes {stable_mosaic.version = 11 : i64} {
  func.func @_final_sc_kernel(%arg0: i32, %arg1: memref<256x128xbf16, #tpu.memory_space<vmem>>, %arg2: memref<1x128xf32, #tpu.memory_space<vmem>>, %arg3: memref<1x128xf32, #tpu.memory_space<vmem>>, %arg4: memref<256x128xbf16, #tpu.memory_space<vmem>>, %arg5: memref<1x128xf32, #tpu.memory_space<vmem>>, %arg6: memref<1x128xf32, #tpu.memory_space<vmem>>, %arg7: memref<256x128xf32, #tpu.memory_space<vmem>>) attributes {dimension_semantics = [#tpu.dimension_semantics<parallel>], iteration_bounds = array<i64: 1>, scalar_prefetch = 0 : i64, scratch_operands = 0 : i64, tpu.core_type = #tpu.core_type<tc>, window_params = [{transform_indices = @transform_0, window_bounds = array<i64: 256, 128>}, {pipeline_mode = #tpu.pipeline_mode<synchronous>, transform_indices = @transform_1, window_bounds = array<i64: 1, 128>}, {pipeline_mode = #tpu.pipeline_mode<synchronous>, transform_indices = @transform_2, window_bounds = array<i64: 1, 128>}, {transform_indices = @transform_3, window_bounds = array<i64: 256, 128>}, {pipeline_mode = #tpu.pipeline_mode<synchronous>, transform_indices = @transform_4, window_bounds = array<i64: 1, 128>}, {pipeline_mode = #tpu.pipeline_mode<synchronous>, transform_indices = @transform_5, window_bounds = array<i64: 1, 128>}, {transform_indices = @transform_6, window_bounds = array<i64: 256, 128>}]} {
    %c0 = arith.constant 0 : index
    %c0_0 = arith.constant 0 : index
    %0 = vector.load %arg1[%c0, %c0_0] : memref<256x128xbf16, #tpu.memory_space<vmem>>, vector<256x128xbf16>
    %1 = arith.extf %0 : vector<256x128xbf16> to vector<256x128xf32>
    %c0_1 = arith.constant 0 : index
    %c0_2 = arith.constant 0 : index
    %2 = vector.load %arg2[%c0_1, %c0_2] : memref<1x128xf32, #tpu.memory_space<vmem>>, vector<1x128xf32>
    %3 = vector.broadcast %2 : vector<1x128xf32> to vector<256x128xf32>
    %4 = arith.mulf %1, %3 : vector<256x128xf32>
    %c0_3 = arith.constant 0 : index
    %c0_4 = arith.constant 0 : index
    %5 = vector.load %arg3[%c0_3, %c0_4] : memref<1x128xf32, #tpu.memory_space<vmem>>, vector<1x128xf32>
    %6 = vector.broadcast %5 : vector<1x128xf32> to vector<256x128xf32>
    %7 = arith.addf %4, %6 : vector<256x128xf32>
    %c0_5 = arith.constant 0 : index
    %c0_6 = arith.constant 0 : index
    %8 = vector.load %arg4[%c0_5, %c0_6] : memref<256x128xbf16, #tpu.memory_space<vmem>>, vector<256x128xbf16>
    %9 = arith.extf %8 : vector<256x128xbf16> to vector<256x128xf32>
    %c0_7 = arith.constant 0 : index
    %c0_8 = arith.constant 0 : index
    %10 = vector.load %arg5[%c0_7, %c0_8] : memref<1x128xf32, #tpu.memory_space<vmem>>, vector<1x128xf32>
    %11 = vector.broadcast %10 : vector<1x128xf32> to vector<256x128xf32>
    %12 = arith.mulf %9, %11 : vector<256x128xf32>
    %13 = arith.addf %7, %12 : vector<256x128xf32>
    %c0_9 = arith.constant 0 : index
    %c0_10 = arith.constant 0 : index
    %14 = vector.load %arg6[%c0_9, %c0_10] : memref<1x128xf32, #tpu.memory_space<vmem>>, vector<1x128xf32>
    %15 = vector.broadcast %14 : vector<1x128xf32> to vector<256x128xf32>
    %16 = arith.addf %13, %15 : vector<256x128xf32>
    %cst = arith.constant 0.000000e+00 : f32
    %17 = vector.broadcast %cst : f32 to vector<256x128xf32>
    %18 = arith.maximumf %16, %17 : vector<256x128xf32>
    %c0_11 = arith.constant 0 : index
    %c0_12 = arith.constant 0 : index
    %19 = vector.load %arg7[%c0_11, %c0_12] : memref<256x128xf32, #tpu.memory_space<vmem>>, vector<256x128xf32>
    tpu.vector_store %arg7[%c0_11, %c0_12], %18 {strides = array<i32>} : memref<256x128xf32, #tpu.memory_space<vmem>>, vector<256x128xf32>,
    return
  }
  func.func @transform_0(%arg0: i32) -> (i32, i32) {
    %c0_i32 = arith.constant 0 : i32
    %c0_i32_0 = arith.constant 0 : i32
    return %arg0, %c0_i32 : i32, i32
  }
  func.func @transform_1(%arg0: i32) -> (i32, i32) {
    %c0_i32 = arith.constant 0 : i32
    %c0_i32_0 = arith.constant 0 : i32
    %c0_i32_1 = arith.constant 0 : i32
    return %c0_i32, %c0_i32_0 : i32, i32
  }
  func.func @transform_2(%arg0: i32) -> (i32, i32) {
    %c0_i32 = arith.constant 0 : i32
    %c0_i32_0 = arith.constant 0 : i32
    %c0_i32_1 = arith.constant 0 : i32
    return %c0_i32, %c0_i32_0 : i32, i32
  }
  func.func @transform_3(%arg0: i32) -> (i32, i32) {
    %c0_i32 = arith.constant 0 : i32
    %c0_i32_0 = arith.constant 0 : i32
    return %arg0, %c0_i32 : i32, i32
  }
  func.func @transform_4(%arg0: i32) -> (i32, i32) {
    %c0_i32 = arith.constant 0 : i32
    %c0_i32_0 = arith.constant 0 : i32
    %c0_i32_1 = arith.constant 0 : i32
    return %c0_i32, %c0_i32_0 : i32, i32
  }
  func.func @transform_5(%arg0: i32) -> (i32, i32) {
    %c0_i32 = arith.constant 0 : i32
    %c0_i32_0 = arith.constant 0 : i32
    %c0_i32_1 = arith.constant 0 : i32
    return %c0_i32, %c0_i32_0 : i32, i32
  }
  func.func @transform_6(%arg0: i32) -> (i32, i32) {
    %c0_i32 = arith.constant 0 : i32
    %c0_i32_0 = arith.constant 0 : i32
    return %arg0, %c0_i32 : i32, i32
  }
}

</mosaic_0001>

<bundles_post_ra>
// kernel: bottleneck_forward.4
= control target key start
LH: loop header
LB: loop body
LE: loop exit
PB: predicated region body
PF: predicated region fallthrough
CT: control target
= control target key end

     0   :  { %s1961_s12 = smov 0   ;;  %s2271_s0 = inlined_call_operand.vmem [shape: bf16[1024,128], index: 0, kind: input, shape index: {}]   ;;  %s2272_s1 = inlined_call_operand.vmem [shape: bf16[128,128], index: 1, kind: input, shape index: {}]   ;;  %s2273_s2 = inlined_call_operand.vmem [shape: bf16[1024,128], index: 2, kind: output, shape index: {0}]   ;;  %s2274_s3 = inlined_call_operand.vmem [shape: f32[2,128], index: 3, kind: output, shape index: {1}]  }
   0x1 LB: > { %s1376_s13 = sadd.s32 4294967295, %s1938_s12   ;;  %p1380_p0 = scmp.ge.s32.totalorder %s1938_s12, 1  ;;  %s1938_s12 = sphi %s1961_s12, %s14_s12  }
   0x2   : > { %p136_p1 = scmp.lt.s32.totalorder %s1938_s12, 3 }
   0x4   : > { %p137_p2 = pnand %p1380_p0, %p136_p1 }
   0x5   : > { %s1381_s14 = sshll.u32 (!%p137_p2), %s1376_s13, 6  ;;  %p1385_p4 = scmp.ne.s32.totalorder (!%p137_p2), %s1376_s13, 0 }
   0x6   : > { %140 = sbr.rel (%p137_p2) target bundleno = 412 (0x19c), region = 28  ;;  %p161_p3 = scmp.lt.s32.totalorder (!%p137_p2), %s1381_s14, 127 }
   0xd   : > { %s2276_s14 = smov (!%p161_p3, %s1381_s14), 127  ;;  %176 = sbr.rel (%p1385_p4) target bundleno = 20 (0x14), region = 32 }
   0xe   : > { %s1382_s15 = sshll.u32 %s2276_s14, 2  ;;  %v1940_v0 = vmov (!%p1385_p4), 0.0  }
   0xf   : > { %s1972_s18 = scalar_lea.vmem %s2271_s0, %s1382_s15  ;;  %s1977_s21 = scalar_lea.vmem %s2273_s2, %s1382_s15  ;;  %177 = vst [vmem:[%s2274_s3] sm:$0x3] (!%p1385_p4), %v1940_v0 }
  0x14 PF: > { %v1892_v1 = vld [vmem:[%s2272_s1] sm:$0xff]   ;;  %v1893_v2 = vld [vmem:[%s2272_s1 + $0x8] sm:$0xff]   ;;  %v1894_v3 = vld [vmem:[%s2272_s1 + $0x10] sm:$0xff]   ;;  %vm1310_vm0 = vcmask 1040384  }
  0x15   : > { %1787 = vmatprep.subr.bf16.mxu0 %v1892_v1  ;;  %1867 = vmatprep.subr.bf16.mxu1 %v1892_v1  ;;  %v1895_v4 = vld [vmem:[%s2272_s1 + $0x18] sm:$0xff]   ;;  %v1900_v5 = vld [vmem:[%s1972_s18] sm:$0xff]   ;;  %v1897_v7 = vld [vmem:[%s2272_s1 + $0x28] sm:$0xff]  }
  0x16   : > { %1788 = vmatpush3.bf16.msra.mxu0 %v1892_v1  ;;  %1875 = vmatpush3.bf16.msra.mxu1 %v1892_v1  ;;  %v1896_v6 = vld [vmem:[%s2272_s1 + $0x20] sm:$0xff]   ;;  %v1898_v8 = vld [vmem:[%s2272_s1 + $0x30] sm:$0xff]   ;;  %v1899_v9 = vld [vmem:[%s2272_s1 + $0x38] sm:$0xff]  }
  0x17   : > { %1789 = vmatprep.subr.bf16.mxu0 %v1893_v2  ;;  %1868 = vmatprep.subr.bf16.mxu1 %v1893_v2  ;;  %v1916_v10 = vld [vmem:[%s1972_s18 + $0x80] sm:$0xff]   ;;  %v1901_v11 = vld [vmem:[%s1972_s18 + $0x8] sm:$0xff]   ;;  %v1902_v12 = vld [vmem:[%s1972_s18 + $0x10] sm:$0xff]  }
  0x18   : > { %1803 = vmatprep.mubr.bf16.mxu0 %v1900_v5  ;;  %1835 = vmatprep.mubr.bf16.mxu1 %v1916_v10  ;;  %v1917_v13 = vld [vmem:[%s1972_s18 + $0x88] sm:$0xff]   ;;  %v1918_v14 = vld [vmem:[%s1972_s18 + $0x90] sm:$0xff]   ;;  %v1903_v15 = vld [vmem:[%s1972_s18 + $0x18] sm:$0xff]  }
  0x19   : > { %v1904_v16 = vld [vmem:[%s1972_s18 + $0x20] sm:$0xff]   ;;  %v1919_v17 = vld [vmem:[%s1972_s18 + $0x98] sm:$0xff]   ;;  %v1905_v19 = vld [vmem:[%s1972_s18 + $0x28] sm:$0xff]  }
  0x1a   : > { %1790 = vmatpush3.bf16.msra.mxu0 %v1893_v2  ;;  %1876 = vmatpush3.bf16.msra.mxu1 %v1893_v2  ;;  %v1920_v18 = vld [vmem:[%s1972_s18 + $0xa0] sm:$0xff]   ;;  %v1921_v20 = vld [vmem:[%s1972_s18 + $0xa8] sm:$0xff]   ;;  %v1906_v21 = vld [vmem:[%s1972_s18 + $0x30] sm:$0xff]  }
  0x1b   : > { %1791 = vmatprep.subr.bf16.mxu0 %v1894_v3  ;;  %1869 = vmatprep.subr.bf16.mxu1 %v1894_v3  ;;  %v1922_v22 = vld [vmem:[%s1972_s18 + $0xb0] sm:$0xff]   ;;  %v1907_v23 = vld [vmem:[%s1972_s18 + $0x38] sm:$0xff]   ;;  %v1908_v25 = vld [vmem:[%s1972_s18 + $0x40] sm:$0xff]  }
  0x1c   : > { %v1923_v24 = vld [vmem:[%s1972_s18 + $0xb8] sm:$0xff]   ;;  %v1924_v26 = vld [vmem:[%s1972_s18 + $0xc0] sm:$0xff]   ;;  %v1909_v27 = vld [vmem:[%s1972_s18 + $0x48] sm:$0xff]  }
  0x1d   : > { %v1925_v28 = vld [vmem:[%s1972_s18 + $0xc8] sm:$0xff]   ;;  %v1910_v29 = vld [vmem:[%s1972_s18 + $0x50] sm:$0xff]   ;;  %v1911_v31 = vld [vmem:[%s1972_s18 + $0x58] sm:$0xff]  }
  0x1e   : > { %1792 = vmatpush3.bf16.msra.mxu0 %v1894_v3  ;;  %1877 = vmatpush3.bf16.msra.mxu1 %v1894_v3  ;;  %v1926_v30 = vld [vmem:[%s1972_s18 + $0xd0] sm:$0xff]   ;;  %v1927_v32 = vld [vmem:[%s1972_s18 + $0xd8] sm:$0xff]   ;;  %v1912_v33 = vld [vmem:[%s1972_s18 + $0x60] sm:$0xff]  }
  0x1f   : > { %1793 = vmatprep.subr.bf16.mxu0 %v1895_v4  ;;  %1870 = vmatprep.subr.bf16.mxu1 %v1895_v4  ;;  %v1928_v34 = vld [vmem:[%s1972_s18 + $0xe0] sm:$0xff]   ;;  %v1913_v35 = vld [vmem:[%s1972_s18 + $0x68] sm:$0xff]   ;;  %v1914_v37 = vld [vmem:[%s1972_s18 + $0x70] sm:$0xff]  }
  0x20   : > { %v1929_v36 = vld [vmem:[%s1972_s18 + $0xe8] sm:$0xff]   ;;  %v1930_v38 = vld [vmem:[%s1972_s18 + $0xf0] sm:$0xff]   ;;  %v1915_v39 = vld [vmem:[%s1972_s18 + $0x78] sm:$0xff]  }
  0x21   : > { %v1931_v40 = vld [vmem:[%s1972_s18 + $0xf8] sm:$0xff]  }
  0x22   : > { %1794 = vmatpush3.bf16.msra.mxu0 %v1895_v4  ;;  %1878 = vmatpush3.bf16.msra.mxu1 %v1895_v4 }
  0x23   : > { %1795 = vmatprep.subr.bf16.mxu0 %v1896_v6  ;;  %1871 = vmatprep.subr.bf16.mxu1 %v1896_v6 }
  0x26   : > { %1796 = vmatpush3.bf16.msra.mxu0 %v1896_v6  ;;  %1879 = vmatpush3.bf16.msra.mxu1 %v1896_v6 }
  0x27   : > { %1797 = vmatprep.subr.bf16.mxu0 %v1897_v7  ;;  %1872 = vmatprep.subr.bf16.mxu1 %v1897_v7 }
  0x2a   : > { %1798 = vmatpush3.bf16.msra.mxu0 %v1897_v7  ;;  %1880 = vmatpush3.bf16.msra.mxu1 %v1897_v7 }
  0x2b   : > { %1799 = vmatprep.subr.bf16.mxu0 %v1898_v8  ;;  %1873 = vmatprep.subr.bf16.mxu1 %v1898_v8 }
  0x2e   : > { %1800 = vmatpush3.bf16.msra.mxu0 %v1898_v8  ;;  %1881 = vmatpush3.bf16.msra.mxu1 %v1898_v8 }
  0x2f   : > { %1801 = vmatprep.subr.bf16.mxu0 %v1899_v9  ;;  %1874 = vmatprep.subr.bf16.mxu1 %v1899_v9 }
  0x32   : > { %1802 = vmatpush3.bf16.msra.mxu0 %v1899_v9  ;;  %1882 = vmatpush3.bf16.msra.mxu1 %v1899_v9 }
  0x35   : > { %1804 = vmatmul.mubr.bf16.vlgmr.msra.gmra.mrb[0].mxu0 %v1901_v11  ;;  %1836 = vmatmul.mubr.bf16.vlgmr.msra.gmra.mrb[0].mxu1 %v1917_v13 }
  0x36   : > { %1807 = vmatprep.mubr.bf16.mxu0 %v1902_v12  ;;  %1839 = vmatprep.mubr.bf16.mxu1 %v1918_v14 }
  0x3d   : > { %1808 = vmatmul.mubr.bf16.gmra.mrb[4].mxu0 %v1903_v15  ;;  %1840 = vmatmul.mubr.bf16.gmra.mrb[4].mxu1 %v1919_v17 }
  0x3e   : > { %1811 = vmatprep.mubr.bf16.mxu0 %v1904_v16  ;;  %1843 = vmatprep.mubr.bf16.mxu1 %v1920_v18 }
  0x45   : > { %1812 = vmatmul.mubr.bf16.gmra.mrb[8].mxu0 %v1905_v19  ;;  %1844 = vmatmul.mubr.bf16.gmra.mrb[8].mxu1 %v1921_v20 }
  0x46   : > { %1815 = vmatprep.mubr.bf16.mxu0 %v1906_v21  ;;  %1847 = vmatprep.mubr.bf16.mxu1 %v1922_v22 }
  0x4d   : > { %1816 = vmatmul.mubr.bf16.gmra.mrb[12].mxu0 %v1907_v23  ;;  %1848 = vmatmul.mubr.bf16.gmra.mrb[12].mxu1 %v1923_v24 }
  0x4e   : > { %1819 = vmatprep.mubr.bf16.mxu0 %v1908_v25  ;;  %1851 = vmatprep.mubr.bf16.mxu1 %v1924_v26 }
  0x55   : > { %1820 = vmatmul.mubr.bf16.gmra.mrb[16].mxu0 %v1909_v27  ;;  %1852 = vmatmul.mubr.bf16.gmra.mrb[16].mxu1 %v1925_v28 }
  0x56   : > { %1823 = vmatprep.mubr.bf16.mxu0 %v1910_v29  ;;  %1855 = vmatprep.mubr.bf16.mxu1 %v1926_v30 }
  0x5d   : > { %1824 = vmatmul.mubr.bf16.gmra.mrb[20].mxu0 %v1911_v31  ;;  %1856 = vmatmul.mubr.bf16.gmra.mrb[20].mxu1 %v1927_v32 }
  0x5e   : > { %1827 = vmatprep.mubr.bf16.mxu0 %v1912_v33  ;;  %1859 = vmatprep.mubr.bf16.mxu1 %v1928_v34 }
  0x65   : > { %1828 = vmatmul.mubr.bf16.gmra.mrb[24].mxu0 %v1913_v35  ;;  %1860 = vmatmul.mubr.bf16.gmra.mrb[24].mxu1 %v1929_v36 }
  0x66   : > { %1831 = vmatprep.mubr.bf16.mxu0 %v1914_v37  ;;  %1863 = vmatprep.mubr.bf16.mxu1 %v1930_v38 }
  0x6d   : > { %1832 = vmatmul.mubr.bf16.gmra.mrb[28].mxu0 %v1915_v39  ;;  %1864 = vmatmul.mubr.bf16.gmra.mrb[28].mxu1 %v1931_v40 }
 0x108   : > { %v1805_v41 = vpop.f32.mrb[0].mxu0  ;;  %v2038_v42 = vpop.f32.mrb[0].mxu1 }
 0x109   : > { %v532_v43 = vpop.f32.mrb[1].mxu0  ;;  %v2040_v44 = vpop.f32.mrb[1].mxu1  ;;  %v1179_v56 = vmul.f32 %v1805_v41, %v1805_v41 }
 0x10a   : > { %v1806_v45 = vpop.f32.mrb[2].mxu0  ;;  %v2042_v46 = vpop.f32.mrb[2].mxu1  ;;  %v1177_v47 = vmul.f32 %v532_v43, %v532_v43 }
 0x10b   : > { %v1564_v48 = vpack.c.bf16 %v1806_v45, %v1805_v41  ;;  %v535_v49 = vpop.f32.mrb[3].mxu0  ;;  %v1644_v50 = vpack.c.bf16 %v2042_v46, %v2038_v42  ;;  %v2046_v51 = vpop.f32.mrb[3].mxu1  ;;  %v1180_v59 = vmul.f32 %v1806_v45, %v1806_v45 }
 0x10c   : > { %v1559_v52 = vpack.c.bf16 %v535_v49, %v532_v43  ;;  %v1108_v53 = vadd.f32 %v535_v49, %v532_v43  ;;  %v1178_v54 = vmul.f32 %v535_v49, %v535_v49  ;;  %v1639_v55 = vpack.c.bf16 %v2046_v51, %v2040_v44 }
 0x10d   : > { %1716 = vst [vmem:[%s1977_s21 + $0x8] sm:$0xff] %v1564_v48   ;;  %1732 = vst [vmem:[%s1977_s21 + $0x88] sm:$0xff] %v1644_v50  }
 0x10e   : > { %1560 = vst [vmem:[%s1977_s21] sm:$0xff] %v1559_v52   ;;  %v1109_v57 = vadd.f32 %v1805_v41, %v1108_v53  ;;  %v1241_v58 = vadd.f32 %v1178_v54, %v1177_v47  ;;  %1731 = vst [vmem:[%s1977_s21 + $0x80] sm:$0xff] %v1639_v55  }
 0x110   : > { %v1242_v60 = vadd.f32 %v1241_v58, %v1179_v56  ;;  %v1809_v61 = vpop.f32.mrb[4].mxu0  ;;  %v1110_v62 = vadd.f32 %v1806_v45, %v1109_v57  ;;  %v2054_v63 = vpop.f32.mrb[4].mxu1 }
 0x111   : > { %v548_v0 = vpop.f32.mrb[5].mxu0  ;;  %v2056_v1 = vpop.f32.mrb[5].mxu1  ;;  %v1183_v16 = vmul.f32 %v1809_v61, %v1809_v61 }
 0x112   : > { %v1111_v2 = vadd.f32 %v1110_v62, %v548_v0  ;;  %v1181_v3 = vmul.f32 %v548_v0, %v548_v0  ;;  %v1243_v4 = vadd.f32 %v1242_v60, %v1180_v59  ;;  %v1810_v5 = vpop.f32.mrb[6].mxu0  ;;  %v2058_v6 = vpop.f32.mrb[6].mxu1 }
 0x113   : > { %v1574_v7 = vpack.c.bf16 %v1810_v5, %v1809_v61  ;;  %v551_v8 = vpop.f32.mrb[7].mxu0  ;;  %v1654_v9 = vpack.c.bf16 %v2058_v6, %v2054_v63  ;;  %v2062_v10 = vpop.f32.mrb[7].mxu1  ;;  %v1184_v19 = vmul.f32 %v1810_v5, %v1810_v5 }
 0x114   : > { %v1244_v11 = vadd.f32 %v1243_v4, %v1181_v3  ;;  %v1569_v12 = vpack.c.bf16 %v551_v8, %v548_v0  ;;  %v1112_v13 = vadd.f32 %v1111_v2, %v551_v8  ;;  %v1182_v14 = vmul.f32 %v551_v8, %v551_v8 }
 0x115   : > { %1718 = vst [vmem:[%s1977_s21 + $0x18] sm:$0xff] %v1574_v7   ;;  %1734 = vst [vmem:[%s1977_s21 + $0x98] sm:$0xff] %v1654_v9   ;;  %v1649_v15 = vpack.c.bf16 %v2062_v10, %v2056_v1 }
 0x116   : > { %1717 = vst [vmem:[%s1977_s21 + $0x10] sm:$0xff] %v1569_v12   ;;  %v1113_v17 = vadd.f32 %v1809_v61, %v1112_v13  ;;  %v1245_v18 = vadd.f32 %v1244_v11, %v1182_v14 }
 0x117   : > { %1733 = vst [vmem:[%s1977_s21 + $0x90] sm:$0xff] %v1649_v15  }
 0x118   : > { %v1246_v20 = vadd.f32 %v1245_v18, %v1183_v16  ;;  %v1813_v21 = vpop.f32.mrb[8].mxu0  ;;  %v1114_v22 = vadd.f32 %v1810_v5, %v1113_v17  ;;  %v2070_v23 = vpop.f32.mrb[8].mxu1 }
 0x119   : > { %v564_v24 = vpop.f32.mrb[9].mxu0  ;;  %v2072_v25 = vpop.f32.mrb[9].mxu1  ;;  %v1187_v40 = vmul.f32 %v1813_v21, %v1813_v21 }
 0x11a   : > { %v1115_v26 = vadd.f32 %v1114_v22, %v564_v24  ;;  %v1185_v27 = vmul.f32 %v564_v24, %v564_v24  ;;  %v1247_v28 = vadd.f32 %v1246_v20, %v1184_v19  ;;  %v1814_v29 = vpop.f32.mrb[10].mxu0  ;;  %v2074_v30 = vpop.f32.mrb[10].mxu1 }
 0x11b   : > { %v1584_v31 = vpack.c.bf16 %v1814_v29, %v1813_v21  ;;  %v567_v32 = vpop.f32.mrb[11].mxu0  ;;  %v1664_v33 = vpack.c.bf16 %v2074_v30, %v2070_v23  ;;  %v2078_v34 = vpop.f32.mrb[11].mxu1  ;;  %v1188_v45 = vmul.f32 %v1814_v29, %v1814_v29 }
 0x11c   : > { %v1248_v35 = vadd.f32 %v1247_v28, %v1185_v27  ;;  %v1579_v36 = vpack.c.bf16 %v567_v32, %v564_v24  ;;  %v1116_v37 = vadd.f32 %v1115_v26, %v567_v32  ;;  %v1186_v38 = vmul.f32 %v567_v32, %v567_v32 }
 0x11d   : > { %1720 = vst [vmem:[%s1977_s21 + $0x28] sm:$0xff] %v1584_v31   ;;  %1736 = vst [vmem:[%s1977_s21 + $0xa8] sm:$0xff] %v1664_v33   ;;  %v1659_v39 = vpack.c.bf16 %v2078_v34, %v2072_v25 }
 0x11e   : > { %1719 = vst [vmem:[%s1977_s21 + $0x20] sm:$0xff] %v1579_v36   ;;  %v1117_v41 = vadd.f32 %v1813_v21, %v1116_v37  ;;  %v1249_v43 = vadd.f32 %v1248_v35, %v1186_v38 }
 0x11f   : > { %1735 = vst [vmem:[%s1977_s21 + $0xa0] sm:$0xff] %v1659_v39  }
 0x120   : > { %v1250_v47 = vadd.f32 %v1249_v43, %v1187_v40  ;;  %v1817_v48 = vpop.f32.mrb[12].mxu0  ;;  %v1118_v49 = vadd.f32 %v1814_v29, %v1117_v41  ;;  %v2086_v50 = vpop.f32.mrb[12].mxu1 }
 0x121   : > { %v580_v52 = vpop.f32.mrb[13].mxu0  ;;  %v2088_v53 = vpop.f32.mrb[13].mxu1  ;;  %v1191_v7 = vmul.f32 %v1817_v48, %v1817_v48 }
 0x122   : > { %v1119_v54 = vadd.f32 %v1118_v49, %v580_v52  ;;  %v1189_v55 = vmul.f32 %v580_v52, %v580_v52  ;;  %v1251_v56 = vadd.f32 %v1250_v47, %v1188_v45  ;;  %v1818_v57 = vpop.f32.mrb[14].mxu0  ;;  %v2090_v58 = vpop.f32.mrb[14].mxu1 }
 0x123   : > { %v1594_v59 = vpack.c.bf16 %v1818_v57, %v1817_v48  ;;  %v583_v60 = vpop.f32.mrb[15].mxu0  ;;  %v1674_v61 = vpack.c.bf16 %v2090_v58, %v2086_v50  ;;  %v2094_v62 = vpop.f32.mrb[15].mxu1  ;;  %v1192_v11 = vmul.f32 %v1818_v57, %v1818_v57 }
 0x124   : > { %v1252_v0 = vadd.f32 %v1251_v56, %v1189_v55  ;;  %v1589_v2 = vpack.c.bf16 %v583_v60, %v580_v52  ;;  %v1120_v3 = vadd.f32 %v1119_v54, %v583_v60  ;;  %v1190_v4 = vmul.f32 %v583_v60, %v583_v60 }
 0x125   : > { %1722 = vst [vmem:[%s1977_s21 + $0x38] sm:$0xff] %v1594_v59   ;;  %1738 = vst [vmem:[%s1977_s21 + $0xb8] sm:$0xff] %v1674_v61   ;;  %v1669_v5 = vpack.c.bf16 %v2094_v62, %v2088_v53 }
 0x126   : > { %1721 = vst [vmem:[%s1977_s21 + $0x30] sm:$0xff] %v1589_v2   ;;  %v1121_v8 = vadd.f32 %v1817_v48, %v1120_v3  ;;  %v1253_v9 = vadd.f32 %v1252_v0, %v1190_v4 }
 0x127   : > { %1737 = vst [vmem:[%s1977_s21 + $0xb0] sm:$0xff] %v1669_v5  }
 0x128   : > { %v1254_v12 = vadd.f32 %v1253_v9, %v1191_v7  ;;  %v1821_v13 = vpop.f32.mrb[16].mxu0  ;;  %v1122_v14 = vadd.f32 %v1818_v57, %v1121_v8  ;;  %v2102_v15 = vpop.f32.mrb[16].mxu1 }
 0x129   : > { %v596_v16 = vpop.f32.mrb[17].mxu0  ;;  %v2104_v17 = vpop.f32.mrb[17].mxu1  ;;  %v1195_v36 = vmul.f32 %v1821_v13, %v1821_v13 }
 0x12a   : > { %v1123_v18 = vadd.f32 %v1122_v14, %v596_v16  ;;  %v1193_v19 = vmul.f32 %v596_v16, %v596_v16  ;;  %v1255_v20 = vadd.f32 %v1254_v12, %v1192_v11  ;;  %v1822_v21 = vpop.f32.mrb[18].mxu0  ;;  %v2106_v22 = vpop.f32.mrb[18].mxu1 }
 0x12b   : > { %v1604_v24 = vpack.c.bf16 %v1822_v21, %v1821_v13  ;;  %v599_v26 = vpop.f32.mrb[19].mxu0  ;;  %v1684_v27 = vpack.c.bf16 %v2106_v22, %v2102_v15  ;;  %v2110_v28 = vpop.f32.mrb[19].mxu1  ;;  %v1196_v39 = vmul.f32 %v1822_v21, %v1822_v21 }
 0x12c   : > { %v1256_v29 = vadd.f32 %v1255_v20, %v1193_v19  ;;  %v1599_v31 = vpack.c.bf16 %v599_v26, %v596_v16  ;;  %v1124_v32 = vadd.f32 %v1123_v18, %v599_v26  ;;  %v1194_v33 = vmul.f32 %v599_v26, %v599_v26 }
 0x12d   : > { %1724 = vst [vmem:[%s1977_s21 + $0x48] sm:$0xff] %v1604_v24   ;;  %1740 = vst [vmem:[%s1977_s21 + $0xc8] sm:$0xff] %v1684_v27   ;;  %v1679_v35 = vpack.c.bf16 %v2110_v28, %v2104_v17 }
 0x12e   : > { %1723 = vst [vmem:[%s1977_s21 + $0x40] sm:$0xff] %v1599_v31   ;;  %v1125_v37 = vadd.f32 %v1821_v13, %v1124_v32  ;;  %v1257_v38 = vadd.f32 %v1256_v29, %v1194_v33 }
 0x12f   : > { %1739 = vst [vmem:[%s1977_s21 + $0xc0] sm:$0xff] %v1679_v35  }
 0x130   : > { %v1258_v40 = vadd.f32 %v1257_v38, %v1195_v36  ;;  %v1825_v41 = vpop.f32.mrb[20].mxu0  ;;  %v1126_v43 = vadd.f32 %v1822_v21, %v1125_v37  ;;  %v2118_v45 = vpop.f32.mrb[20].mxu1 }
 0x131   : > { %v612_v47 = vpop.f32.mrb[21].mxu0  ;;  %v2120_v48 = vpop.f32.mrb[21].mxu1  ;;  %v1199_v7 = vmul.f32 %v1825_v41, %v1825_v41 }
 0x132   : > { %v1127_v49 = vadd.f32 %v1126_v43, %v612_v47  ;;  %v1197_v52 = vmul.f32 %v612_v47, %v612_v47  ;;  %v1259_v54 = vadd.f32 %v1258_v40, %v1196_v39  ;;  %v1826_v55 = vpop.f32.mrb[22].mxu0  ;;  %v2122_v56 = vpop.f32.mrb[22].mxu1 }
 0x133   : > { %v1614_v57 = vpack.c.bf16 %v1826_v55, %v1825_v41  ;;  %v615_v59 = vpop.f32.mrb[23].mxu0  ;;  %v1694_v60 = vpack.c.bf16 %v2122_v56, %v2118_v45  ;;  %v2126_v61 = vpop.f32.mrb[23].mxu1  ;;  %v1200_v11 = vmul.f32 %v1826_v55, %v1826_v55 }
 0x134   : > { %v1260_v0 = vadd.f32 %v1259_v54, %v1197_v52  ;;  %v1609_v2 = vpack.c.bf16 %v615_v59, %v612_v47  ;;  %v1128_v3 = vadd.f32 %v1127_v49, %v615_v59  ;;  %v1198_v4 = vmul.f32 %v615_v59, %v615_v59 }
 0x135   : > { %1726 = vst [vmem:[%s1977_s21 + $0x58] sm:$0xff] %v1614_v57   ;;  %1742 = vst [vmem:[%s1977_s21 + $0xd8] sm:$0xff] %v1694_v60   ;;  %v1689_v5 = vpack.c.bf16 %v2126_v61, %v2120_v48 }
 0x136   : > { %1725 = vst [vmem:[%s1977_s21 + $0x50] sm:$0xff] %v1609_v2   ;;  %v1129_v8 = vadd.f32 %v1825_v41, %v1128_v3  ;;  %v1261_v9 = vadd.f32 %v1260_v0, %v1198_v4 }
 0x137   : > { %1741 = vst [vmem:[%s1977_s21 + $0xd0] sm:$0xff] %v1689_v5  }
 0x138   : > { %v1262_v12 = vadd.f32 %v1261_v9, %v1199_v7  ;;  %v1829_v13 = vpop.f32.mrb[24].mxu0  ;;  %v1130_v14 = vadd.f32 %v1826_v55, %v1129_v8  ;;  %v2134_v16 = vpop.f32.mrb[24].mxu1 }
 0x139   : > { %v628_v18 = vpop.f32.mrb[25].mxu0  ;;  %v2136_v19 = vpop.f32.mrb[25].mxu1  ;;  %v1203_v40 = vmul.f32 %v1829_v13, %v1829_v13 }
 0x13a   : > { %v1131_v20 = vadd.f32 %v1130_v14, %v628_v18  ;;  %v1201_v21 = vmul.f32 %v628_v18, %v628_v18  ;;  %v1263_v24 = vadd.f32 %v1262_v12, %v1200_v11  ;;  %v1830_v26 = vpop.f32.mrb[26].mxu0  ;;  %v2138_v27 = vpop.f32.mrb[26].mxu1 }
 0x13b   : > { %v1624_v29 = vpack.c.bf16 %v1830_v26, %v1829_v13  ;;  %v631_v31 = vpop.f32.mrb[27].mxu0  ;;  %v1704_v32 = vpack.c.bf16 %v2138_v27, %v2134_v16  ;;  %v2142_v33 = vpop.f32.mrb[27].mxu1  ;;  %v1204_v47 = vmul.f32 %v1830_v26, %v1830_v26 }
 0x13c   : > { %v1264_v35 = vadd.f32 %v1263_v24, %v1201_v21  ;;  %v1619_v36 = vpack.c.bf16 %v631_v31, %v628_v18  ;;  %v1132_v37 = vadd.f32 %v1131_v20, %v631_v31  ;;  %v1202_v38 = vmul.f32 %v631_v31, %v631_v31 }
 0x13d   : > { %1728 = vst [vmem:[%s1977_s21 + $0x68] sm:$0xff] %v1624_v29   ;;  %1744 = vst [vmem:[%s1977_s21 + $0xe8] sm:$0xff] %v1704_v32   ;;  %v1699_v39 = vpack.c.bf16 %v2142_v33, %v2136_v19  ;;  %v1209_v32 = vmul.f32 %v2040_v44, %v2040_v44 }
 0x13e   : > { %1727 = vst [vmem:[%s1977_s21 + $0x60] sm:$0xff] %v1619_v36   ;;  %v1133_v41 = vadd.f32 %v1829_v13, %v1132_v37  ;;  %v1265_v43 = vadd.f32 %v1264_v35, %v1202_v38 }
 0x13f   : > { %1743 = vst [vmem:[%s1977_s21 + $0xe0] sm:$0xff] %v1699_v39   ;;  %v1210_v39 = vmul.f32 %v2046_v51, %v2046_v51 }
 0x140   : > { %v1266_v49 = vadd.f32 %v1265_v43, %v1203_v40  ;;  %v1833_v52 = vpop.f32.mrb[28].mxu0  ;;  %v1134_v54 = vadd.f32 %v1830_v26, %v1133_v41  ;;  %v2150_v55 = vpop.f32.mrb[28].mxu1  ;;  %v1211_v40 = vmul.f32 %v2038_v42, %v2038_v42 }
 0x141   : > { %v644_v57 = vpop.f32.mrb[29].mxu0  ;;  %v2152_v59 = vpop.f32.mrb[29].mxu1  ;;  %v1207_v20 = vmul.f32 %v1833_v52, %v1833_v52 }
 0x142   : > { %v1135_v60 = vadd.f32 %v1134_v54, %v644_v57  ;;  %v1205_v0 = vmul.f32 %v644_v57, %v644_v57  ;;  %v1267_v2 = vadd.f32 %v1266_v49, %v1204_v47  ;;  %v1834_v3 = vpop.f32.mrb[30].mxu0  ;;  %v2154_v4 = vpop.f32.mrb[30].mxu1  ;;  %v1212_v47 = vmul.f32 %v2042_v46, %v2042_v46 }
 0x143   : > { %v1634_v5 = vpack.c.bf16 %v1834_v3, %v1833_v52  ;;  %v647_v7 = vpop.f32.mrb[31].mxu0  ;;  %v1714_v8 = vpack.c.bf16 %v2154_v4, %v2150_v55  ;;  %v2158_v9 = vpop.f32.mrb[31].mxu1  ;;  %v1208_v26 = vmul.f32 %v1834_v3, %v1834_v3 }
 0x144   : > { %v1268_v11 = vadd.f32 %v1267_v2, %v1205_v0  ;;  %v1629_v12 = vpack.c.bf16 %v647_v7, %v644_v57  ;;  %v1136_v13 = vadd.f32 %v1135_v60, %v647_v7  ;;  %v1206_v14 = vmul.f32 %v647_v7, %v647_v7 }
 0x145   : > { %1730 = vst [vmem:[%s1977_s21 + $0x78] sm:$0xff] %v1634_v5   ;;  %1746 = vst [vmem:[%s1977_s21 + $0xf8] sm:$0xff] %v1714_v8   ;;  %v1709_v18 = vpack.c.bf16 %v2158_v9, %v2152_v59  ;;  %v1214_v0 = vmul.f32 %v2062_v10, %v2062_v10 }
 0x146   : > { %1729 = vst [vmem:[%s1977_s21 + $0x70] sm:$0xff] %v1629_v12   ;;  %v1137_v21 = vadd.f32 %v1833_v52, %v1136_v13  ;;  %v1269_v24 = vadd.f32 %v1268_v11, %v1206_v14  ;;  %v1218_v13 = vmul.f32 %v2078_v34, %v2078_v34 }
 0x147   : > { %1745 = vst [vmem:[%s1977_s21 + $0xf0] sm:$0xff] %v1709_v18  }
 0x148   : > { %v1270_v29 = vadd.f32 %v1269_v24, %v1207_v20  ;;  %v1138_v31 = vadd.f32 %v1834_v3, %v1137_v21 }
 0x14a   : > { %v1139_v35 = vadd.f32 %v1138_v31, %v2040_v44  ;;  %v1271_v36 = vadd.f32 %v1270_v29, %v1208_v26  ;;  %v1213_v44 = vmul.f32 %v2056_v1, %v2056_v1  ;;  %v1222_v31 = vmul.f32 %v2094_v62, %v2094_v62 }
 0x14c   : > { %v1272_v37 = vadd.f32 %v1271_v36, %v1209_v32  ;;  %v1140_v38 = vadd.f32 %v1139_v35, %v2046_v51 }
 0x14e   : > { %v1141_v41 = vadd.f32 %v2038_v42, %v1140_v38  ;;  %v1273_v43 = vadd.f32 %v1272_v37, %v1210_v39  ;;  %v1215_v42 = vmul.f32 %v2054_v63, %v2054_v63 }
 0x150   : > { %v1274_v49 = vadd.f32 %v1273_v43, %v1211_v40  ;;  %v1142_v52 = vadd.f32 %v2042_v46, %v1141_v41  ;;  %v1216_v46 = vmul.f32 %v2058_v6, %v2058_v6  ;;  %v1226_v41 = vmul.f32 %v2110_v28, %v2110_v28 }
 0x152   : > { %v1143_v54 = vadd.f32 %v1142_v52, %v2056_v1  ;;  %v1275_v57 = vadd.f32 %v1274_v49, %v1212_v47  ;;  %v1217_v1 = vmul.f32 %v2072_v25, %v2072_v25 }
 0x154   : > { %v1276_v60 = vadd.f32 %v1275_v57, %v1213_v44  ;;  %v1144_v51 = vadd.f32 %v1143_v54, %v2062_v10 }
 0x156   : > { %v1145_v2 = vadd.f32 %v2054_v63, %v1144_v51  ;;  %v1277_v3 = vadd.f32 %v1276_v60, %v1214_v0  ;;  %v1219_v63 = vmul.f32 %v2070_v23, %v2070_v23  ;;  %v1230_v60 = vmul.f32 %v2126_v61, %v2126_v61 }
 0x158   : > { %v1278_v5 = vadd.f32 %v1277_v3, %v1215_v42  ;;  %v1146_v7 = vadd.f32 %v2058_v6, %v1145_v2  ;;  %v1220_v6 = vmul.f32 %v2074_v30, %v2074_v30 }
 0x15a   : > { %v1147_v8 = vadd.f32 %v1146_v7, %v2072_v25  ;;  %v1279_v11 = vadd.f32 %v1278_v5, %v1216_v46  ;;  %v1221_v25 = vmul.f32 %v2088_v53, %v2088_v53  ;;  %v1234_v7 = vmul.f32 %v2142_v33, %v2142_v33 }
 0x15c   : > { %v1280_v12 = vadd.f32 %v1279_v11, %v1217_v1  ;;  %v1148_v10 = vadd.f32 %v1147_v8, %v2078_v34 }
 0x15e   : > { %v1149_v14 = vadd.f32 %v2070_v23, %v1148_v10  ;;  %v1281_v18 = vadd.f32 %v1280_v12, %v1218_v13  ;;  %v1223_v23 = vmul.f32 %v2086_v50, %v2086_v50 }
 0x160   : > { %v1282_v20 = vadd.f32 %v1281_v18, %v1219_v63  ;;  %v1150_v21 = vadd.f32 %v2074_v30, %v1149_v14  ;;  %v1224_v30 = vmul.f32 %v2090_v58, %v2090_v58  ;;  %v1238_v14 = vmul.f32 %v2158_v9, %v2158_v9 }
 0x162   : > { %v1151_v24 = vadd.f32 %v1150_v21, %v2088_v53  ;;  %v1283_v26 = vadd.f32 %v1282_v20, %v1220_v6  ;;  %v1225_v53 = vmul.f32 %v2104_v17, %v2104_v17 }
 0x164   : > { %v1284_v29 = vadd.f32 %v1283_v26, %v1221_v25  ;;  %v1152_v34 = vadd.f32 %v1151_v24, %v2094_v62 }
 0x166   : > { %v1153_v32 = vadd.f32 %v2086_v50, %v1152_v34  ;;  %v1285_v35 = vadd.f32 %v1284_v29, %v1222_v31  ;;  %v1227_v50 = vmul.f32 %v2102_v15, %v2102_v15 }
 0x168   : > { %v1286_v36 = vadd.f32 %v1285_v35, %v1223_v23  ;;  %v1154_v37 = vadd.f32 %v2090_v58, %v1153_v32  ;;  %v1228_v58 = vmul.f32 %v2106_v22, %v2106_v22 }
 0x16a   : > { %v1155_v38 = vadd.f32 %v1154_v37, %v2104_v17  ;;  %v1287_v39 = vadd.f32 %v1286_v36, %v1224_v30  ;;  %v1229_v17 = vmul.f32 %v2120_v48, %v2120_v48 }
 0x16c   : > { %v1288_v40 = vadd.f32 %v1287_v39, %v1225_v53  ;;  %v1156_v62 = vadd.f32 %v1155_v38, %v2110_v28 }
 0x16e   : > { %v1157_v43 = vadd.f32 %v2102_v15, %v1156_v62  ;;  %v1289_v47 = vadd.f32 %v1288_v40, %v1226_v41  ;;  %v1231_v15 = vmul.f32 %v2118_v45, %v2118_v45 }
 0x170   : > { %v1290_v49 = vadd.f32 %v1289_v47, %v1227_v50  ;;  %v1158_v52 = vadd.f32 %v2106_v22, %v1157_v43  ;;  %v1232_v22 = vmul.f32 %v2122_v56, %v2122_v56 }
 0x172   : > { %v1159_v44 = vadd.f32 %v1158_v52, %v2120_v48  ;;  %v1291_v54 = vadd.f32 %v1290_v49, %v1228_v58  ;;  %v1233_v48 = vmul.f32 %v2136_v19, %v2136_v19 }
 0x174   : > { %v1292_v57 = vadd.f32 %v1291_v54, %v1229_v17  ;;  %v1160_v28 = vadd.f32 %v1159_v44, %v2126_v61 }
 0x176   : > { %v1161_v51 = vadd.f32 %v2118_v45, %v1160_v28  ;;  %v1293_v0 = vadd.f32 %v1292_v57, %v1230_v60  ;;  %v1235_v45 = vmul.f32 %v2134_v16, %v2134_v16 }
 0x178   : > { %v1294_v42 = vadd.f32 %v1293_v0, %v1231_v15  ;;  %v1162_v2 = vadd.f32 %v2122_v56, %v1161_v51  ;;  %v1236_v56 = vmul.f32 %v2138_v27, %v2138_v27 }
 0x17a   : > { %v1163_v3 = vadd.f32 %v1162_v2, %v2136_v19  ;;  %v1295_v46 = vadd.f32 %v1294_v42, %v1232_v22  ;;  %v1237_v19 = vmul.f32 %v2152_v59, %v2152_v59 }
 0x17c   : > { %v1296_v5 = vadd.f32 %v1295_v46, %v1233_v48  ;;  %v1164_v61 = vadd.f32 %v1163_v3, %v2142_v33 }
 0x17e   : > { %v1165_v1 = vadd.f32 %v2134_v16, %v1164_v61  ;;  %v1297_v8 = vadd.f32 %v1296_v5, %v1234_v7  ;;  %v1239_v16 = vmul.f32 %v2150_v55, %v2150_v55 }
 0x180   : > { %v1298_v11 = vadd.f32 %v1297_v8, %v1235_v45  ;;  %v1166_v12 = vadd.f32 %v2138_v27, %v1165_v1  ;;  %v1240_v27 = vmul.f32 %v2154_v4, %v2154_v4 }
 0x182   : > { %v1167_v10 = vadd.f32 %v1166_v12, %v2152_v59  ;;  %v1299_v13 = vadd.f32 %v1298_v11, %v1236_v56 }
 0x184   : > { %v1300_v63 = vadd.f32 %v1299_v13, %v1237_v19  ;;  %v1168_v33 = vadd.f32 %v1167_v10, %v2158_v9 }
 0x186   : > { %v1169_v18 = vadd.f32 %v2150_v55, %v1168_v33  ;;  %v1301_v6 = vadd.f32 %v1300_v63, %v1238_v14  ;;  %v1107_v55 = vld [vmem:[%s2274_s3] sm:$0x3] }
 0x188   : > { %v1170_v20 = vadd.f32 %v2154_v4, %v1169_v18  ;;  %v1302_v21 = vadd.f32 %v1301_v6, %v1239_v16 }
 0x18a   : > { %v1171_v59 = vrot.slane %v1170_v20, 4  ;;  %v1303_v25 = vadd.f32 %v1302_v21, %v1240_v27 }
 0x18c   : > { %v1172_v24 = vadd.f32 %v1171_v59, %v1170_v20  ;;  %v1304_v26 = vrot.slane %v1303_v25, 4 }
 0x18e   : > { %v1173_v29 = vrot.slane %v1172_v24, 2  ;;  %v1305_v34 = vadd.f32 %v1304_v26, %v1303_v25 }
 0x190   : > { %v1174_v31 = vadd.f32 %v1173_v29, %v1172_v24  ;;  %v1306_v9 = vrot.slane %v1305_v34, 2 }
 0x192   : > { %v1175_v23 = vrot.slane %v1174_v31, 1  ;;  %v1307_v32 = vadd.f32 %v1306_v9, %v1305_v34 }
 0x194   : > { %v1308_v35 = vrot.slane %v1307_v32, 1  ;;  %v1176_v30 = vadd.f32 %v1175_v23, %v1174_v31 }
 0x196   : > { %v1309_v36 = vadd.f32 %v1308_v35, %v1307_v32 }
 0x198   : > { %v1311_v4 = vsel %vm1310_vm0, %v1176_v30, %v1309_v36 }
 0x199   : > { %v1312_v37 = vadd.f32 %v1311_v4, %v1107_v55 }
 0x19b   : > { %1313 = vst [vmem:[%s2274_s3] sm:$0x3] %v1312_v37 }
 0x19c PF: > { %s14_s12 = sadd.s32 1, %s1938_s12  }
 0x19d   : > { %p11_p5 = scmp.ge.s32.totalorder %s14_s12, 4  }
 0x19f   :  { %13 = sbr.rel (!%p11_p5) target bundleno = 1 (0x1), region = 70 }

// kernel: bottleneck_forward.5
= control target key start
LH: loop header
LB: loop body
LE: loop exit
PB: predicated region body
PF: predicated region fallthrough
CT: control target
= control target key end

     0   :  { %s3715_s12 = smov 0   ;;  %s3717_s13 = smov 0   ;;  %s4216_s0 = inlined_call_operand.vmem [shape: bf16[4,4,9,9,128], index: 0, kind: input, shape index: {}]   ;;  %s4217_s1 = inlined_call_operand.vmem [shape: bf16[9,128,128], index: 1, kind: input, shape index: {}]   ;;  %s4218_s2 = inlined_call_operand.vmem [shape: bf16[256,128], index: 2, kind: output, shape index: {0}]   ;;  %s4219_s3 = inlined_call_operand.vmem [shape: f32[2,128], index: 3, kind: output, shape index: {1}]  }
   0x1   :  { %s3719_s14 = smov 0   ;;  %s3721_s15 = smov 0  }
   0x2   :  { %s3723_s16 = smov 0  }
   0x3 LB: > { %s26_s17 = sadd.s32 1, %s3688_s15  ;;  %p40_p1 = scmp.ne.s32.totalorder %s3680_s13, %s3676_s12  ;;  %s3692_s16 = sphi %s3723_s16, %s14_s16   ;;  %s3688_s15 = sphi %s3721_s15, %s4225_s15   ;;  %s3684_s14 = sphi %s3719_s14, %s4224_s14   ;;  %s3680_s13 = sphi %s3717_s13, %s4223_s13   ;;  %s3676_s12 = sphi %s3715_s12, %s4222_s12  }
   0x4   : > { %p28_p0 = scmp.ge.s32.totalorder %s26_s17, 4  ;;  %p41_p2 = scmp.eq.s32.totalorder %s3692_s16, 0 }
   0x5   : > { %s33_s19 = sadd.s32 1, %s3680_s13  ;;  %p2754_p5 = scmp.ge.s32.totalorder %s3692_s16, 4 }
   0x6   : > { %s4227_s17 = smov (%p28_p0, %s26_s17), 0  ;;  %p42_p3 = por %p41_p2, %p40_p1 }
   0x7   : > { %s30_s18 = ssub.s32 %s3688_s15, %s4227_s17  ;;  %139 = sbr.rel (%p2754_p5) target bundleno = 37 (0x25), region = 20 }
   0x8   : > { %p31_p4 = scmp.eq.s32.totalorder %s30_s18, 0 }
   0xa   : > { %s3750_s20 = scalar_select %p31_p4, %s3680_s13, %s33_s19  }
   0xe   : > { %142 = sbr.rel (!%p42_p3) target bundleno = 37 (0x25), region = 24  ;;  %s144_s21 = sand.u32 (%p42_p3), 1, %s3680_s13  }
   0xf   : > { %s3515_s22 = smul.u32 (%p42_p3), 72, %s3688_s15 }
  0x10   : > { %s3514_s23 = smul.u32 (%p42_p3), 288, %s144_s21 }
  0x11   : > { %s3758_s26 = scalar_lea.vmem (%p42_p3), %s4216_s0, %s3515_s22 }
  0x12   : > { %v165_v0 = vld [vmem:[%s3758_s26] sm:$0xff] (%p42_p3)   ;;  %v169_v1 = vld [vmem:[%s3758_s26 + $0x8] sm:$0xff] (%p42_p3)   ;;  %v173_v2 = vld [vmem:[%s3758_s26 + $0x10] sm:$0xff] (%p42_p3)   ;;  %s3763_s27 = scalar_lea.vmem (%p42_p3), [#allocation3], %s3514_s23 }
  0x13   : > { %166 = vst [vmem:[%s3763_s27] sm:$0xff] (%p42_p3), %v165_v0   ;;  %170 = vst [vmem:[%s3763_s27 + $0x8] sm:$0xff] (%p42_p3), %v169_v1   ;;  %v177_v3 = vld [vmem:[%s3758_s26 + $0x18] sm:$0xff] (%p42_p3)   ;;  %v181_v4 = vld [vmem:[%s3758_s26 + $0x20] sm:$0xff] (%p42_p3)  }
  0x14   : > { %174 = vst [vmem:[%s3763_s27 + $0x10] sm:$0xff] (%p42_p3), %v173_v2   ;;  %v185_v5 = vld [vmem:[%s3758_s26 + $0x28] sm:$0xff] (%p42_p3)   ;;  %178 = vst [vmem:[%s3763_s27 + $0x18] sm:$0xff] (%p42_p3), %v177_v3   ;;  %v189_v6 = vld [vmem:[%s3758_s26 + $0x30] sm:$0xff] (%p42_p3)  }
  0x15   : > { %182 = vst [vmem:[%s3763_s27 + $0x20] sm:$0xff] %v181_v4   ;;  %186 = vst [vmem:[%s3763_s27 + $0x28] sm:$0xff] %v185_v5   ;;  %v193_v7 = vld [vmem:[%s3758_s26 + $0x38] sm:$0xff]   ;;  %v197_v8 = vld [vmem:[%s3758_s26 + $0x40] sm:$0xff]  }
  0x16   : > { %190 = vst [vmem:[%s3763_s27 + $0x30] sm:$0xff] %v189_v6   ;;  %194 = vst [vmem:[%s3763_s27 + $0x38] sm:$0xff] %v193_v7   ;;  %v201_v9 = vld [vmem:[%s3758_s26 + $0x120] sm:$0xff]   ;;  %v205_v10 = vld [vmem:[%s3758_s26 + $0x128] sm:$0xff]  }
  0x17   : > { %198 = vst [vmem:[%s3763_s27 + $0x40] sm:$0xff] %v197_v8   ;;  %v209_v11 = vld [vmem:[%s3758_s26 + $0x130] sm:$0xff]   ;;  %202 = vst [vmem:[%s3763_s27 + $0x48] sm:$0xff] %v201_v9   ;;  %v213_v12 = vld [vmem:[%s3758_s26 + $0x138] sm:$0xff]  }
  0x18   : > { %206 = vst [vmem:[%s3763_s27 + $0x50] sm:$0xff] %v205_v10   ;;  %210 = vst [vmem:[%s3763_s27 + $0x58] sm:$0xff] %v209_v11   ;;  %v217_v13 = vld [vmem:[%s3758_s26 + $0x140] sm:$0xff]   ;;  %v221_v14 = vld [vmem:[%s3758_s26 + $0x148] sm:$0xff]  }
  0x19   : > { %214 = vst [vmem:[%s3763_s27 + $0x60] sm:$0xff] %v213_v12   ;;  %218 = vst [vmem:[%s3763_s27 + $0x68] sm:$0xff] %v217_v13   ;;  %v225_v15 = vld [vmem:[%s3758_s26 + $0x150] sm:$0xff]   ;;  %v229_v16 = vld [vmem:[%s3758_s26 + $0x158] sm:$0xff]  }
  0x1a   : > { %222 = vst [vmem:[%s3763_s27 + $0x70] sm:$0xff] %v221_v14   ;;  %v233_v17 = vld [vmem:[%s3758_s26 + $0x160] sm:$0xff]   ;;  %226 = vst [vmem:[%s3763_s27 + $0x78] sm:$0xff] %v225_v15   ;;  %v241_v19 = vld [vmem:[%s3758_s26 + $0x248] sm:$0xff]  }
  0x1b   : > { %230 = vst [vmem:[%s3763_s27 + $0x80] sm:$0xff] %v229_v16   ;;  %234 = vst [vmem:[%s3763_s27 + $0x88] sm:$0xff] %v233_v17   ;;  %v237_v18 = vld [vmem:[%s3758_s26 + $0x240] sm:$0xff]   ;;  %v245_v20 = vld [vmem:[%s3758_s26 + $0x250] sm:$0xff]  }
  0x1c   : > { %238 = vst [vmem:[%s3763_s27 + $0x90] sm:$0xff] %v237_v18   ;;  %242 = vst [vmem:[%s3763_s27 + $0x98] sm:$0xff] %v241_v19   ;;  %v249_v21 = vld [vmem:[%s3758_s26 + $0x258] sm:$0xff]   ;;  %v253_v22 = vld [vmem:[%s3758_s26 + $0x260] sm:$0xff]  }
  0x1d   : > { %246 = vst [vmem:[%s3763_s27 + $0xa0] sm:$0xff] %v245_v20   ;;  %v257_v23 = vld [vmem:[%s3758_s26 + $0x268] sm:$0xff]   ;;  %250 = vst [vmem:[%s3763_s27 + $0xa8] sm:$0xff] %v249_v21   ;;  %v261_v24 = vld [vmem:[%s3758_s26 + $0x270] sm:$0xff]  }
  0x1e   : > { %254 = vst [vmem:[%s3763_s27 + $0xb0] sm:$0xff] %v253_v22   ;;  %258 = vst [vmem:[%s3763_s27 + $0xb8] sm:$0xff] %v257_v23   ;;  %v265_v25 = vld [vmem:[%s3758_s26 + $0x278] sm:$0xff]   ;;  %v269_v26 = vld [vmem:[%s3758_s26 + $0x280] sm:$0xff]  }
  0x1f   : > { %262 = vst [vmem:[%s3763_s27 + $0xc0] sm:$0xff] %v261_v24   ;;  %266 = vst [vmem:[%s3763_s27 + $0xc8] sm:$0xff] %v265_v25   ;;  %v273_v27 = vld [vmem:[%s3758_s26 + $0x360] sm:$0xff]   ;;  %v277_v28 = vld [vmem:[%s3758_s26 + $0x368] sm:$0xff]  }
  0x20   : > { %270 = vst [vmem:[%s3763_s27 + $0xd0] sm:$0xff] %v269_v26   ;;  %v281_v29 = vld [vmem:[%s3758_s26 + $0x370] sm:$0xff]   ;;  %274 = vst [vmem:[%s3763_s27 + $0xd8] sm:$0xff] %v273_v27   ;;  %v285_v30 = vld [vmem:[%s3758_s26 + $0x378] sm:$0xff]  }
  0x21   : > { %278 = vst [vmem:[%s3763_s27 + $0xe0] sm:$0xff] %v277_v28   ;;  %282 = vst [vmem:[%s3763_s27 + $0xe8] sm:$0xff] %v281_v29   ;;  %v289_v31 = vld [vmem:[%s3758_s26 + $0x380] sm:$0xff]   ;;  %v293_v32 = vld [vmem:[%s3758_s26 + $0x388] sm:$0xff]  }
  0x22   : > { %286 = vst [vmem:[%s3763_s27 + $0xf0] sm:$0xff] %v285_v30   ;;  %290 = vst [vmem:[%s3763_s27 + $0xf8] sm:$0xff] %v289_v31   ;;  %v297_v33 = vld [vmem:[%s3758_s26 + $0x390] sm:$0xff]   ;;  %v301_v34 = vld [vmem:[%s3758_s26 + $0x398] sm:$0xff]  }
  0x23   : > { %294 = vst [vmem:[%s3763_s27 + $0x100] sm:$0xff] %v293_v32   ;;  %v305_v35 = vld [vmem:[%s3758_s26 + $0x3a0] sm:$0xff]   ;;  %298 = vst [vmem:[%s3763_s27 + $0x108] sm:$0xff] %v297_v33  }
  0x24   : > { %302 = vst [vmem:[%s3763_s27 + $0x110] sm:$0xff] %v301_v34   ;;  %306 = vst [vmem:[%s3763_s27 + $0x118] sm:$0xff] %v305_v35  }
  0x25 PF: > { %p2756_p6 = scmp.ge.s32.totalorder %s3692_s16, 1  ;;  %p474_p7 = scmp.lt.s32.totalorder %s3692_s16, 5 }
  0x27   : > { %p475_p8 = pnand %p2756_p6, %p474_p7 }
  0x28   : > { %s481_s28 = sand.u32 (!%p475_p8), 1, %s3676_s12   ;;  %s2757_s29 = sshll.u32 (!%p475_p8), %s3684_s14, 3 }
  0x29   : > { %478 = sbr.rel (%p475_p8) target bundleno = 466 (0x1d2), region = 65  ;;  %p507_p9 = scmp.lt.s32.totalorder (!%p475_p8), %s2757_s29, 31 }
  0x2a   : > { %s3516_s30 = smul.u32 (!%p475_p8), 288, %s481_s28  ;;  %p514_p10 = scmp.eq.s32.totalorder (!%p475_p8), %s3684_s14, 0 }
  0x2c   : > { %s3844_s8 = scalar_lea.vmem (!%p475_p8), [#allocation3], %s3516_s30 }
  0x30   : > { %s4229_s29 = smov (!%p507_p9, %s2757_s29), 31  ;;  %519 = sbr.rel (!%p514_p10) target bundleno = 55 (0x37), region = 73 }
  0x31   : > { %s2758_s4 = sshll.u32 %s4229_s29, 2  ;;  %v3694_v36 = vmov (%p514_p10), 0.0  }
  0x32   : > { %s3842_s7 = scalar_lea.vmem %s4218_s2, %s2758_s4  ;;  %520 = vst [vmem:[%s4219_s3] sm:$0x3] (%p514_p10), %v3694_v36 }
  0x37 PF: > { %v3558_v37 = vld [vmem:[%s4217_s1] sm:$0xff]   ;;  %v3560_v39 = vld [vmem:[%s4217_s1 + $0x8] sm:$0xff]   ;;  %v3562_v41 = vld [vmem:[%s4217_s1 + $0x10] sm:$0xff]   ;;  %vm931_vm0 = vsmask.f32 3328  ;;  %vm2644_vm3 = vcmask 1040384  }
  0x38   : > { %v3559_v38 = vld [vmem:[%s4217_s1 + $0x100] sm:$0xff]   ;;  %3218 = vmatprep.subr.bf16.mxu1 %v3558_v37  ;;  %v3561_v40 = vld [vmem:[%s4217_s1 + $0x108] sm:$0xff]   ;;  %v3563_v42 = vld [vmem:[%s4217_s1 + $0x110] sm:$0xff]   ;;  %vm932_vm1 = vsmask.f32 7440 }
  0x39   : > { %3314 = vmatprep.subr.bf16.mxu0 %v3559_v38  ;;  %3219 = vmatpush3.bf16.msra.mxu1 %v3558_v37  ;;  %v3564_v43 = vld [vmem:[%s4217_s1 + $0x18] sm:$0xff]   ;;  %v3566_v45 = vld [vmem:[%s4217_s1 + $0x20] sm:$0xff]   ;;  %v3568_v47 = vld [vmem:[%s4217_s1 + $0x28] sm:$0xff]  }
  0x3a   : > { %3315 = vmatpush3.bf16.msra.mxu0 %v3559_v38  ;;  %3220 = vmatprep.subr.bf16.mxu1 %v3560_v39  ;;  %v3565_v44 = vld [vmem:[%s4217_s1 + $0x118] sm:$0xff]   ;;  %v3567_v46 = vld [vmem:[%s4217_s1 + $0x120] sm:$0xff]   ;;  %v3569_v49 = vld [vmem:[%s4217_s1 + $0x128] sm:$0xff]  }
  0x3b   : > { %3316 = vmatprep.subr.bf16.mxu0 %v3561_v40  ;;  %v3574_v48 = vld [vmem:[%s3844_s8] ss:$8 sps:$4 sm:$0xff]   ;;  %v3570_v51 = vld [vmem:[%s4217_s1 + $0x30] sm:$0xff]   ;;  %v3572_v53 = vld [vmem:[%s4217_s1 + $0x38] sm:$0xff]  }
  0x3c   : > { %3234 = vmatprep.mubr.bf16.mxu1 %v3574_v48  ;;  %v3576_v50 = vld [vmem:[%s3844_s8 + $0xd8] ss:$8 sps:$4 sm:$0xff]   ;;  %v3571_v52 = vld [vmem:[%s4217_s1 + $0x130] sm:$0xff]   ;;  %v3580_v59 = vld [vmem:[%s4217_s1 + $0x48] sm:$0xff]  }
  0x3d   : > { %3221 = vmatpush3.bf16.msra.mxu1 %v3560_v39  ;;  %3330 = vmatprep.mubr.bf16.mxu0 %v3576_v50  ;;  %v3573_v54 = vld [vmem:[%s4217_s1 + $0x138] sm:$0xff]   ;;  %v3575_v55 = vld [vmem:[%s4217_s1 + $0x40] sm:$0xff]   ;;  %v3579_v58 = vld [vmem:[%s3844_s8 + $0xe8] ss:$8 sps:$4 sm:$0xff]  }
  0x3e   : > { %3317 = vmatpush3.bf16.msra.mxu0 %v3561_v40  ;;  %3222 = vmatprep.subr.bf16.mxu1 %v3562_v41  ;;  %v3577_v56 = vld [vmem:[%s4217_s1 + $0x140] sm:$0xff]   ;;  %v3578_v57 = vld [vmem:[%s3844_s8 + $0x10] ss:$8 sps:$4 sm:$0xff]   ;;  %v3581_v60 = vld [vmem:[%s4217_s1 + $0x148] sm:$0xff]  }
  0x3f   : > { %3318 = vmatprep.subr.bf16.mxu0 %v3563_v42  ;;  %v3590_v61 = vld [vmem:[%s3844_s8 + $0x20] ss:$8 sps:$4 sm:$0xff]   ;;  %v3582_v63 = vld [vmem:[%s4217_s1 + $0x50] sm:$0xff]   ;;  %v3584_v1 = vld [vmem:[%s4217_s1 + $0x58] sm:$0xff]  }
  0x40   : > { %v3592_v62 = vld [vmem:[%s3844_s8 + $0xf8] ss:$8 sps:$4 sm:$0xff]   ;;  %v3583_v0 = vld [vmem:[%s4217_s1 + $0x150] sm:$0xff]   ;;  %v2911_v12 = vld [vmem:[%s3844_s8 + $0x9c] sm:$0x1] }
  0x41   : > { %3223 = vmatpush3.bf16.msra.mxu1 %v3562_v41  ;;  %v3594_v2 = vld [vmem:[%s3844_s8 + $0x30] ss:$8 sps:$4 sm:$0xff]   ;;  %v2909_v7 = vld [vmem:[%s3844_s8 + $0x94] sm:$0x1]  ;;  %v3586_v11 = vld [vmem:[%s4217_s1 + $0x60] sm:$0xff]   ;;  %v1634_v19 = vshll.u32 %v2911_v12, 16 }
  0x42   : > { %3319 = vmatpush3.bf16.msra.mxu0 %v3563_v42  ;;  %3224 = vmatprep.subr.bf16.mxu1 %v3564_v43  ;;  %v3595_v3 = vld [vmem:[%s3844_s8 + $0x108] ss:$8 sps:$4 sm:$0xff]   ;;  %v3585_v4 = vld [vmem:[%s4217_s1 + $0x158] sm:$0xff]   ;;  %v1620_v13 = vshll.u32 %v2909_v7, 16  ;;  %v3587_v16 = vld [vmem:[%s4217_s1 + $0x160] sm:$0xff]  }
  0x43   : > { %3320 = vmatprep.subr.bf16.mxu0 %v3565_v44  ;;  %v3598_v5 = vld [vmem:[%s3844_s8 + $0x48] ss:$8 sps:$4 sm:$0xff]   ;;  %v2910_v8 = vld [vmem:[%s3844_s8 + $0x98] sm:$0xf]  ;;  %vm3948_vm2 = vmor %vm931_vm0, %vm932_vm1  ;;  %v1636_v28 = vrot.slane %v1634_v19, 5 }
  0x44   : > { %v2908_v6 = vld [vmem:[%s3844_s8 + $0x90] sm:$0xf]  ;;  %v1625_v14 = vshrl.u32 %v2910_v8, 16  ;;  %v1628_v15 = vshll.u32 %v2910_v8, 16  ;;  %v3588_v20 = vld [vmem:[%s4217_s1 + $0x68] sm:$0xff]   ;;  %v1622_v25 = vrot.slane %v1620_v13, 5 }
  0x45   : > { %3225 = vmatpush3.bf16.msra.mxu1 %v3564_v43  ;;  %v1611_v9 = vshrl.u32 %v2908_v6, 16  ;;  %v1614_v10 = vshll.u32 %v2908_v6, 16  ;;  %v3589_v23 = vld [vmem:[%s4217_s1 + $0x168] sm:$0xff]   ;;  %v2912_v29 = vld [vmem:[%s3844_s8 + $0xa0] sm:$0xf]  ;;  %v3591_v39 = vld [vmem:[%s4217_s1 + $0x70] sm:$0xff]  }
  0x46   : > { %3321 = vmatpush3.bf16.msra.mxu0 %v3565_v44  ;;  %3226 = vmatprep.subr.bf16.mxu1 %v3566_v45  ;;  %v1627_v21 = vrot.slane %v1625_v14, 4  ;;  %v1630_v22 = vrot.slane %v1628_v15, 5  ;;  %v2913_v30 = vld [vmem:[%s3844_s8 + $0xa4] sm:$0x1]  ;;  %v2914_v32 = vld [vmem:[%s3844_s8 + $0xa8] sm:$0xf] }
  0x47   : > { %3322 = vmatprep.subr.bf16.mxu0 %v3567_v46  ;;  %v1613_v17 = vrot.slane %v1611_v9, 4  ;;  %v1616_v18 = vrot.slane %v1614_v10, 5  ;;  %v2915_v33 = vld [vmem:[%s3844_s8 + $0xac] sm:$0x1]  ;;  %v1639_v34 = vshrl.u32 %v2912_v29, 16  ;;  %v1642_v36 = vshll.u32 %v2912_v29, 16 }
  0x48   : > { %v1631_v27 = vor.u32 %v1630_v22, %v1627_v21  ;;  %v1648_v37 = vshll.u32 %v2913_v30, 16  ;;  %v1653_v38 = vshrl.u32 %v2914_v32, 16  ;;  %v1656_v42 = vshll.u32 %v2914_v32, 16  ;;  %v3593_v43 = vld [vmem:[%s4217_s1 + $0x170] sm:$0xff]   ;;  %v3615_v21 = vld [vmem:[%s3844_s8 + $0x78] ss:$8 sps:$4 sm:$0xff]  }
  0x49   : > { %3227 = vmatpush3.bf16.msra.mxu1 %v3566_v45  ;;  %v1617_v24 = vor.u32 %v1616_v18, %v1613_v17  ;;  %v1641_v41 = vrot.slane %v1639_v34, 4  ;;  %v1644_v45 = vrot.slane %v1642_v36, 5  ;;  %v3612_v10 = vld [vmem:[%s3844_s8 + $0x68] ss:$8 sps:$4 sm:$0xff]   ;;  %v2920_v22 = vld [vmem:[%s3844_s8 + $0xc0] sm:$0xf] }
  0x4a   : > { %3323 = vmatpush3.bf16.msra.mxu0 %v3567_v46  ;;  %3228 = vmatprep.subr.bf16.mxu1 %v3568_v47  ;;  %v1632_v35 = vrot.slane %v1631_v27, 4  ;;  %v1655_v46 = vrot.slane %v1653_v38, 4  ;;  %v1658_v50 = vrot.slane %v1656_v42, 5  ;;  %v1695_v29 = vshrl.u32 %v2920_v22, 16  ;;  %v3606_v32 = vld [vmem:[%s4217_s1 + $0x98] sm:$0xff]  }
  0x4b   : > { %3324 = vmatprep.subr.bf16.mxu0 %v3569_v49  ;;  %v1618_v31 = vrot.slane %v1617_v24, 4  ;;  %v2922_v24 = vld [vmem:[%s3844_s8 + $0xc8] sm:$0xf]  ;;  %v1698_v30 = vshll.u32 %v2920_v22, 16 }
  0x4c   : > { %v1637_v44 = vsel %vm3948_vm2, %v1632_v35, %v1636_v28  ;;  %v2923_v28 = vld [vmem:[%s3844_s8 + $0xcc] sm:$0x1]  ;;  %v1709_v34 = vshrl.u32 %v2922_v24, 16  ;;  %v1712_v35 = vshll.u32 %v2922_v24, 16  ;;  %v1697_v38 = vrot.slane %v1695_v29, 4 }
  0x4d   : > { %3229 = vmatpush3.bf16.msra.mxu1 %v3568_v47  ;;  %v1623_v40 = vsel %vm3948_vm2, %v1618_v31, %v1622_v25  ;;  %v1662_v47 = vshll.u32 %v2915_v33, 16  ;;  %v3605_v25 = vld [vmem:[%s4217_s1 + $0x190] sm:$0xff]   ;;  %v1718_v36 = vshll.u32 %v2923_v28, 16 }
  0x4e   : > { %3325 = vmatpush3.bf16.msra.mxu0 %v3569_v49  ;;  %3230 = vmatprep.subr.bf16.mxu1 %v3570_v51  ;;  %v2940_v48 = vcombine.low %v1623_v40, %v1637_v44  ;;  %v1650_v49 = vrot.slane %v1648_v37, 5  ;;  %v1714_v44 = vrot.slane %v1712_v35, 5 }
  0x4f   : > { %3326 = vmatprep.subr.bf16.mxu0 %v3571_v52 }
  0x51   : > { %3231 = vmatpush3.bf16.msra.mxu1 %v3570_v51  ;;  %v3596_v51 = vld [vmem:[%s4217_s1 + $0x78] sm:$0xff]  }
  0x52   : > { %3327 = vmatpush3.bf16.msra.mxu0 %v3571_v52  ;;  %3232 = vmatprep.subr.bf16.mxu1 %v3572_v53  ;;  %v1645_v52 = vor.u32 %v1644_v45, %v1641_v41  ;;  %v3607_v41 = vld [vmem:[%s4217_s1 + $0x198] sm:$0xff]   ;;  %v1720_v45 = vrot.slane %v1718_v36, 5 }
  0x53   : > { %3328 = vmatprep.subr.bf16.mxu0 %v3573_v54 }
  0x55   : > { %3233 = vmatpush3.bf16.msra.mxu1 %v3572_v53  ;;  %v1659_v53 = vor.u32 %v1658_v50, %v1655_v46  ;;  %v3608_v50 = vld [vmem:[%s4217_s1 + $0xa0] sm:$0xff]  }
  0x56   : > { %3329 = vmatpush3.bf16.msra.mxu0 %v3573_v54  ;;  %3242 = vmatprep.subr.bf16.mxu1 %v3575_v55  ;;  %v1646_v54 = vrot.slane %v1645_v52, 4 }
  0x57   : > { %3338 = vmatprep.subr.bf16.mxu0 %v3577_v56 }
  0x58   : > { %3235 = vmatmul.mubr.bf16.vlgmr.msra.gmra.mrb[0].mxu1 %v3578_v57  ;;  %v1660_v57 = vrot.slane %v1659_v53, 4  ;;  %v909_v53 = vld [vmem:[%s3844_s8 + $0x8] sm:$0xf] }
  0x59   : > { %3243 = vmatpush3.bf16.msra.mxu1 %v3575_v55  ;;  %3331 = vmatmul.mubr.bf16.vlgmr.msra.gmra.mrb[0].mxu0 %v3579_v58  ;;  %v1664_v55 = vrot.slane %v1662_v47, 5  ;;  %v3599_v58 = vld [vmem:[%s4217_s1 + $0x80] sm:$0xff]  }
  0x5a   : > { %3339 = vmatpush3.bf16.msra.mxu0 %v3577_v56  ;;  %3244 = vmatprep.subr.bf16.mxu1 %v3580_v59  ;;  %v3597_v56 = vld [vmem:[%s4217_s1 + $0x178] sm:$0xff]  }
  0x5b   : > { %3340 = vmatprep.subr.bf16.mxu0 %v3581_v60  ;;  %3238 = vmatprep.mubr.bf16.mxu1 %v3590_v61  ;;  %v3600_v61 = vld [vmem:[%s4217_s1 + $0x180] sm:$0xff]  }
  0x5c   : > { %3334 = vmatprep.mubr.bf16.mxu0 %v3592_v62  ;;  %v3601_v62 = vld [vmem:[%s3844_s8 + $0x58] ss:$8 sps:$4 sm:$0xff]  }
  0x5d   : > { %3245 = vmatpush3.bf16.msra.mxu1 %v3580_v59  ;;  %v1651_v59 = vsel %vm3948_vm2, %v1646_v54, %v1650_v49  ;;  %v908_v49 = vld [vmem:[%s3844_s8 + $0x4] sm:$0x1]  ;;  %v910_v54 = vld [vmem:[%s3844_s8 + $0xc] sm:$0x1] }
  0x5e   : > { %3341 = vmatpush3.bf16.msra.mxu0 %v3581_v60  ;;  %3246 = vmatprep.subr.bf16.mxu1 %v3582_v63  ;;  %v1665_v60 = vsel %vm3948_vm2, %v1660_v57, %v1664_v55 }
  0x5f   : > { %3342 = vmatprep.subr.bf16.mxu0 %v3583_v0 }
  0x60   : > { %3239 = vmatmul.mubr.bf16.gmra.mrb[4].mxu1 %v3594_v2  ;;  %v3603_v2 = vld [vmem:[%s4217_s1 + $0x188] sm:$0xff]  }
  0x61   : > { %3247 = vmatpush3.bf16.msra.mxu1 %v3582_v63  ;;  %3335 = vmatmul.mubr.bf16.gmra.mrb[4].mxu0 %v3595_v3  ;;  %v3602_v63 = vld [vmem:[%s4217_s1 + $0x88] sm:$0xff]   ;;  %v2917_v3 = vld [vmem:[%s3844_s8 + $0xb4] sm:$0x1] }
  0x62   : > { %3343 = vmatpush3.bf16.msra.mxu0 %v3583_v0  ;;  %3248 = vmatprep.subr.bf16.mxu1 %v3584_v1  ;;  %v2916_v0 = vld [vmem:[%s3844_s8 + $0xb0] sm:$0xf]  ;;  %v1676_v8 = vshll.u32 %v2917_v3, 16 }
  0x63   : > { %3344 = vmatprep.subr.bf16.mxu0 %v3585_v4  ;;  %3258 = vmatprep.mubr.bf16.mxu1 %v3598_v5  ;;  %v2919_v5 = vld [vmem:[%s3844_s8 + $0xbc] sm:$0x1]  ;;  %v1667_v6 = vshrl.u32 %v2916_v0, 16  ;;  %v1670_v7 = vshll.u32 %v2916_v0, 16  ;;  %v958_v0 = vshll.u32 %v910_v54, 16 }
  0x64   : > { %3354 = vmatprep.mubr.bf16.mxu0 %v2940_v48  ;;  %v1690_v12 = vshll.u32 %v2919_v5, 16  ;;  %v1678_v17 = vrot.slane %v1676_v8, 5  ;;  %v907_v48 = vld [vmem:[%s3844_s8] sm:$0xf]  ;;  %v3610_v5 = vld [vmem:[%s4217_s1 + $0xa8] sm:$0xff]  }
  0x65   : > { %3249 = vmatpush3.bf16.msra.mxu1 %v3584_v1  ;;  %v2941_v1 = vcombine.low %v1651_v59, %v1665_v60  ;;  %v1669_v13 = vrot.slane %v1667_v6, 4  ;;  %v1672_v14 = vrot.slane %v1670_v7, 5  ;;  %v935_v55 = vshrl.u32 %v907_v48, 16  ;;  %v918_v54 = vld [vmem:[%s3844_s8 + $0x2c] sm:$0x1] }
  0x66   : > { %3345 = vmatpush3.bf16.msra.mxu0 %v3585_v4  ;;  %3250 = vmatprep.subr.bf16.mxu1 %v3586_v11  ;;  %v2918_v4 = vld [vmem:[%s3844_s8 + $0xb8] sm:$0xf]  ;;  %v1692_v19 = vrot.slane %v1690_v12, 5  ;;  %v949_v59 = vshrl.u32 %v909_v53, 16  ;;  %v952_v60 = vshll.u32 %v909_v53, 16 }
  0x67   : > { %3346 = vmatprep.subr.bf16.mxu0 %v3587_v16  ;;  %v1681_v9 = vshrl.u32 %v2918_v4, 16  ;;  %v917_v53 = vld [vmem:[%s3844_s8 + $0x28] sm:$0xf] }
  0x68   : > { %v951_v3 = vrot.slane %v949_v59, 4  ;;  %v1005_v59 = vshrl.u32 %v917_v53, 16 }
  0x69   : > { %3251 = vmatpush3.bf16.msra.mxu1 %v3586_v11  ;;  %v1684_v11 = vshll.u32 %v2918_v4, 16  ;;  %v1683_v15 = vrot.slane %v1681_v9, 4  ;;  %v954_v4 = vrot.slane %v952_v60, 5  ;;  %v960_v9 = vrot.slane %v958_v0, 5 }
  0x6a   : > { %3347 = vmatpush3.bf16.msra.mxu0 %v3587_v16  ;;  %3252 = vmatprep.subr.bf16.mxu1 %v3588_v20  ;;  %v3604_v16 = vld [vmem:[%s4217_s1 + $0x90] sm:$0xff]   ;;  %v1008_v60 = vshll.u32 %v917_v53, 16  ;;  %v3025_v53 = vld [vmem:[%s3844_s8 + $0xc] sm:$0x1] }
  0x6b   : > { %3348 = vmatprep.subr.bf16.mxu0 %v3589_v23  ;;  %v1686_v18 = vrot.slane %v1684_v11, 5  ;;  %v3611_v11 = vld [vmem:[%s4217_s1 + $0x1a8] sm:$0xff]  }
  0x6d   : > { %3253 = vmatpush3.bf16.msra.mxu1 %v3588_v20  ;;  %v1673_v20 = vor.u32 %v1672_v14, %v1669_v13  ;;  %v1687_v27 = vor.u32 %v1686_v18, %v1683_v15  ;;  %v955_v13 = vor.u32 %v954_v4, %v951_v3  ;;  %v911_v14 = vld [vmem:[%s3844_s8 + $0x10] sm:$0xf]  ;;  %v1010_v4 = vrot.slane %v1008_v60, 5 }
  0x6e   : > { %3349 = vmatpush3.bf16.msra.mxu0 %v3589_v23  ;;  %3254 = vmatprep.subr.bf16.mxu1 %v3591_v39  ;;  %v2921_v23 = vld [vmem:[%s3844_s8 + $0xc4] sm:$0x1]  ;;  %v963_v18 = vshrl.u32 %v911_v14, 16  ;;  %v919_v3 = vld [vmem:[%s3844_s8 + $0x30] sm:$0xf] }
  0x6f   : > { %3350 = vmatprep.subr.bf16.mxu0 %v3593_v43  ;;  %v1704_v31 = vshll.u32 %v2921_v23, 16  ;;  %v1674_v33 = vrot.slane %v1673_v20, 4  ;;  %v1688_v37 = vrot.slane %v1687_v27, 4  ;;  %v914_v20 = vld [vmem:[%s3844_s8 + $0x1c] sm:$0x1] }
  0x71   : > { %3255 = vmatpush3.bf16.msra.mxu1 %v3591_v39  ;;  %v1700_v39 = vrot.slane %v1698_v30, 5  ;;  %v1706_v40 = vrot.slane %v1704_v31, 5  ;;  %v1679_v42 = vsel %vm3948_vm2, %v1674_v33, %v1678_v17  ;;  %v1693_v46 = vsel %vm3948_vm2, %v1688_v37, %v1692_v19  ;;  %v913_v17 = vld [vmem:[%s3844_s8 + $0x18] sm:$0xf]  ;;  %v3614_v33 = vld [vmem:[%s4217_s1 + $0x1b0] sm:$0xff]  }
  0x72   : > { %3351 = vmatpush3.bf16.msra.mxu0 %v3593_v43  ;;  %3256 = vmatprep.subr.bf16.mxu1 %v3596_v51  ;;  %v1711_v43 = vrot.slane %v1709_v34, 4  ;;  %v956_v19 = vrot.slane %v955_v13, 4  ;;  %v977_v23 = vshrl.u32 %v913_v17, 16  ;;  %v980_v27 = vshll.u32 %v913_v17, 16 }
  0x73   : > { %3352 = vmatprep.subr.bf16.mxu0 %v3597_v56  ;;  %v1701_v47 = vor.u32 %v1700_v39, %v1697_v38  ;;  %v986_v31 = vshll.u32 %v914_v20, 16 }
  0x74   : > { %v1715_v52 = vor.u32 %v1714_v44, %v1711_v43  ;;  %v961_v28 = vsel %vm3948_vm2, %v956_v19, %v960_v9  ;;  %v979_v30 = vrot.slane %v977_v23, 4  ;;  %v982_v36 = vrot.slane %v980_v27, 5  ;;  %v3617_v43 = vld [vmem:[%s4217_s1 + $0x1b8] sm:$0xff]   ;;  %v3618_v44 = vld [vmem:[%s4217_s1 + $0xc0] sm:$0xff]  }
  0x75   : > { %3257 = vmatpush3.bf16.msra.mxu1 %v3596_v51  ;;  %v2942_v51 = vcombine.low %v1679_v42, %v1693_v46  ;;  %v1702_v57 = vrot.slane %v1701_v47, 4  ;;  %v3620_v47 = vld [vmem:[%s4217_s1 + $0x1c0] sm:$0xff]   ;;  %v3626_v23 = vld [vmem:[%s4217_s1 + $0xd8] sm:$0xff]  }
  0x76   : > { %3353 = vmatpush3.bf16.msra.mxu0 %v3597_v56  ;;  %3266 = vmatprep.subr.bf16.mxu1 %v3599_v58  ;;  %v938_v56 = vshll.u32 %v907_v48, 16  ;;  %v983_v38 = vor.u32 %v982_v36, %v979_v30  ;;  %v3621_v48 = vld [vmem:[%s3844_s8 + $0x18] ss:$8 sps:$4 sm:$0xff]  }
  0x77   : > { %3362 = vmatprep.subr.bf16.mxu0 %v3600_v61 }
  0x78   : > { %3259 = vmatmul.mubr.bf16.vlgmr.msra.gmra.mrb[0].mxu1 %v3601_v62  ;;  %v937_v62 = vrot.slane %v935_v55, 4  ;;  %v984_v42 = vrot.slane %v983_v38, 4  ;;  %v3623_v55 = vld [vmem:[%s4217_s1 + $0x1c8] sm:$0xff]   ;;  %v3628_v38 = vld [vmem:[%s4217_s1 + $0xe0] sm:$0xff]  }
  0x79   : > { %3267 = vmatpush3.bf16.msra.mxu1 %v3599_v58  ;;  %3355 = vmatmul.mubr.bf16.vlgmr.msra.gmra.mrb[0].mxu0 %v2941_v1  ;;  %v944_v58 = vshll.u32 %v908_v49, 16  ;;  %v3609_v1 = vld [vmem:[%s4217_s1 + $0x1a0] sm:$0xff]  }
  0x7a   : > { %3363 = vmatpush3.bf16.msra.mxu0 %v3600_v61  ;;  %3268 = vmatprep.subr.bf16.mxu1 %v3602_v63  ;;  %v1716_v61 = vrot.slane %v1715_v52, 4  ;;  %v915_v49 = vld [vmem:[%s3844_s8 + $0x20] sm:$0xf]  ;;  %v916_v52 = vld [vmem:[%s3844_s8 + $0x24] sm:$0x1] }
  0x7b   : > { %3364 = vmatprep.subr.bf16.mxu0 %v3603_v2  ;;  %3262 = vmatprep.mubr.bf16.mxu1 %v3612_v10  ;;  %v946_v8 = vrot.slane %v944_v58, 5  ;;  %v3619_v10 = vld [vmem:[%s3844_s8 + $0x8] ss:$8 sps:$4 sm:$0xff]   ;;  %v1000_v58 = vshll.u32 %v916_v52, 16 }
  0x7c   : > { %3358 = vmatprep.mubr.bf16.mxu0 %v2942_v51  ;;  %v1721_v6 = vsel %vm3948_vm2, %v1716_v61, %v1720_v45  ;;  %v3622_v51 = vld [vmem:[%s4217_s1 + $0xc8] sm:$0xff]   ;;  %v1014_v61 = vshll.u32 %v918_v54, 16  ;;  %v3026_v54 = vld [vmem:[%s3844_s8 + $0x10] sm:$0xf] }
  0x7d   : > { %3269 = vmatpush3.bf16.msra.mxu1 %v3602_v63  ;;  %v940_v63 = vrot.slane %v938_v56, 5  ;;  %v991_v56 = vshrl.u32 %v915_v49, 16  ;;  %v3024_v52 = vld [vmem:[%s3844_s8 + $0x8] sm:$0xf]  ;;  %v2305_v60 = vshll.u32 %v3026_v54, 16 }
  0x7e   : > { %3365 = vmatpush3.bf16.msra.mxu0 %v3603_v2  ;;  %3270 = vmatprep.subr.bf16.mxu1 %v3604_v16  ;;  %v1707_v2 = vsel %vm3948_vm2, %v1702_v57, %v1706_v40  ;;  %v988_v40 = vrot.slane %v986_v31, 5  ;;  %v994_v57 = vshll.u32 %v915_v49, 16  ;;  %v3634_v31 = vld [vmem:[%s3844_s8 + $0x38] ss:$8 sps:$4 sm:$0xff]  }
  0x7f   : > { %3366 = vmatprep.subr.bf16.mxu0 %v3605_v25  ;;  %v941_v7 = vor.u32 %v940_v63, %v937_v62  ;;  %v2943_v12 = vcombine.low %v1707_v2, %v1721_v6  ;;  %v3632_v62 = vld [vmem:[%s3844_s8 + $0x28] ss:$8 sps:$4 sm:$0xff]   ;;  %v993_v63 = vrot.slane %v991_v56, 4  ;;  %v1007_v2 = vrot.slane %v1005_v59, 4  ;;  %v920_v6 = vld [vmem:[%s3844_s8 + $0x34] sm:$0x1] }
  0x80   : > { %3263 = vmatmul.mubr.bf16.gmra.mrb[4].mxu1 %v3615_v21  ;;  %v966_v21 = vshll.u32 %v911_v14, 16  ;;  %v989_v46 = vsel %vm3948_vm2, %v984_v42, %v988_v40  ;;  %v996_v0 = vrot.slane %v994_v57, 5  ;;  %v1028_v13 = vshll.u32 %v920_v6, 16  ;;  %v3625_v14 = vld [vmem:[%s4217_s1 + $0x1d0] sm:$0xff]   ;;  %v3629_v42 = vld [vmem:[%s4217_s1 + $0x1e0] sm:$0xff]   ;;  %v3636_v49 = vld [vmem:[%s4217_s1 + $0xf8] sm:$0xff]  }
  0x81   : > { %3271 = vmatpush3.bf16.msra.mxu1 %v3604_v16  ;;  %v942_v15 = vrot.slane %v941_v7, 4  ;;  %v912_v16 = vld [vmem:[%s3844_s8 + $0x14] sm:$0x1]  ;;  %3359 = vmatmul.mubr.bf16.gmra.mrb[4].mxu0 %v2943_v12  ;;  %v921_v7 = vld [vmem:[%s3844_s8 + $0x38] sm:$0xf]  ;;  %v1022_v12 = vshll.u32 %v919_v3, 16 }
  0x82   : > { %3367 = vmatpush3.bf16.msra.mxu0 %v3605_v25  ;;  %3272 = vmatprep.subr.bf16.mxu1 %v3606_v32  ;;  %v972_v22 = vshll.u32 %v912_v16, 16  ;;  %v965_v25 = vrot.slane %v963_v18, 4  ;;  %v968_v29 = vrot.slane %v966_v21, 5  ;;  %v997_v9 = vor.u32 %v996_v0, %v993_v63  ;;  %v3035_v6 = vld [vmem:[%s3844_s8 + $0x34] sm:$0x1] }
  0x83   : > { %3368 = vmatprep.subr.bf16.mxu0 %v3607_v41  ;;  %v947_v24 = vsel %vm3948_vm2, %v942_v15, %v946_v8  ;;  %3378 = vmatprep.mubr.bf16.mxu0 %v3619_v10  ;;  %v3624_v8 = vld [vmem:[%s4217_s1 + $0xd0] sm:$0xff]   ;;  %v922_v10 = vld [vmem:[%s3844_s8 + $0x3c] sm:$0x1]  ;;  %v1011_v15 = vor.u32 %v1010_v4, %v1007_v2  ;;  %v1033_v16 = vshrl.u32 %v921_v7, 16  ;;  %v1036_v17 = vshll.u32 %v921_v7, 16 }
  0x84   : > { %v2824_v34 = vcombine.low %v947_v24, %v961_v28  ;;  %v974_v35 = vrot.slane %v972_v22, 5  ;;  %v969_v37 = vor.u32 %v968_v29, %v965_v25  ;;  %v1042_v18 = vshll.u32 %v922_v10, 16  ;;  %v3034_v2 = vld [vmem:[%s3844_s8 + $0x30] sm:$0xf]  ;;  %v3641_v7 = vld [vmem:[%s3844_s8 + $0x60] ss:$8 sps:$4 sm:$0xff]  }
  0x85   : > { %3273 = vmatpush3.bf16.msra.mxu1 %v3606_v32  ;;  %v3613_v32 = vld [vmem:[%s4217_s1 + $0xb0] sm:$0xff]   ;;  %v998_v19 = vrot.slane %v997_v9, 4  ;;  %v1024_v21 = vrot.slane %v1022_v12, 5  ;;  %v1030_v22 = vrot.slane %v1028_v13, 5  ;;  %v1012_v24 = vrot.slane %v1011_v15, 4  ;;  %v3643_v12 = vld [vmem:[%s4217_s1 + $0x208] sm:$0xff]  }
  0x86   : > { %3369 = vmatpush3.bf16.msra.mxu0 %v3607_v41  ;;  %3274 = vmatprep.subr.bf16.mxu1 %v3608_v50  ;;  %v970_v39 = vrot.slane %v969_v37, 4  ;;  %v3616_v41 = vld [vmem:[%s4217_s1 + $0xb8] sm:$0xff]   ;;  %v1035_v25 = vrot.slane %v1033_v16, 4  ;;  %v1038_v27 = vrot.slane %v1036_v17, 5  ;;  %v1044_v28 = vrot.slane %v1042_v18, 5 }
  0x87   : > { %3370 = vmatprep.subr.bf16.mxu0 %v3609_v1  ;;  %3282 = vmatprep.mubr.bf16.mxu1 %v2824_v34  ;;  %v3627_v34 = vld [vmem:[%s4217_s1 + $0x1d8] sm:$0xff]   ;;  %v2288_v56 = vshrl.u32 %v3024_v52, 16  ;;  %v2291_v57 = vshll.u32 %v3024_v52, 16  ;;  %v2302_v59 = vshrl.u32 %v3026_v54, 16  ;;  %v2361_v15 = vshll.u32 %v3034_v2, 16  ;;  %v3650_v52 = vld [vmem:[%s4217_s1 + $0x220] sm:$0xff]  }
  0x88   : > { %v975_v45 = vsel %vm3948_vm2, %v970_v39, %v974_v35  ;;  %v2367_v16 = vshll.u32 %v3035_v6, 16  ;;  %v3644_v17 = vld [vmem:[%s3844_s8 + $0xb0] ss:$8 sps:$4 sm:$0xff]  }
  0x89   : > { %3275 = vmatpush3.bf16.msra.mxu1 %v3608_v50  ;;  %v2825_v50 = vcombine.low %v975_v45, %v989_v46  ;;  %v3630_v45 = vld [vmem:[%s4217_s1 + $0xe8] sm:$0xff]   ;;  %v2290_v63 = vrot.slane %v2288_v56, 4  ;;  %v2293_v0 = vrot.slane %v2291_v57, 5  ;;  %v2304_v4 = vrot.slane %v2302_v59, 4 }
  0x8a   : > { %3371 = vmatpush3.bf16.msra.mxu0 %v3609_v1  ;;  %3276 = vmatprep.subr.bf16.mxu1 %v3610_v5  ;;  %v1002_v1 = vrot.slane %v1000_v58, 5  ;;  %v3631_v46 = vld [vmem:[%s4217_s1 + $0x1e8] sm:$0xff]   ;;  %v2297_v58 = vshll.u32 %v3025_v53, 16 }
  0x8b   : > { %3372 = vmatprep.subr.bf16.mxu0 %v3611_v11  ;;  %v3651_v57 = vld [vmem:[%s4217_s1 + $0x228] sm:$0xff]  }
  0x8c   : > { %v1003_v29 = vsel %vm3948_vm2, %v998_v19, %v1002_v1  ;;  %v3033_v1 = vld [vmem:[%s3844_s8 + $0x2c] sm:$0x1]  ;;  %v2299_v18 = vrot.slane %v2297_v58, 5  ;;  %v3037_v58 = vld [vmem:[%s3844_s8 + $0x3c] sm:$0x1] }
  0x8d   : > { %3277 = vmatpush3.bf16.msra.mxu1 %v3610_v5  ;;  %v1016_v5 = vrot.slane %v1014_v61, 5 }
  0x8e   : > { %3373 = vmatpush3.bf16.msra.mxu0 %v3611_v11  ;;  %3278 = vmatprep.subr.bf16.mxu1 %v3613_v32  ;;  %v1019_v11 = vshrl.u32 %v919_v3, 16  ;;  %v3640_v3 = vld [vmem:[%s3844_s8 + $0xa0] ss:$8 sps:$4 sm:$0xff]  }
  0x8f   : > { %3374 = vmatprep.subr.bf16.mxu0 %v3614_v33 }
  0x90   : > { %v1021_v20 = vrot.slane %v1019_v11, 4  ;;  %v2353_v11 = vshll.u32 %v3033_v1, 16 }
  0x91   : > { %3279 = vmatpush3.bf16.msra.mxu1 %v3613_v32  ;;  %v1017_v32 = vsel %vm3948_vm2, %v1012_v24, %v1016_v5  ;;  %v2307_v5 = vrot.slane %v2305_v60, 5 }
  0x92   : > { %3375 = vmatpush3.bf16.msra.mxu0 %v3614_v33  ;;  %3280 = vmatprep.subr.bf16.mxu1 %v3616_v41  ;;  %v1025_v30 = vor.u32 %v1024_v21, %v1021_v20  ;;  %v1039_v33 = vor.u32 %v1038_v27, %v1035_v25  ;;  %v2826_v35 = vcombine.low %v1003_v29, %v1017_v32  ;;  %v2363_v27 = vrot.slane %v2361_v15, 5 }
  0x93   : > { %3376 = vmatprep.subr.bf16.mxu0 %v3617_v43  ;;  %v2308_v13 = vor.u32 %v2307_v5, %v2304_v4  ;;  %v2355_v29 = vrot.slane %v2353_v11, 5  ;;  %v2369_v32 = vrot.slane %v2367_v16, 5  ;;  %v3029_v4 = vld [vmem:[%s3844_s8 + $0x1c] sm:$0x1]  ;;  %v3031_v5 = vld [vmem:[%s3844_s8 + $0x24] sm:$0x1] }
  0x94   : > { %v1026_v36 = vrot.slane %v1025_v30, 4  ;;  %v1040_v37 = vrot.slane %v1039_v33, 4  ;;  %v3648_v30 = vld [vmem:[%s4217_s1 + $0x210] sm:$0xff]  }
  0x95   : > { %3281 = vmatpush3.bf16.msra.mxu1 %v3616_v41  ;;  %v3639_v41 = vld [vmem:[%s3844_s8 + $0x50] ss:$8 sps:$4 sm:$0xff]   ;;  %v2309_v24 = vrot.slane %v2308_v13, 4 }
  0x96   : > { %3377 = vmatpush3.bf16.msra.mxu0 %v3617_v43  ;;  %3290 = vmatprep.subr.bf16.mxu1 %v3618_v44  ;;  %v1031_v39 = vsel %vm3948_vm2, %v1026_v36, %v1030_v22  ;;  %v1045_v40 = vsel %vm3948_vm2, %v1040_v37, %v1044_v28  ;;  %v3645_v22 = vld [vmem:[%s3844_s8 + $0x70] ss:$8 sps:$4 sm:$0xff]  }
  0x97   : > { %3386 = vmatprep.subr.bf16.mxu0 %v3620_v47  ;;  %v2827_v43 = vcombine.low %v1031_v39, %v1045_v40  ;;  %v3649_v40 = vld [vmem:[%s4217_s1 + $0x218] sm:$0xff]  }
  0x98   : > { %3283 = vmatmul.mubr.bf16.vlgmr.msra.gmra.mrb[0].mxu1 %v2825_v50  ;;  %v3637_v50 = vld [vmem:[%s4217_s1 + $0x1f8] sm:$0xff]  }
  0x99   : > { %3291 = vmatpush3.bf16.msra.mxu1 %v3618_v44  ;;  %3379 = vmatmul.mubr.bf16.vlgmr.msra.gmra.mrb[0].mxu0 %v3621_v48  ;;  %v3638_v44 = vld [vmem:[%s3844_s8 + $0x90] ss:$8 sps:$4 sm:$0xff]  }
  0x9a   : > { %3387 = vmatpush3.bf16.msra.mxu0 %v3620_v47  ;;  %3292 = vmatprep.subr.bf16.mxu1 %v3622_v51  ;;  %v3633_v47 = vld [vmem:[%s4217_s1 + $0xf0] sm:$0xff]  }
  0x9b   : > { %3388 = vmatprep.subr.bf16.mxu0 %v3623_v55  ;;  %3382 = vmatprep.mubr.bf16.mxu0 %v3632_v62  ;;  %v3635_v48 = vld [vmem:[%s4217_s1 + $0x1f0] sm:$0xff]   ;;  %v3032_v62 = vld [vmem:[%s3844_s8 + $0x28] sm:$0xf] }
  0x9c   : > { %3286 = vmatprep.mubr.bf16.mxu1 %v2826_v35  ;;  %v2344_v9 = vshrl.u32 %v3032_v62, 16  ;;  %v2347_v10 = vshll.u32 %v3032_v62, 16 }
  0x9d   : > { %3293 = vmatpush3.bf16.msra.mxu1 %v3622_v51  ;;  %v3642_v51 = vld [vmem:[%s4217_s1 + $0x200] sm:$0xff]  }
  0x9e   : > { %3389 = vmatpush3.bf16.msra.mxu0 %v3623_v55  ;;  %3294 = vmatprep.subr.bf16.mxu1 %v3624_v8  ;;  %v3027_v55 = vld [vmem:[%s3844_s8 + $0x14] sm:$0x1]  ;;  %v2346_v20 = vrot.slane %v2344_v9, 4  ;;  %v2349_v21 = vrot.slane %v2347_v10, 5 }
  0x9f   : > { %3390 = vmatprep.subr.bf16.mxu0 %v3625_v14  ;;  %v2311_v61 = vshll.u32 %v3027_v55, 16  ;;  %v3652_v10 = vld [vmem:[%s4217_s1 + $0x230] sm:$0xff]  }
  0xa0   : > { %3287 = vmatmul.mubr.bf16.gmra.mrb[4].mxu1 %v2827_v43  ;;  %v2350_v28 = vor.u32 %v2349_v21, %v2346_v20  ;;  %v3038_v43 = vld [vmem:[%s3844_s8 + $0x40] sm:$0xf] }
  0xa1   : > { %3295 = vmatpush3.bf16.msra.mxu1 %v3624_v8  ;;  %3383 = vmatmul.mubr.bf16.gmra.mrb[4].mxu0 %v3634_v31  ;;  %v2294_v8 = vor.u32 %v2293_v0, %v2290_v63  ;;  %v2313_v19 = vrot.slane %v2311_v61, 5 }
  0xa2   : > { %3391 = vmatpush3.bf16.msra.mxu0 %v3625_v14  ;;  %3296 = vmatprep.subr.bf16.mxu1 %v3626_v23  ;;  %v2358_v14 = vshrl.u32 %v3034_v2, 16  ;;  %v2351_v33 = vrot.slane %v2350_v28, 4 }
  0xa3   : > { %3392 = vmatprep.subr.bf16.mxu0 %v3627_v34  ;;  %3402 = vmatprep.mubr.bf16.mxu0 %v3639_v41  ;;  %v2314_v36 = vsel %vm3948_vm2, %v2309_v24, %v2313_v19  ;;  %v3653_v19 = vld [vmem:[%s4217_s1 + $0x238] sm:$0xff]  }
  0xa4   : > { %3306 = vmatprep.mubr.bf16.mxu1 %v3638_v44  ;;  %v2360_v25 = vrot.slane %v2358_v14, 4  ;;  %v2356_v39 = vsel %vm3948_vm2, %v2351_v33, %v2355_v29  ;;  %v2339_v14 = vshll.u32 %v3031_v5, 16 }
  0xa5   : > { %3297 = vmatpush3.bf16.msra.mxu1 %v3626_v23  ;;  %v2295_v23 = vrot.slane %v2294_v8, 4 }
  0xa6   : > { %3393 = vmatpush3.bf16.msra.mxu0 %v3627_v34  ;;  %3298 = vmatprep.subr.bf16.mxu1 %v3628_v38  ;;  %v2364_v31 = vor.u32 %v2363_v27, %v2360_v25  ;;  %v3646_v34 = vld [vmem:[%s3844_s8 + $0xc0] ss:$8 sps:$4 sm:$0xff]  }
  0xa7   : > { %3394 = vmatprep.subr.bf16.mxu0 %v3629_v42  ;;  %v2300_v35 = vsel %vm3948_vm2, %v2295_v23, %v2299_v18  ;;  %v2341_v23 = vrot.slane %v2339_v14, 5 }
  0xa8   : > { %v2365_v37 = vrot.slane %v2364_v31, 4  ;;  %v3056_v44 = vcombine.low %v2300_v35, %v2314_v36 }
  0xa9   : > { %3299 = vmatpush3.bf16.msra.mxu1 %v3628_v38  ;;  %v3647_v38 = vld [vmem:[%s3844_s8 + $0x80] ss:$8 sps:$4 sm:$0xff]  }
  0xaa   : > { %3395 = vmatpush3.bf16.msra.mxu0 %v3629_v42  ;;  %3300 = vmatprep.subr.bf16.mxu1 %v3630_v45  ;;  %v2370_v41 = vsel %vm3948_vm2, %v2365_v37, %v2369_v32  ;;  %v3036_v42 = vld [vmem:[%s3844_s8 + $0x38] sm:$0xf] }
  0xab   : > { %3396 = vmatprep.subr.bf16.mxu0 %v3631_v46 }
  0xad   : > { %3301 = vmatpush3.bf16.msra.mxu1 %v3630_v45  ;;  %v3028_v45 = vld [vmem:[%s3844_s8 + $0x18] sm:$0xf] }
  0xae   : > { %3397 = vmatpush3.bf16.msra.mxu0 %v3631_v46  ;;  %3302 = vmatprep.subr.bf16.mxu1 %v3633_v47  ;;  %v3030_v46 = vld [vmem:[%s3844_s8 + $0x20] sm:$0xf]  ;;  %v2316_v53 = vshrl.u32 %v3028_v45, 16  ;;  %v2319_v54 = vshll.u32 %v3028_v45, 16 }
  0xaf   : > { %3398 = vmatprep.subr.bf16.mxu0 %v3635_v48  ;;  %v2330_v55 = vshrl.u32 %v3030_v46, 16  ;;  %v2333_v56 = vshll.u32 %v3030_v46, 16 }
  0xb0   : > { %v2318_v63 = vrot.slane %v2316_v53, 4  ;;  %v2321_v0 = vrot.slane %v2319_v54, 5 }
  0xb1   : > { %3303 = vmatpush3.bf16.msra.mxu1 %v3633_v47  ;;  %v3058_v47 = vcombine.low %v2356_v39, %v2370_v41  ;;  %v2332_v1 = vrot.slane %v2330_v55, 4  ;;  %v2335_v2 = vrot.slane %v2333_v56, 5 }
  0xb2   : > { %3399 = vmatpush3.bf16.msra.mxu0 %v3635_v48  ;;  %3304 = vmatprep.subr.bf16.mxu1 %v3636_v49  ;;  %v2372_v48 = vshrl.u32 %v3036_v42, 16  ;;  %v2322_v11 = vor.u32 %v2321_v0, %v2318_v63 }
  0xb3   : > { %3400 = vmatprep.subr.bf16.mxu0 %v3637_v50  ;;  %v2336_v13 = vor.u32 %v2335_v2, %v2332_v1 }
  0xb4   : > { %v2374_v59 = vrot.slane %v2372_v48, 4  ;;  %v2323_v20 = vrot.slane %v2322_v11, 4 }
  0xb5   : > { %3305 = vmatpush3.bf16.msra.mxu1 %v3636_v49  ;;  %v2375_v49 = vshll.u32 %v3036_v42, 16 }
  0xb6   : > { %3401 = vmatpush3.bf16.msra.mxu0 %v3637_v50  ;;  %3434 = vmatprep.subr.bf16.mxu1 %v3642_v51  ;;  %v2386_v50 = vshrl.u32 %v3038_v43, 16 }
  0xb7   : > { %3410 = vmatprep.subr.bf16.mxu0 %v3642_v51  ;;  %v2377_v60 = vrot.slane %v2375_v49, 5 }
  0xb8   : > { %3307 = vmatmul.mubr.bf16.vlgmr.msra.gmra.mrb[0].mxu1 %v3640_v3  ;;  %v2388_v61 = vrot.slane %v2386_v50, 4  ;;  %v3039_v3 = vld [vmem:[%s3844_s8 + $0x44] sm:$0x1] }
  0xb9   : > { %3403 = vmatmul.mubr.bf16.vlgmr.msra.gmra.mrb[0].mxu0 %v3641_v7  ;;  %3442 = vmatpush3.bf16.msra.mxu1 %v3642_v51  ;;  %v2378_v6 = vor.u32 %v2377_v60, %v2374_v59  ;;  %v2381_v7 = vshll.u32 %v3037_v58, 16  ;;  %v2395_v9 = vshll.u32 %v3039_v3, 16 }
  0xba   : > { %3411 = vmatpush3.bf16.msra.mxu0 %v3642_v51  ;;  %3435 = vmatprep.subr.bf16.mxu1 %v3643_v12  ;;  %v2389_v51 = vshll.u32 %v3038_v43, 16 }
  0xbb   : > { %3412 = vmatprep.subr.bf16.mxu0 %v3643_v12  ;;  %3310 = vmatprep.mubr.bf16.mxu1 %v3644_v17  ;;  %v2379_v15 = vrot.slane %v2378_v6, 4  ;;  %v2383_v16 = vrot.slane %v2381_v7, 5  ;;  %v2397_v18 = vrot.slane %v2395_v9, 5 }
  0xbc   : > { %3406 = vmatprep.mubr.bf16.mxu0 %v3645_v22  ;;  %v2391_v62 = vrot.slane %v2389_v51, 5  ;;  %v2337_v22 = vrot.slane %v2336_v13, 4 }
  0xbd   : > { %3443 = vmatpush3.bf16.msra.mxu1 %v3643_v12  ;;  %v2384_v24 = vsel %vm3948_vm2, %v2379_v15, %v2383_v16 }
  0xbe   : > { %3413 = vmatpush3.bf16.msra.mxu0 %v3643_v12  ;;  %3436 = vmatprep.subr.bf16.mxu1 %v3648_v30  ;;  %v2392_v8 = vor.u32 %v2391_v62, %v2388_v61  ;;  %v2325_v12 = vshll.u32 %v3029_v4, 16  ;;  %v2342_v28 = vsel %vm3948_vm2, %v2337_v22, %v2341_v23 }
  0xbf   : > { %3414 = vmatprep.subr.bf16.mxu0 %v3648_v30 }
  0xc0   : > { %3311 = vmatmul.mubr.bf16.gmra.mrb[4].mxu1 %v3646_v34  ;;  %v2393_v17 = vrot.slane %v2392_v8, 4  ;;  %v2327_v21 = vrot.slane %v2325_v12, 5 }
  0xc1   : > { %3407 = vmatmul.mubr.bf16.gmra.mrb[4].mxu0 %v3647_v38  ;;  %3444 = vmatpush3.bf16.msra.mxu1 %v3648_v30 }
  0xc2   : > { %3415 = vmatpush3.bf16.msra.mxu0 %v3648_v30  ;;  %3437 = vmatprep.subr.bf16.mxu1 %v3649_v40  ;;  %v2398_v25 = vsel %vm3948_vm2, %v2393_v17, %v2397_v18  ;;  %v2328_v27 = vsel %vm3948_vm2, %v2323_v20, %v2327_v21 }
  0xc3   : > { %3416 = vmatprep.subr.bf16.mxu0 %v3649_v40  ;;  %3426 = vmatprep.mubr.bf16.mxu0 %v3056_v44  ;;  %v3059_v29 = vcombine.low %v2384_v24, %v2398_v25  ;;  %v3057_v30 = vcombine.low %v2328_v27, %v2342_v28 }
  0xc4   : > { %3430 = vmatprep.mubr.bf16.mxu1 %v3058_v47 }
  0xc5   : > { %3445 = vmatpush3.bf16.msra.mxu1 %v3649_v40 }
  0xc6   : > { %3417 = vmatpush3.bf16.msra.mxu0 %v3649_v40  ;;  %3438 = vmatprep.subr.bf16.mxu1 %v3650_v52 }
  0xc7   : > { %3418 = vmatprep.subr.bf16.mxu0 %v3650_v52 }
  0xc9   : > { %3446 = vmatpush3.bf16.msra.mxu1 %v3650_v52 }
  0xca   : > { %3419 = vmatpush3.bf16.msra.mxu0 %v3650_v52  ;;  %3439 = vmatprep.subr.bf16.mxu1 %v3651_v57 }
  0xcb   : > { %3420 = vmatprep.subr.bf16.mxu0 %v3651_v57 }
  0xcd   : > { %3447 = vmatpush3.bf16.msra.mxu1 %v3651_v57 }
  0xce   : > { %3421 = vmatpush3.bf16.msra.mxu0 %v3651_v57  ;;  %3440 = vmatprep.subr.bf16.mxu1 %v3652_v10 }
  0xcf   : > { %3422 = vmatprep.subr.bf16.mxu0 %v3652_v10 }
  0xd1   : > { %3448 = vmatpush3.bf16.msra.mxu1 %v3652_v10 }
  0xd2   : > { %3423 = vmatpush3.bf16.msra.mxu0 %v3652_v10  ;;  %3441 = vmatprep.subr.bf16.mxu1 %v3653_v19 }
  0xd3   : > { %3424 = vmatprep.subr.bf16.mxu0 %v3653_v19 }
  0xd5   : > { %3449 = vmatpush3.bf16.msra.mxu1 %v3653_v19 }
  0xd6   : > { %3425 = vmatpush3.bf16.msra.mxu0 %v3653_v19 }
  0xd8   : > { %3431 = vmatmul.mubr.bf16.vlgmr.msra.gmra.mrb[8].mxu1 %v3059_v29 }
  0xd9   : > { %3427 = vmatmul.mubr.bf16.vlgmr.msra.gmra.mrb[0].mxu0 %v3057_v30 }
 0x18b   : > { %v3308_v31 = vpop.f32.mrb[0].mxu1 }
 0x18c   : > { %v1350_v32 = vpop.f32.mrb[1].mxu1 }
 0x18d   : > { %v3309_v33 = vpop.f32.mrb[2].mxu1 }
 0x18e   : > { %v1353_v34 = vpop.f32.mrb[3].mxu1 }
 0x193   : > { %v3312_v35 = vpop.f32.mrb[4].mxu1 }
 0x194   : > { %v3408_v36 = vpop.f32.mrb[4].mxu0  ;;  %v1366_v37 = vpop.f32.mrb[5].mxu1 }
 0x195   : > { %v3454_v38 = vadd.f32 %v3408_v36, %v3312_v35  ;;  %v2232_v39 = vpop.f32.mrb[5].mxu0  ;;  %v3313_v40 = vpop.f32.mrb[6].mxu1  ;;  %v2609_v35 = vld [vmem:[%s4219_s3] sm:$0x3] }
 0x196   : > { %v3456_v41 = vadd.f32 %v2232_v39, %v1366_v37  ;;  %v3409_v26 = vpop.f32.mrb[6].mxu0  ;;  %v1369_v42 = vpop.f32.mrb[7].mxu1 }
 0x197   : > { %v3458_v43 = vadd.f32 %v3409_v26, %v3313_v40  ;;  %v2235_v44 = vpop.f32.mrb[7].mxu0 }
 0x198   : > { %v3460_v45 = vadd.f32 %v2235_v44, %v1369_v42 }
 0x1ab   : > { %v3432_v46 = vpop.f32.mrb[8].mxu1 }
 0x1ac   : > { %v3428_v47 = vpop.f32.mrb[0].mxu0  ;;  %v3455_v48 = vadd.f32 %v3454_v38, %v3432_v46  ;;  %v2530_v49 = vpop.f32.mrb[9].mxu1 }
 0x1ad   : > { %v3450_v50 = vadd.f32 %v3428_v47, %v3308_v31  ;;  %v2514_v51 = vpop.f32.mrb[1].mxu0  ;;  %v3457_v52 = vadd.f32 %v3456_v41, %v2530_v49  ;;  %v3433_v53 = vpop.f32.mrb[10].mxu1 }
 0x1ae   : > { %v3451_v54 = vadd.f32 %v2514_v51, %v1350_v32  ;;  %v3429_v55 = vpop.f32.mrb[2].mxu0  ;;  %v3459_v56 = vadd.f32 %v3458_v43, %v3433_v53  ;;  %v2533_v57 = vpop.f32.mrb[11].mxu1  ;;  %v2629_v17 = vmul.f32 %v3455_v48, %v3455_v48 }
 0x1af   : > { %v3452_v58 = vadd.f32 %v3429_v55, %v3309_v33  ;;  %v2517_v59 = vpop.f32.mrb[3].mxu0  ;;  %v3461_v60 = vadd.f32 %v3460_v45, %v2533_v57  ;;  %v2625_v5 = vmul.f32 %v3450_v50, %v3450_v50  ;;  %v2627_v11 = vmul.f32 %v3457_v52, %v3457_v52 }
 0x1b0   : > { %v3105_v61 = vpack.c.bf16 %v3459_v56, %v3455_v48  ;;  %v3453_v62 = vadd.f32 %v2517_v59, %v1353_v34  ;;  %v2623_v1 = vmul.f32 %v3451_v54, %v3451_v54  ;;  %v2630_v20 = vmul.f32 %v3459_v56, %v3459_v56 }
 0x1b1   : > { %v3095_v63 = vpack.c.bf16 %v3452_v58, %v3450_v50  ;;  %v3100_v0 = vpack.c.bf16 %v3461_v60, %v3457_v52  ;;  %v2626_v8 = vmul.f32 %v3452_v58, %v3452_v58  ;;  %v2628_v15 = vmul.f32 %v3461_v60, %v3461_v60 }
 0x1b2   : > { %3109 = vst [vmem:[%s3842_s7 + $0x18] sm:$0xff] %v3105_v61   ;;  %v3090_v2 = vpack.c.bf16 %v3453_v62, %v3451_v54  ;;  %v2610_v3 = vadd.f32 %v3453_v62, %v3451_v54  ;;  %v2624_v4 = vmul.f32 %v3453_v62, %v3453_v62 }
 0x1b3   : > { %3107 = vst [vmem:[%s3842_s7 + $0x8] sm:$0xff] %v3095_v63   ;;  %3108 = vst [vmem:[%s3842_s7 + $0x10] sm:$0xff] %v3100_v0  }
 0x1b4   : > { %3091 = vst [vmem:[%s3842_s7] sm:$0xff] %v3090_v2   ;;  %v2611_v6 = vadd.f32 %v3450_v50, %v2610_v3  ;;  %v2631_v7 = vadd.f32 %v2624_v4, %v2623_v1 }
 0x1b6   : > { %v2632_v9 = vadd.f32 %v2631_v7, %v2625_v5  ;;  %v2612_v10 = vadd.f32 %v3452_v58, %v2611_v6 }
 0x1b8   : > { %v2613_v12 = vadd.f32 %v3457_v52, %v2612_v10  ;;  %v2633_v13 = vadd.f32 %v2632_v9, %v2626_v8 }
 0x1ba   : > { %v2614_v14 = vadd.f32 %v3461_v60, %v2613_v12  ;;  %v2634_v16 = vadd.f32 %v2633_v13, %v2627_v11 }
 0x1bc   : > { %v2615_v18 = vadd.f32 %v3455_v48, %v2614_v14  ;;  %v2635_v19 = vadd.f32 %v2634_v16, %v2628_v15 }
 0x1be   : > { %v2616_v21 = vadd.f32 %v3459_v56, %v2615_v18  ;;  %v2636_v22 = vadd.f32 %v2635_v19, %v2629_v17 }
 0x1c0   : > { %v2617_v23 = vrot.slane %v2616_v21, 4  ;;  %v2637_v24 = vadd.f32 %v2636_v22, %v2630_v20 }
 0x1c2   : > { %v2618_v25 = vadd.f32 %v2617_v23, %v2616_v21  ;;  %v2638_v27 = vrot.slane %v2637_v24, 4 }
 0x1c4   : > { %v2619_v28 = vrot.slane %v2618_v25, 2  ;;  %v2639_v29 = vadd.f32 %v2638_v27, %v2637_v24 }
 0x1c6   : > { %v2620_v30 = vadd.f32 %v2619_v28, %v2618_v25  ;;  %v2640_v31 = vrot.slane %v2639_v29, 2 }
 0x1c8   : > { %v2621_v32 = vrot.slane %v2620_v30, 1  ;;  %v2641_v33 = vadd.f32 %v2640_v31, %v2639_v29 }
 0x1ca   : > { %v2642_v34 = vrot.slane %v2641_v33, 1  ;;  %v2622_v36 = vadd.f32 %v2621_v32, %v2620_v30 }
 0x1cc   : > { %v2643_v37 = vadd.f32 %v2642_v34, %v2641_v33 }
 0x1ce   : > { %v2645_v38 = vsel %vm2644_vm3, %v2622_v36, %v2643_v37 }
 0x1cf   : > { %v2646_v39 = vadd.f32 %v2645_v38, %v2609_v35 }
 0x1d1   : > { %2647 = vst [vmem:[%s4219_s3] sm:$0x3] %v2646_v39 }
 0x1d2 PF: > { %s14_s16 = sadd.s32 1, %s3692_s16   ;;  %s4222_s12 = smov %s3680_s13 }
 0x1d3   : > { %p11_p11 = scmp.ge.s32.totalorder %s14_s16, 6   ;;  %s4223_s13 = smov %s3750_s20 }
 0x1d4   : > { %s4224_s14 = smov %s3688_s15  ;;  %s4225_s15 = smov %s4227_s17 }
 0x1d5   :  { %13 = sbr.rel (!%p11_p11) target bundleno = 3 (0x3), region = 130 }

// kernel: bottleneck_forward.7
= control target key start
LH: loop header
LB: loop body
LE: loop exit
PB: predicated region body
PF: predicated region fallthrough
CT: control target
= control target key end

     0   :  { %s903_s0 = inlined_call_operand.vmem [shape: bf16[256,128], index: 0, kind: input, shape index: {}]   ;;  %s904_s1 = inlined_call_operand.vmem [shape: f32[1,128], index: 1, kind: input, shape index: {}]   ;;  %s905_s2 = inlined_call_operand.vmem [shape: f32[1,128], index: 2, kind: input, shape index: {}]   ;;  %s906_s3 = inlined_call_operand.vmem [shape: bf16[256,128], index: 3, kind: input, shape index: {}]   ;;  %s907_s4 = inlined_call_operand.vmem [shape: f32[1,128], index: 4, kind: input, shape index: {}]   ;;  %s908_s5 = inlined_call_operand.vmem [shape: f32[1,128], index: 5, kind: input, shape index: {}]   ;;  %s909_s6 = inlined_call_operand.hbm [shape: f32[256,128], index: 6, kind: output, shape index: {}]  }
   0x1   :  { %v425_v0 = vld [vmem:[%s903_s0] sm:$0xff]   ;;  %v552_v9 = vld [vmem:[%s903_s0 + $0x8] sm:$0xff]   ;;  %v553_v15 = vld [vmem:[%s903_s0 + $0x10] sm:$0xff]  }
   0x2   :  { %v653_v1 = vld [vmem:[%s904_s1] ss:$0 sm:$0xff]  ;;  %v426_v2 = vunpack.c.l.bf16 %v425_v0  ;;  %v427_v5 = vunpack.c.h.bf16 %v425_v0  ;;  %v567_v10 = vld [vmem:[%s906_s3 + $0x8] sm:$0xff]   ;;  %v430_v13 = vunpack.c.l.bf16 %v552_v9  ;;  %v568_v16 = vld [vmem:[%s906_s3 + $0x10] sm:$0xff]   ;;  %v431_v19 = vunpack.c.h.bf16 %v552_v9 }
   0x3   :  { %v489_v3 = vld [vmem:[%s906_s3] sm:$0xff]   ;;  %v494_v14 = vunpack.c.l.bf16 %v567_v10  ;;  %v495_v20 = vunpack.c.h.bf16 %v567_v10  ;;  %v434_v28 = vunpack.c.l.bf16 %v553_v15  ;;  %v498_v29 = vunpack.c.l.bf16 %v568_v16  ;;  %v554_v34 = vld [vmem:[%s903_s0 + $0x18] sm:$0xff]  }
   0x4   :  { %v661_v4 = vld [vmem:[%s907_s4] ss:$0 sm:$0xff]  ;;  %v490_v7 = vunpack.c.l.bf16 %v489_v3  ;;  %v491_v8 = vunpack.c.h.bf16 %v489_v3  ;;  %v95_v11 = vmul.f32 %v426_v2, %v653_v1  ;;  %v96_v12 = vmul.f32 %v427_v5, %v653_v1  ;;  %v569_v43 = vld [vmem:[%s906_s3 + $0x18] sm:$0xff]  }
   0x5   :  { %v666_v6 = vld [vmem:[%s905_s2] ss:$0 sm:$0xff]  ;;  %v97_v23 = vmul.f32 %v430_v13, %v653_v1  ;;  %v239_v24 = vmul.f32 %v494_v14, %v661_v4  ;;  %v98_v26 = vmul.f32 %v431_v19, %v653_v1  ;;  %v240_v27 = vmul.f32 %v495_v20, %v661_v4 }
   0x6   :  { %v237_v17 = vmul.f32 %v490_v7, %v661_v4  ;;  %v238_v18 = vmul.f32 %v491_v8, %v661_v4  ;;  %v134_v21 = vadd.f32 %v666_v6, %v95_v11  ;;  %v135_v22 = vadd.f32 %v666_v6, %v96_v12  ;;  %v691_v25 = vld [vmem:[%s908_s5] ss:$0 sm:$0xff] }
   0x7   :  { %v136_v32 = vadd.f32 %v666_v6, %v97_v23  ;;  %v435_v33 = vunpack.c.h.bf16 %v553_v15  ;;  %v137_v35 = vadd.f32 %v666_v6, %v98_v26  ;;  %v99_v36 = vmul.f32 %v434_v28, %v653_v1  ;;  %v555_v56 = vld [vmem:[%s903_s0 + $0x20] sm:$0xff]  }
   0x8   :  { %v269_v30 = vadd.f32 %v237_v17, %v134_v21  ;;  %v270_v31 = vadd.f32 %v238_v18, %v135_v22  ;;  %v241_v37 = vmul.f32 %v498_v29, %v661_v4  ;;  %v499_v38 = vunpack.c.h.bf16 %v568_v16 }
   0x9   :  { %v271_v41 = vadd.f32 %v239_v24, %v136_v32  ;;  %v100_v42 = vmul.f32 %v435_v33, %v653_v1  ;;  %v272_v44 = vadd.f32 %v240_v27, %v137_v35  ;;  %v138_v45 = vadd.f32 %v666_v6, %v99_v36 }
   0xa   :  { %v308_v39 = vadd.f32 %v691_v25, %v269_v30  ;;  %v309_v40 = vadd.f32 %v691_v25, %v270_v31  ;;  %v242_v46 = vmul.f32 %v499_v38, %v661_v4  ;;  %v438_v47 = vunpack.c.l.bf16 %v554_v34 }
   0xb   :  { %v310_v50 = vadd.f32 %v691_v25, %v271_v41  ;;  %v139_v51 = vadd.f32 %v666_v6, %v100_v42  ;;  %v311_v52 = vadd.f32 %v691_v25, %v272_v44  ;;  %v273_v53 = vadd.f32 %v241_v37, %v138_v45 }
   0xc   :  { %v340_v48 = vmax.f32 %v308_v39, 0.0  ;;  %v341_v49 = vmax.f32 %v309_v40, 0.0  ;;  %v101_v54 = vmul.f32 %v438_v47, %v653_v1  ;;  %v502_v55 = vunpack.c.l.bf16 %v569_v43 }
   0xd   :  { %11 = vsyncpa [#allocation3], 0  ;;  %v342_v57 = vmax.f32 %v310_v50, 0.0  ;;  %v274_v58 = vadd.f32 %v242_v46, %v139_v51  ;;  %v439_v59 = vunpack.c.h.bf16 %v554_v34  ;;  %v503_v60 = vunpack.c.h.bf16 %v569_v43  ;;  %v570_v61 = vld [vmem:[%s906_s3 + $0x20] sm:$0xff]   ;;  %v556_v9 = vld [vmem:[%s903_s0 + $0x28] sm:$0xff]  }
   0xe   :  { %372 = vst [vmem:[#allocation2] sm:$0xff] %v340_v48  ;;  %373 = vst [vmem:[#allocation2 + $0x8] sm:$0xff] %v341_v49  ;;  %v343_v62 = vmax.f32 %v311_v52, 0.0  ;;  %v312_v63 = vadd.f32 %v691_v25, %v273_v53  ;;  %v140_v0 = vadd.f32 %v666_v6, %v101_v54  ;;  %v243_v2 = vmul.f32 %v502_v55, %v661_v4  ;;  %v571_v14 = vld [vmem:[%s906_s3 + $0x28] sm:$0xff]   ;;  %v557_v28 = vld [vmem:[%s903_s0 + $0x30] sm:$0xff]  }
   0xf   :  { %374 = vst [vmem:[#allocation2 + $0x10] sm:$0xff] %v342_v57  ;;  %v313_v3 = vadd.f32 %v691_v25, %v274_v58  ;;  %v102_v5 = vmul.f32 %v439_v59, %v653_v1  ;;  %v244_v7 = vmul.f32 %v503_v60, %v661_v4  ;;  %v442_v8 = vunpack.c.l.bf16 %v555_v56  ;;  %v572_v33 = vld [vmem:[%s906_s3 + $0x30] sm:$0xff]   ;;  %v558_v50 = vld [vmem:[%s903_s0 + $0x38] sm:$0xff]  }
  0x10   :  { %375 = vst [vmem:[#allocation2 + $0x18] sm:$0xff] %v343_v62  ;;  %v344_v10 = vmax.f32 %v312_v63, 0.0  ;;  %v275_v11 = vadd.f32 %v243_v2, %v140_v0  ;;  %v506_v12 = vunpack.c.l.bf16 %v570_v61  ;;  %v443_v13 = vunpack.c.h.bf16 %v555_v56  ;;  %v573_v51 = vld [vmem:[%s906_s3 + $0x38] sm:$0xff]   ;;  %v559_v0 = vld [vmem:[%s903_s0 + $0x40] sm:$0xff]  }
  0x11   :  { %v345_v15 = vmax.f32 %v313_v3, 0.0  ;;  %v141_v16 = vadd.f32 %v666_v6, %v102_v5  ;;  %v103_v17 = vmul.f32 %v442_v8, %v653_v1  ;;  %v507_v18 = vunpack.c.h.bf16 %v570_v61  ;;  %v574_v8 = vld [vmem:[%s906_s3 + $0x40] sm:$0xff]  }
  0x12   :  { %376 = vst [vmem:[#allocation2 + $0x20] sm:$0xff] %v344_v10  ;;  %v314_v19 = vadd.f32 %v691_v25, %v275_v11  ;;  %v245_v20 = vmul.f32 %v506_v12, %v661_v4  ;;  %v104_v21 = vmul.f32 %v443_v13, %v653_v1  ;;  %v446_v22 = vunpack.c.l.bf16 %v556_v9 }
  0x13   :  { %377 = vst [vmem:[#allocation2 + $0x28] sm:$0xff] %v345_v15  ;;  %v276_v23 = vadd.f32 %v244_v7, %v141_v16  ;;  %v142_v24 = vadd.f32 %v666_v6, %v103_v17  ;;  %v246_v26 = vmul.f32 %v507_v18, %v661_v4  ;;  %v510_v27 = vunpack.c.l.bf16 %v571_v14 }
  0x14   :  { %v346_v29 = vmax.f32 %v314_v19, 0.0  ;;  %v143_v30 = vadd.f32 %v666_v6, %v104_v21  ;;  %v105_v31 = vmul.f32 %v446_v22, %v653_v1  ;;  %v447_v32 = vunpack.c.h.bf16 %v556_v9  ;;  %v560_v21 = vld [vmem:[%s903_s0 + $0x48] sm:$0xff]  }
  0x15   :  { %v315_v34 = vadd.f32 %v691_v25, %v276_v23  ;;  %v277_v35 = vadd.f32 %v245_v20, %v142_v24  ;;  %v247_v36 = vmul.f32 %v510_v27, %v661_v4  ;;  %v511_v37 = vunpack.c.h.bf16 %v571_v14  ;;  %v575_v27 = vld [vmem:[%s906_s3 + $0x48] sm:$0xff]  }
  0x16   :  { %378 = vst [vmem:[#allocation2 + $0x30] sm:$0xff] %v346_v29  ;;  %v278_v38 = vadd.f32 %v246_v26, %v143_v30  ;;  %v144_v39 = vadd.f32 %v666_v6, %v105_v31  ;;  %v106_v40 = vmul.f32 %v447_v32, %v653_v1  ;;  %v450_v41 = vunpack.c.l.bf16 %v557_v28 }
  0x17   :  { %v347_v42 = vmax.f32 %v315_v34, 0.0  ;;  %v316_v43 = vadd.f32 %v691_v25, %v277_v35  ;;  %v248_v44 = vmul.f32 %v511_v37, %v661_v4  ;;  %v514_v45 = vunpack.c.l.bf16 %v572_v33 }
  0x18   :  { %v317_v46 = vadd.f32 %v691_v25, %v278_v38  ;;  %v279_v47 = vadd.f32 %v247_v36, %v144_v39  ;;  %v145_v48 = vadd.f32 %v666_v6, %v106_v40  ;;  %v107_v49 = vmul.f32 %v450_v41, %v653_v1 }
  0x19   :  { %379 = vst [vmem:[#allocation2 + $0x38] sm:$0xff] %v347_v42  ;;  %v348_v52 = vmax.f32 %v316_v43, 0.0  ;;  %v249_v53 = vmul.f32 %v514_v45, %v661_v4  ;;  %v451_v54 = vunpack.c.h.bf16 %v557_v28  ;;  %v515_v55 = vunpack.c.h.bf16 %v572_v33  ;;  %v576_v45 = vld [vmem:[%s906_s3 + $0x50] sm:$0xff]  }
  0x1a   :  { %v349_v56 = vmax.f32 %v317_v46, 0.0  ;;  %v318_v57 = vadd.f32 %v691_v25, %v279_v47  ;;  %v280_v58 = vadd.f32 %v248_v44, %v145_v48  ;;  %v146_v59 = vadd.f32 %v666_v6, %v107_v49  ;;  %v561_v44 = vld [vmem:[%s903_s0 + $0x50] sm:$0xff]  }
  0x1b   :  { %380 = vst [vmem:[#allocation2 + $0x40] sm:$0xff] %v348_v52  ;;  %v108_v60 = vmul.f32 %v451_v54, %v653_v1  ;;  %v250_v61 = vmul.f32 %v515_v55, %v661_v4  ;;  %v454_v62 = vunpack.c.l.bf16 %v558_v50  ;;  %v518_v63 = vunpack.c.l.bf16 %v573_v51 }
  0x1c   :  { %381 = vst [vmem:[#allocation2 + $0x48] sm:$0xff] %v349_v56  ;;  %v350_v2 = vmax.f32 %v318_v57, 0.0  ;;  %v319_v3 = vadd.f32 %v691_v25, %v280_v58  ;;  %v281_v5 = vadd.f32 %v249_v53, %v146_v59  ;;  %v455_v7 = vunpack.c.h.bf16 %v558_v50  ;;  %v562_v58 = vld [vmem:[%s903_s0 + $0x58] sm:$0xff]  }
  0x1d   :  { %v147_v9 = vadd.f32 %v666_v6, %v108_v60  ;;  %v109_v10 = vmul.f32 %v454_v62, %v653_v1  ;;  %v251_v11 = vmul.f32 %v518_v63, %v661_v4  ;;  %v519_v12 = vunpack.c.h.bf16 %v573_v51  ;;  %v577_v63 = vld [vmem:[%s906_s3 + $0x58] sm:$0xff]  }
  0x1e   :  { %382 = vst [vmem:[#allocation2 + $0x50] sm:$0xff] %v350_v2  ;;  %v351_v13 = vmax.f32 %v319_v3, 0.0  ;;  %v320_v14 = vadd.f32 %v691_v25, %v281_v5  ;;  %v110_v15 = vmul.f32 %v455_v7, %v653_v1  ;;  %v458_v16 = vunpack.c.l.bf16 %v559_v0 }
  0x1f   :  { %v282_v17 = vadd.f32 %v250_v61, %v147_v9  ;;  %v148_v18 = vadd.f32 %v666_v6, %v109_v10  ;;  %v252_v19 = vmul.f32 %v519_v12, %v661_v4  ;;  %v522_v20 = vunpack.c.l.bf16 %v574_v8 }
  0x20   :  { %383 = vst [vmem:[#allocation2 + $0x58] sm:$0xff] %v351_v13  ;;  %v352_v22 = vmax.f32 %v320_v14, 0.0  ;;  %v149_v23 = vadd.f32 %v666_v6, %v110_v15  ;;  %v111_v24 = vmul.f32 %v458_v16, %v653_v1  ;;  %v459_v26 = vunpack.c.h.bf16 %v559_v0  ;;  %v563_v15 = vld [vmem:[%s903_s0 + $0x60] sm:$0xff]  }
  0x21   :  { %v321_v28 = vadd.f32 %v691_v25, %v282_v17  ;;  %v283_v29 = vadd.f32 %v251_v11, %v148_v18  ;;  %v253_v30 = vmul.f32 %v522_v20, %v661_v4  ;;  %v523_v31 = vunpack.c.h.bf16 %v574_v8  ;;  %v578_v20 = vld [vmem:[%s906_s3 + $0x60] sm:$0xff]  }
  0x22   :  { %384 = vst [vmem:[#allocation2 + $0x60] sm:$0xff] %v352_v22  ;;  %v284_v32 = vadd.f32 %v252_v19, %v149_v23  ;;  %v150_v33 = vadd.f32 %v666_v6, %v111_v24  ;;  %v112_v34 = vmul.f32 %v459_v26, %v653_v1  ;;  %v462_v35 = vunpack.c.l.bf16 %v560_v21 }
  0x23   :  { %v353_v36 = vmax.f32 %v321_v28, 0.0  ;;  %v322_v37 = vadd.f32 %v691_v25, %v283_v29  ;;  %v254_v38 = vmul.f32 %v523_v31, %v661_v4  ;;  %v526_v39 = vunpack.c.l.bf16 %v575_v27 }
  0x24   :  { %v323_v40 = vadd.f32 %v691_v25, %v284_v32  ;;  %v285_v41 = vadd.f32 %v253_v30, %v150_v33  ;;  %v151_v42 = vadd.f32 %v666_v6, %v112_v34  ;;  %v113_v43 = vmul.f32 %v462_v35, %v653_v1 }
  0x25   :  { %385 = vst [vmem:[#allocation2 + $0x68] sm:$0xff] %v353_v36  ;;  %v354_v46 = vmax.f32 %v322_v37, 0.0  ;;  %v255_v47 = vmul.f32 %v526_v39, %v661_v4  ;;  %v463_v48 = vunpack.c.h.bf16 %v560_v21  ;;  %v527_v49 = vunpack.c.h.bf16 %v575_v27  ;;  %v579_v39 = vld [vmem:[%s906_s3 + $0x68] sm:$0xff]  }
  0x26   :  { %v355_v50 = vmax.f32 %v323_v40, 0.0  ;;  %v324_v51 = vadd.f32 %v691_v25, %v285_v41  ;;  %v286_v52 = vadd.f32 %v254_v38, %v151_v42  ;;  %v152_v53 = vadd.f32 %v666_v6, %v113_v43  ;;  %v564_v38 = vld [vmem:[%s903_s0 + $0x68] sm:$0xff]  }
  0x27   :  { %386 = vst [vmem:[#allocation2 + $0x70] sm:$0xff] %v354_v46  ;;  %v114_v54 = vmul.f32 %v463_v48, %v653_v1  ;;  %v256_v55 = vmul.f32 %v527_v49, %v661_v4  ;;  %v466_v56 = vunpack.c.l.bf16 %v561_v44  ;;  %v530_v57 = vunpack.c.l.bf16 %v576_v45 }
  0x28   :  { %387 = vst [vmem:[#allocation2 + $0x78] sm:$0xff] %v355_v50  ;;  %v356_v59 = vmax.f32 %v324_v51, 0.0  ;;  %v325_v60 = vadd.f32 %v691_v25, %v286_v52  ;;  %v287_v61 = vadd.f32 %v255_v47, %v152_v53  ;;  %v467_v62 = vunpack.c.h.bf16 %v561_v44  ;;  %v565_v52 = vld [vmem:[%s903_s0 + $0x70] sm:$0xff]  }
  0x29   :  { %v153_v0 = vadd.f32 %v666_v6, %v114_v54  ;;  %v115_v2 = vmul.f32 %v466_v56, %v653_v1  ;;  %v257_v3 = vmul.f32 %v530_v57, %v661_v4  ;;  %v531_v5 = vunpack.c.h.bf16 %v576_v45  ;;  %v580_v57 = vld [vmem:[%s906_s3 + $0x70] sm:$0xff]  }
  0x2a   :  { %388 = vst [vmem:[#allocation2 + $0x80] sm:$0xff] %v356_v59  ;;  %v357_v7 = vmax.f32 %v325_v60, 0.0  ;;  %v326_v8 = vadd.f32 %v691_v25, %v287_v61  ;;  %v116_v9 = vmul.f32 %v467_v62, %v653_v1  ;;  %v470_v10 = vunpack.c.l.bf16 %v562_v58 }
  0x2b   :  { %v288_v11 = vadd.f32 %v256_v55, %v153_v0  ;;  %v154_v12 = vadd.f32 %v666_v6, %v115_v2  ;;  %v258_v13 = vmul.f32 %v531_v5, %v661_v4  ;;  %v534_v14 = vunpack.c.l.bf16 %v577_v63 }
  0x2c   :  { %389 = vst [vmem:[#allocation2 + $0x88] sm:$0xff] %v357_v7  ;;  %v358_v16 = vmax.f32 %v326_v8, 0.0  ;;  %v155_v17 = vadd.f32 %v666_v6, %v116_v9  ;;  %v117_v18 = vmul.f32 %v470_v10, %v653_v1  ;;  %v471_v19 = vunpack.c.h.bf16 %v562_v58  ;;  %v566_v9 = vld [vmem:[%s903_s0 + $0x78] sm:$0xff]   ;;  %s609_s0 = smov [#allocation2]  }
  0x2d   :  { %v327_v21 = vadd.f32 %v691_v25, %v288_v11  ;;  %v289_v22 = vadd.f32 %v257_v3, %v154_v12  ;;  %v259_v23 = vmul.f32 %v534_v14, %v661_v4  ;;  %v535_v24 = vunpack.c.h.bf16 %v577_v63  ;;  %v581_v14 = vld [vmem:[%s906_s3 + $0x78] sm:$0xff]   ;;  %s409_s3 = sshll.u32 %s609_s0, 4  ;;  %s410_s3 = int_to_ptr.vmem [resolvable:$true] %s409_s3 }
  0x2e   :  { %390 = vst [vmem:[#allocation2 + $0x90] sm:$0xff] %v358_v16  ;;  %v290_v26 = vadd.f32 %v258_v13, %v155_v17  ;;  %v156_v27 = vadd.f32 %v666_v6, %v117_v18  ;;  %v118_v28 = vmul.f32 %v471_v19, %v653_v1  ;;  %v474_v29 = vunpack.c.l.bf16 %v563_v15  ;;  %s585_s2 = scalar_lea.vmem %s410_s3, 4096  ;;  %p590_p1 = scmp.lt.s32.totalorder %s410_s3, %s410_s3 }
  0x2f   :  { %v359_v30 = vmax.f32 %v327_v21, 0.0  ;;  %v328_v31 = vadd.f32 %v691_v25, %v289_v22  ;;  %v260_v32 = vmul.f32 %v535_v24, %v661_v4  ;;  %v538_v33 = vunpack.c.l.bf16 %v578_v20  ;;  %p586_p0 = scmp.ne.s32.totalorder %s410_s3, %s585_s2  ;;  %p591_p2 = scmp.lt.s32.totalorder %s585_s2, %s585_s2 }
  0x30   :  { %v329_v34 = vadd.f32 %v691_v25, %v290_v26  ;;  %v291_v35 = vadd.f32 %v259_v23, %v156_v27  ;;  %v157_v36 = vadd.f32 %v666_v6, %v118_v28  ;;  %v119_v37 = vmul.f32 %v474_v29, %v653_v1 }
  0x31   :  { %391 = vst [vmem:[#allocation2 + $0x98] sm:$0xff] %v359_v30  ;;  %v360_v40 = vmax.f32 %v328_v31, 0.0  ;;  %v261_v41 = vmul.f32 %v538_v33, %v661_v4  ;;  %v475_v42 = vunpack.c.h.bf16 %v563_v15  ;;  %v539_v43 = vunpack.c.h.bf16 %v578_v20  ;;  %p592_p3 = por %p591_p2, %p590_p1 }
  0x32   :  { %v361_v44 = vmax.f32 %v329_v34, 0.0  ;;  %v330_v45 = vadd.f32 %v691_v25, %v291_v35  ;;  %v292_v46 = vadd.f32 %v260_v32, %v157_v36  ;;  %v158_v47 = vadd.f32 %v666_v6, %v119_v37 }
  0x33   :  { %392 = vst [vmem:[#allocation2 + $0xa0] sm:$0xff] %v360_v40  ;;  %v120_v48 = vmul.f32 %v475_v42, %v653_v1  ;;  %v262_v49 = vmul.f32 %v539_v43, %v661_v4  ;;  %v478_v50 = vunpack.c.l.bf16 %v564_v38  ;;  %v542_v51 = vunpack.c.l.bf16 %v579_v39  ;;  %p593_p4 = pnand %p592_p3, %p586_p0 }
  0x34   :  { %393 = vst [vmem:[#allocation2 + $0xa8] sm:$0xff] %v361_v44  ;;  %v362_v53 = vmax.f32 %v330_v45, 0.0  ;;  %v331_v54 = vadd.f32 %v691_v25, %v292_v46  ;;  %v293_v55 = vadd.f32 %v261_v41, %v158_v47  ;;  %v479_v56 = vunpack.c.h.bf16 %v564_v38 }
  0x35   :  { %v159_v58 = vadd.f32 %v666_v6, %v120_v48  ;;  %v121_v59 = vmul.f32 %v478_v50, %v653_v1  ;;  %v263_v60 = vmul.f32 %v542_v51, %v661_v4  ;;  %v543_v61 = vunpack.c.h.bf16 %v579_v39 }
  0x36   :  { %394 = vst [vmem:[#allocation2 + $0xb0] sm:$0xff] %v362_v53  ;;  %v363_v62 = vmax.f32 %v331_v54, 0.0  ;;  %v332_v63 = vadd.f32 %v691_v25, %v293_v55  ;;  %v122_v0 = vmul.f32 %v479_v56, %v653_v1  ;;  %v482_v2 = vunpack.c.l.bf16 %v565_v52 }
  0x37   :  { %v294_v3 = vadd.f32 %v262_v49, %v159_v58  ;;  %v160_v5 = vadd.f32 %v666_v6, %v121_v59  ;;  %v264_v7 = vmul.f32 %v543_v61, %v661_v4  ;;  %v546_v8 = vunpack.c.l.bf16 %v580_v57 }
  0x38   :  { %395 = vst [vmem:[#allocation2 + $0xb8] sm:$0xff] %v363_v62  ;;  %v364_v10 = vmax.f32 %v332_v63, 0.0  ;;  %v161_v11 = vadd.f32 %v666_v6, %v122_v0  ;;  %v123_v12 = vmul.f32 %v482_v2, %v653_v1  ;;  %v483_v13 = vunpack.c.h.bf16 %v565_v52 }
  0x39   :  { %v333_v15 = vadd.f32 %v691_v25, %v294_v3  ;;  %v295_v16 = vadd.f32 %v263_v60, %v160_v5  ;;  %v265_v17 = vmul.f32 %v546_v8, %v661_v4  ;;  %v547_v18 = vunpack.c.h.bf16 %v580_v57 }
  0x3a   :  { %396 = vst [vmem:[#allocation2 + $0xc0] sm:$0xff] %v364_v10  ;;  %v296_v19 = vadd.f32 %v264_v7, %v161_v11  ;;  %v162_v20 = vadd.f32 %v666_v6, %v123_v12  ;;  %v124_v21 = vmul.f32 %v483_v13, %v653_v1  ;;  %v486_v22 = vunpack.c.l.bf16 %v566_v9 }
  0x3b   :  { %v365_v23 = vmax.f32 %v333_v15, 0.0  ;;  %v334_v24 = vadd.f32 %v691_v25, %v295_v16  ;;  %v266_v26 = vmul.f32 %v547_v18, %v661_v4  ;;  %v550_v27 = vunpack.c.l.bf16 %v581_v14 }
  0x3c   :  { %v335_v28 = vadd.f32 %v691_v25, %v296_v19  ;;  %v297_v29 = vadd.f32 %v265_v17, %v162_v20  ;;  %v163_v30 = vadd.f32 %v666_v6, %v124_v21  ;;  %v125_v31 = vmul.f32 %v486_v22, %v653_v1 }
  0x3d   :  { %397 = vst [vmem:[#allocation2 + $0xc8] sm:$0xff] %v365_v23  ;;  %v366_v32 = vmax.f32 %v334_v24, 0.0  ;;  %v267_v33 = vmul.f32 %v550_v27, %v661_v4  ;;  %v487_v34 = vunpack.c.h.bf16 %v566_v9  ;;  %v551_v35 = vunpack.c.h.bf16 %v581_v14 }
  0x3e   :  { %v367_v36 = vmax.f32 %v335_v28, 0.0  ;;  %v336_v37 = vadd.f32 %v691_v25, %v297_v29  ;;  %v298_v38 = vadd.f32 %v266_v26, %v163_v30  ;;  %v164_v39 = vadd.f32 %v666_v6, %v125_v31 }
  0x3f   :  { %398 = vst [vmem:[#allocation2 + $0xd0] sm:$0xff] %v366_v32  ;;  %v126_v40 = vmul.f32 %v487_v34, %v653_v1  ;;  %v268_v41 = vmul.f32 %v551_v35, %v661_v4 }
  0x40   :  { %399 = vst [vmem:[#allocation2 + $0xd8] sm:$0xff] %v367_v36  ;;  %v368_v42 = vmax.f32 %v336_v37, 0.0  ;;  %v337_v43 = vadd.f32 %v691_v25, %v298_v38  ;;  %v299_v44 = vadd.f32 %v267_v33, %v164_v39 }
  0x41   :  { %v165_v45 = vadd.f32 %v666_v6, %v126_v40 }
  0x42   :  { %400 = vst [vmem:[#allocation2 + $0xe0] sm:$0xff] %v368_v42  ;;  %v369_v46 = vmax.f32 %v337_v43, 0.0  ;;  %v338_v47 = vadd.f32 %v691_v25, %v299_v44 }
  0x43   :  { %v300_v48 = vadd.f32 %v268_v41, %v165_v45 }
  0x44   :  { %401 = vst [vmem:[#allocation2 + $0xe8] sm:$0xff] %v369_v46  ;;  %v370_v49 = vmax.f32 %v338_v47, 0.0 }
  0x45   :  { %v339_v1 = vadd.f32 %v691_v25, %v300_v48 }
  0x46   :  { %402 = vst [vmem:[#allocation2 + $0xf0] sm:$0xff] %v370_v49 }
  0x47   :  { %v371_v4 = vmax.f32 %v339_v1, 0.0 }
  0x49   :  { %403 = vst [vmem:[#allocation2 + $0xf8] sm:$0xff] %v371_v4 }
  0x4a   :  { %596 = shalt.err (!%p593_p4)
}
  0x4b   :  { %s597_s13 = scalar_lea.hbm %s909_s6, 4096 }
  0x4c   :  { %p598_p5 = scmp.ne.s32.totalorder %s909_s6, %s597_s13  ;;  %p601_p6 = scmp.lt.u32.totalorder %s597_s13, %s909_s6 }
  0x4e   :  { %p603_p7 = pnand %p601_p6, %p598_p5 }
  0x50   :  { %606 = shalt.err (!%p603_p7)
}
  0x51   :  { %s610_s17 = smov 128   ;;  %s611_s18 = smov 8  }
  0x52   :  { %415 = dma.vmem_to_hbm [thread:$0]  %s410_s3, 4096, %s909_s6, [#allocation3], %s610_s17, %s610_s17, %s611_s18  }
  0x53   :  { %607 = dma.done.wait [#allocation3], 4096  }
  0x54   :  { %608 = vsyncadd [#allocation3], 4294963200 }
  0x55   :  { %419 = vsyncpa [#allocation3], 1 }

// kernel: bottleneck_forward.6
= control target key start
LH: loop header
LB: loop body
LE: loop exit
PB: predicated region body
PF: predicated region fallthrough
CT: control target
= control target key end

     0   :  { %vm1229_vm0 = vcmask 1040384   ;;  %s2350_s3 = inlined_call_operand.vmem [shape: bf16[128,128], index: 3, kind: input, shape index: {}]   ;;  %s2351_s5 = inlined_call_operand.vmem [shape: bf16[128,128], index: 5, kind: input, shape index: {}]   ;;  %s2352_s0 = inlined_call_operand.vmem [shape: bf16[256,128], index: 0, kind: input, shape index: {}]   ;;  %s2353_s1 = inlined_call_operand.vmem [shape: f32[1,128], index: 1, kind: input, shape index: {}]   ;;  %s2354_s2 = inlined_call_operand.vmem [shape: f32[1,128], index: 2, kind: input, shape index: {}]   ;;  %s2355_s4 = inlined_call_operand.vmem [shape: bf16[256,128], index: 4, kind: input, shape index: {}]   ;;  %s2356_s8 = inlined_call_operand.vmem [shape: f32[2,128], index: 8, kind: output, shape index: {2}]   ;;  %s2357_s9 = inlined_call_operand.vmem [shape: f32[2,128], index: 9, kind: output, shape index: {3}]   ;;  %s2358_s6 = inlined_call_operand.vmem [shape: bf16[256,128], index: 6, kind: output, shape index: {0}]   ;;  %s2359_s7 = inlined_call_operand.vmem [shape: bf16[256,128], index: 7, kind: output, shape index: {1}]  }
   0x1   :  { %v1935_v0 = vld [vmem:[%s2350_s3] sm:$0xff]   ;;  %v1937_v2 = vld [vmem:[%s2350_s3 + $0x8] sm:$0xff]   ;;  %v1939_v4 = vld [vmem:[%s2350_s3 + $0x10] sm:$0xff]  }
   0x2   :  { %v1936_v1 = vld [vmem:[%s2351_s5] sm:$0xff]   ;;  %1838 = vmatprep.subr.bf16.mxu0 %v1935_v0  ;;  %v1938_v3 = vld [vmem:[%s2351_s5 + $0x8] sm:$0xff]   ;;  %v1940_v5 = vld [vmem:[%s2351_s5 + $0x10] sm:$0xff]  }
   0x3   :  { %1886 = vmatprep.subr.bf16.mxu1 %v1936_v1  ;;  %1839 = vmatpush3.bf16.msra.mxu0 %v1935_v0  ;;  %v1941_v6 = vld [vmem:[%s2350_s3 + $0x18] sm:$0xff]   ;;  %v1943_v8 = vld [vmem:[%s2350_s3 + $0x20] sm:$0xff]   ;;  %v1945_v10 = vld [vmem:[%s2350_s3 + $0x28] sm:$0xff]  }
   0x4   :  { %1887 = vmatpush3.bf16.msra.mxu1 %v1936_v1  ;;  %1840 = vmatprep.subr.bf16.mxu0 %v1937_v2  ;;  %v1942_v7 = vld [vmem:[%s2351_s5 + $0x18] sm:$0xff]   ;;  %v1944_v9 = vld [vmem:[%s2351_s5 + $0x20] sm:$0xff]   ;;  %v1946_v11 = vld [vmem:[%s2351_s5 + $0x28] sm:$0xff]  }
   0x5   :  { %1888 = vmatprep.subr.bf16.mxu1 %v1938_v3  ;;  %v1522_v12 = vld [vmem:[%s2352_s0] sm:$0xff]   ;;  %v1745_v18 = vld [vmem:[%s2352_s0 + $0x8] sm:$0xff]   ;;  %v1746_v23 = vld [vmem:[%s2352_s0 + $0x10] sm:$0xff]  }
   0x6   :  { %v2060_v13 = vld [vmem:[%s2353_s1] ss:$0 sm:$0xff]  ;;  %v1523_v15 = vunpack.c.l.bf16 %v1522_v12  ;;  %v1524_v16 = vunpack.c.h.bf16 %v1522_v12  ;;  %v1527_v21 = vunpack.c.l.bf16 %v1745_v18  ;;  %v1528_v22 = vunpack.c.h.bf16 %v1745_v18  ;;  %v1947_v24 = vld [vmem:[%s2350_s3 + $0x30] sm:$0xff]   ;;  %v1747_v27 = vld [vmem:[%s2352_s0 + $0x18] sm:$0xff]  }
   0x7   :  { %1841 = vmatpush3.bf16.msra.mxu0 %v1937_v2  ;;  %v2065_v14 = vld [vmem:[%s2354_s2] ss:$0 sm:$0xff]  ;;  %v1531_v25 = vunpack.c.l.bf16 %v1746_v23  ;;  %v1532_v26 = vunpack.c.h.bf16 %v1746_v23  ;;  %v1948_v28 = vld [vmem:[%s2351_s5 + $0x30] sm:$0xff]   ;;  %v1535_v35 = vunpack.c.l.bf16 %v1747_v27  ;;  %v1536_v36 = vunpack.c.h.bf16 %v1747_v27  ;;  %v1949_v42 = vld [vmem:[%s2350_s3 + $0x38] sm:$0xff]  }
   0x8   :  { %1889 = vmatpush3.bf16.msra.mxu1 %v1938_v3  ;;  %1842 = vmatprep.subr.bf16.mxu0 %v1939_v4  ;;  %v1951_v17 = vld [vmem:[%s2355_s4] sm:$0xff]   ;;  %v105_v19 = vmul.f32 %v1523_v15, %v2060_v13  ;;  %v106_v20 = vmul.f32 %v1524_v16, %v2060_v13  ;;  %v107_v31 = vmul.f32 %v1527_v21, %v2060_v13  ;;  %v1950_v43 = vld [vmem:[%s2351_s5 + $0x38] sm:$0xff]   ;;  %v1749_v55 = vld [vmem:[%s2352_s0 + $0x28] sm:$0xff]  }
   0x9   :  { %1890 = vmatprep.subr.bf16.mxu1 %v1940_v5  ;;  %1902 = vmatprep.mubr.bf16.mxu1 %v1951_v17  ;;  %v108_v32 = vmul.f32 %v1528_v22, %v2060_v13  ;;  %v109_v33 = vmul.f32 %v1531_v25, %v2060_v13  ;;  %v110_v34 = vmul.f32 %v1532_v26, %v2060_v13  ;;  %v1748_v37 = vld [vmem:[%s2352_s0 + $0x20] sm:$0xff]   ;;  %v1750_v58 = vld [vmem:[%s2352_s0 + $0x30] sm:$0xff]   ;;  %v1543_v59 = vunpack.c.l.bf16 %v1749_v55  ;;  %v1952_v1 = vld [vmem:[%s2355_s4 + $0x8] sm:$0xff]  }
   0xa   :  { %v144_v29 = vadd.f32 %v2065_v14, %v105_v19  ;;  %v145_v30 = vadd.f32 %v2065_v14, %v106_v20  ;;  %v146_v40 = vadd.f32 %v2065_v14, %v107_v31  ;;  %v1539_v46 = vunpack.c.l.bf16 %v1748_v37  ;;  %v1752_v18 = vld [vmem:[%s2352_s0 + $0x40] sm:$0xff]   ;;  %v1954_v25 = vld [vmem:[%s2355_s4 + $0x18] sm:$0xff]  }
   0xb   :  { %1843 = vmatpush3.bf16.msra.mxu0 %v1939_v4  ;;  %v147_v41 = vadd.f32 %v2065_v14, %v108_v32  ;;  %v148_v44 = vadd.f32 %v2065_v14, %v109_v33  ;;  %v149_v45 = vadd.f32 %v2065_v14, %v110_v34  ;;  %v111_v50 = vmul.f32 %v1535_v35, %v2060_v13 }
   0xc   :  { %1891 = vmatpush3.bf16.msra.mxu1 %v1940_v5  ;;  %1844 = vmatprep.subr.bf16.mxu0 %v1941_v6  ;;  %v176_v38 = vmax.f32 %v144_v29, 0.0  ;;  %v177_v39 = vmax.f32 %v145_v30, 0.0  ;;  %v178_v48 = vmax.f32 %v146_v40, 0.0  ;;  %v112_v53 = vmul.f32 %v1536_v36, %v2060_v13  ;;  %v1955_v30 = vld [vmem:[%s2355_s4 + $0x20] sm:$0xff]   ;;  %v1754_v40 = vld [vmem:[%s2352_s0 + $0x50] sm:$0xff]  }
   0xd   :  { %1892 = vmatprep.subr.bf16.mxu1 %v1942_v7  ;;  %v179_v49 = vmax.f32 %v147_v41, 0.0  ;;  %v180_v51 = vmax.f32 %v148_v44, 0.0  ;;  %v181_v52 = vmax.f32 %v149_v45, 0.0  ;;  %v1540_v54 = vunpack.c.h.bf16 %v1748_v37 }
   0xe   :  { %v208_v47 = vpack.c.bf16 %v177_v39, %v176_v38  ;;  %v113_v56 = vmul.f32 %v1539_v46, %v2060_v13  ;;  %v1544_v60 = vunpack.c.h.bf16 %v1749_v55  ;;  %v150_v63 = vadd.f32 %v2065_v14, %v111_v50  ;;  %v1753_v39 = vld [vmem:[%s2352_s0 + $0x48] sm:$0xff]  }
   0xf   :  { %1845 = vmatpush3.bf16.msra.mxu0 %v1941_v6  ;;  %v114_v57 = vmul.f32 %v1540_v54, %v2060_v13  ;;  %v209_v61 = vpack.c.bf16 %v179_v49, %v178_v48  ;;  %v210_v62 = vpack.c.bf16 %v181_v52, %v180_v51  ;;  %v151_v0 = vadd.f32 %v2065_v14, %v112_v53  ;;  %v1953_v6 = vld [vmem:[%s2355_s4 + $0x10] sm:$0xff]  }
  0x10   :  { %1893 = vmatpush3.bf16.msra.mxu1 %v1942_v7  ;;  %1846 = vmatprep.subr.bf16.mxu0 %v1943_v8  ;;  %v152_v2 = vadd.f32 %v2065_v14, %v113_v56  ;;  %v1547_v4 = vunpack.c.l.bf16 %v1750_v58  ;;  %v1548_v5 = vunpack.c.h.bf16 %v1750_v58  ;;  %v115_v7 = vmul.f32 %v1543_v59, %v2060_v13  ;;  %v1957_v52 = vld [vmem:[%s2355_s4 + $0x30] sm:$0xff]  }
  0x11   :  { %1894 = vmatprep.subr.bf16.mxu1 %v1944_v9  ;;  %1854 = vmatprep.mubr.bf16.mxu0 %v208_v47  ;;  %v153_v3 = vadd.f32 %v2065_v14, %v114_v57  ;;  %v1556_v29 = vunpack.c.h.bf16 %v1752_v18  ;;  %v1559_v45 = vunpack.c.l.bf16 %v1753_v39  ;;  %v1560_v46 = vunpack.c.h.bf16 %v1753_v39  ;;  %v1956_v47 = vld [vmem:[%s2355_s4 + $0x28] sm:$0xff]   ;;  %v1755_v57 = vld [vmem:[%s2352_s0 + $0x58] sm:$0xff]  }
  0x12   :  { %v184_v12 = vmax.f32 %v152_v2, 0.0  ;;  %v117_v16 = vmul.f32 %v1547_v4, %v2060_v13  ;;  %v118_v17 = vmul.f32 %v1548_v5, %v2060_v13  ;;  %v154_v19 = vadd.f32 %v2065_v14, %v115_v7  ;;  %v1958_v5 = vld [vmem:[%s2355_s4 + $0x38] sm:$0xff]  }
  0x13   :  { %1847 = vmatpush3.bf16.msra.mxu0 %v1943_v8  ;;  %v116_v8 = vmul.f32 %v1544_v60, %v2060_v13  ;;  %v185_v15 = vmax.f32 %v153_v3, 0.0  ;;  %v122_v38 = vmul.f32 %v1556_v29, %v2060_v13  ;;  %v1563_v50 = vunpack.c.l.bf16 %v1754_v40  ;;  %v1960_v29 = vld [vmem:[%s2355_s4 + $0x48] sm:$0xff]  }
  0x14   :  { %1895 = vmatpush3.bf16.msra.mxu1 %v1944_v9  ;;  %1848 = vmatprep.subr.bf16.mxu0 %v1945_v10  ;;  %v182_v9 = vmax.f32 %v150_v63, 0.0  ;;  %v156_v27 = vadd.f32 %v2065_v14, %v117_v16  ;;  %v186_v31 = vmax.f32 %v154_v19, 0.0  ;;  %v1564_v51 = vunpack.c.h.bf16 %v1754_v40 }
  0x15   :  { %1896 = vmatprep.subr.bf16.mxu1 %v1946_v11  ;;  %v155_v20 = vadd.f32 %v2065_v14, %v116_v8  ;;  %v212_v26 = vpack.c.bf16 %v185_v15, %v184_v12  ;;  %v161_v49 = vadd.f32 %v2065_v14, %v122_v38  ;;  %v123_v55 = vmul.f32 %v1559_v45, %v2060_v13 }
  0x16   :  { %v188_v36 = vmax.f32 %v156_v27, 0.0  ;;  %v124_v56 = vmul.f32 %v1560_v46, %v2060_v13  ;;  %v125_v60 = vmul.f32 %v1563_v50, %v2060_v13  ;;  %v1567_v63 = vunpack.c.l.bf16 %v1755_v57 }
  0x17   :  { %1849 = vmatpush3.bf16.msra.mxu0 %v1945_v10  ;;  %v183_v10 = vmax.f32 %v151_v0, 0.0  ;;  %v187_v32 = vmax.f32 %v155_v20, 0.0  ;;  %v193_v59 = vmax.f32 %v161_v49, 0.0  ;;  %v1568_v0 = vunpack.c.h.bf16 %v1755_v57  ;;  %v1962_v49 = vld [vmem:[%s2355_s4 + $0x58] sm:$0xff]  }
  0x18   :  { %1897 = vmatpush3.bf16.msra.mxu1 %v1946_v11  ;;  %1850 = vmatprep.subr.bf16.mxu0 %v1947_v24  ;;  %v1751_v11 = vld [vmem:[%s2352_s0 + $0x38] sm:$0xff]   ;;  %v162_v2 = vadd.f32 %v2065_v14, %v123_v55  ;;  %v163_v3 = vadd.f32 %v2065_v14, %v124_v56  ;;  %v164_v7 = vadd.f32 %v2065_v14, %v125_v60 }
  0x19   :  { %1898 = vmatprep.subr.bf16.mxu1 %v1948_v28  ;;  %v1551_v21 = vunpack.c.l.bf16 %v1751_v11  ;;  %v211_v22 = vpack.c.bf16 %v183_v10, %v182_v9  ;;  %v1552_v23 = vunpack.c.h.bf16 %v1751_v11  ;;  %v213_v41 = vpack.c.bf16 %v187_v32, %v186_v31  ;;  %v1959_v10 = vld [vmem:[%s2355_s4 + $0x40] sm:$0xff]  }
  0x1a   :  { %v127_v11 = vmul.f32 %v1567_v63, %v2060_v13  ;;  %v128_v12 = vmul.f32 %v1568_v0, %v2060_v13  ;;  %v194_v15 = vmax.f32 %v162_v2, 0.0  ;;  %v195_v16 = vmax.f32 %v163_v3, 0.0  ;;  %v1964_v63 = vld [vmem:[%s2355_s4 + $0x68] sm:$0xff]  }
  0x1b   :  { %1851 = vmatpush3.bf16.msra.mxu0 %v1947_v24  ;;  %v1555_v24 = vunpack.c.l.bf16 %v1752_v18  ;;  %v119_v33 = vmul.f32 %v1551_v21, %v2060_v13  ;;  %v120_v34 = vmul.f32 %v1552_v23, %v2060_v13  ;;  %v196_v18 = vmax.f32 %v164_v7, 0.0  ;;  %v1757_v21 = vld [vmem:[%s2352_s0 + $0x68] sm:$0xff]  }
  0x1c   :  { %1899 = vmatpush3.bf16.msra.mxu1 %v1948_v28  ;;  %1852 = vmatprep.subr.bf16.mxu0 %v1949_v42  ;;  %v157_v28 = vadd.f32 %v2065_v14, %v118_v17  ;;  %v166_v23 = vadd.f32 %v2065_v14, %v127_v11  ;;  %v1575_v27 = vunpack.c.l.bf16 %v1757_v21 }
  0x1d   :  { %1900 = vmatprep.subr.bf16.mxu1 %v1950_v43  ;;  %v121_v35 = vmul.f32 %v1555_v24, %v2060_v13  ;;  %v167_v24 = vadd.f32 %v2065_v14, %v128_v12 }
  0x1e   :  { %v189_v37 = vmax.f32 %v157_v28, 0.0  ;;  %v1576_v28 = vunpack.c.h.bf16 %v1757_v21 }
  0x1f   :  { %1853 = vmatpush3.bf16.msra.mxu0 %v1949_v42  ;;  %v158_v42 = vadd.f32 %v2065_v14, %v119_v33  ;;  %v160_v44 = vadd.f32 %v2065_v14, %v121_v35  ;;  %v198_v35 = vmax.f32 %v166_v23, 0.0 }
  0x20   :  { %1901 = vmatpush3.bf16.msra.mxu1 %v1950_v43  ;;  %v159_v43 = vadd.f32 %v2065_v14, %v120_v34  ;;  %v214_v48 = vpack.c.bf16 %v189_v37, %v188_v36  ;;  %v1961_v34 = vld [vmem:[%s2355_s4 + $0x50] sm:$0xff]   ;;  %v199_v36 = vmax.f32 %v167_v24, 0.0  ;;  %v131_v37 = vmul.f32 %v1575_v27, %v2060_v13 }
  0x21   :  { %v190_v53 = vmax.f32 %v158_v42, 0.0  ;;  %v192_v58 = vmax.f32 %v160_v44, 0.0  ;;  %v132_v38 = vmul.f32 %v1576_v28, %v2060_v13 }
  0x22   :  { %1855 = vmatmul.mubr.bf16.vlgmr.msra.gmra.mrb[0].mxu0 %v209_v61  ;;  %v191_v54 = vmax.f32 %v159_v43, 0.0  ;;  %v126_v61 = vmul.f32 %v1564_v51, %v2060_v13  ;;  %v1759_v43 = vld [vmem:[%s2352_s0 + $0x78] sm:$0xff]   ;;  %v219_v44 = vpack.c.bf16 %v199_v36, %v198_v35  ;;  %v170_v45 = vadd.f32 %v2065_v14, %v131_v37 }
  0x23   :  { %1903 = vmatmul.mubr.bf16.vlgmr.msra.gmra.mrb[0].mxu1 %v1952_v1  ;;  %1858 = vmatprep.mubr.bf16.mxu0 %v210_v62  ;;  %v1756_v62 = vld [vmem:[%s2352_s0 + $0x60] sm:$0xff]   ;;  %v171_v46 = vadd.f32 %v2065_v14, %v132_v38 }
  0x24   :  { %1906 = vmatprep.mubr.bf16.mxu1 %v1953_v6  ;;  %v215_v1 = vpack.c.bf16 %v191_v54, %v190_v53  ;;  %v1571_v4 = vunpack.c.l.bf16 %v1756_v62  ;;  %v216_v6 = vpack.c.bf16 %v193_v59, %v192_v58  ;;  %v165_v8 = vadd.f32 %v2065_v14, %v126_v61  ;;  %v1963_v53 = vld [vmem:[%s2355_s4 + $0x60] sm:$0xff]  }
  0x25   :  { %v1572_v9 = vunpack.c.h.bf16 %v1756_v62  ;;  %v202_v54 = vmax.f32 %v170_v45, 0.0  ;;  %v203_v55 = vmax.f32 %v171_v46, 0.0 }
  0x26   :  { %v129_v17 = vmul.f32 %v1571_v4, %v2060_v13  ;;  %v197_v19 = vmax.f32 %v165_v8, 0.0  ;;  %v1967_v4 = vmov 0.0  }
  0x27   :  { %v130_v20 = vmul.f32 %v1572_v9, %v2060_v13  ;;  %v221_v60 = vpack.c.bf16 %v203_v55, %v202_v54  ;;  %32 = vst [vmem:[%s2356_s8] sm:$0x3] %v1967_v4  ;;  %33 = vst [vmem:[%s2357_s9] sm:$0x3] %v1967_v4 }
  0x29   :  { %v169_v31 = vadd.f32 %v2065_v14, %v130_v20 }
  0x2a   :  { %1859 = vmatmul.mubr.bf16.gmra.mrb[4].mxu0 %v211_v22  ;;  %v1758_v22 = vld [vmem:[%s2352_s0 + $0x70] sm:$0xff]  }
  0x2b   :  { %1907 = vmatmul.mubr.bf16.gmra.mrb[4].mxu1 %v1954_v25  ;;  %1862 = vmatprep.mubr.bf16.mxu0 %v212_v26  ;;  %v217_v25 = vpack.c.bf16 %v195_v16, %v194_v15  ;;  %v168_v26 = vadd.f32 %v2065_v14, %v129_v17  ;;  %v1579_v32 = vunpack.c.l.bf16 %v1758_v22  ;;  %v1580_v33 = vunpack.c.h.bf16 %v1758_v22 }
  0x2c   :  { %1910 = vmatprep.mubr.bf16.mxu1 %v1955_v30  ;;  %v218_v30 = vpack.c.bf16 %v197_v19, %v196_v18  ;;  %v201_v40 = vmax.f32 %v169_v31, 0.0 }
  0x2d   :  { %v200_v39 = vmax.f32 %v168_v26, 0.0  ;;  %v134_v42 = vmul.f32 %v1580_v33, %v2060_v13 }
  0x2f   :  { %v220_v50 = vpack.c.bf16 %v201_v40, %v200_v39 }
  0x32   :  { %1863 = vmatmul.mubr.bf16.gmra.mrb[8].mxu0 %v213_v41  ;;  %v133_v41 = vmul.f32 %v1579_v32, %v2060_v13 }
  0x33   :  { %1911 = vmatmul.mubr.bf16.gmra.mrb[8].mxu1 %v1956_v47  ;;  %1866 = vmatprep.mubr.bf16.mxu0 %v214_v48  ;;  %v1583_v47 = vunpack.c.l.bf16 %v1759_v43  ;;  %v1584_v48 = vunpack.c.h.bf16 %v1759_v43 }
  0x34   :  { %1914 = vmatprep.mubr.bf16.mxu1 %v1957_v52  ;;  %v172_v51 = vadd.f32 %v2065_v14, %v133_v41  ;;  %v173_v52 = vadd.f32 %v2065_v14, %v134_v42 }
  0x35   :  { %v135_v56 = vmul.f32 %v1583_v47, %v2060_v13  ;;  %v136_v57 = vmul.f32 %v1584_v48, %v2060_v13 }
  0x36   :  { %v204_v58 = vmax.f32 %v172_v51, 0.0  ;;  %v205_v59 = vmax.f32 %v173_v52, 0.0 }
  0x37   :  { %v174_v61 = vadd.f32 %v2065_v14, %v135_v56  ;;  %v175_v62 = vadd.f32 %v2065_v14, %v136_v57  ;;  %v1966_v14 = vld [vmem:[%s2355_s4 + $0x78] sm:$0xff]  }
  0x38   :  { %v222_v0 = vpack.c.bf16 %v205_v59, %v204_v58 }
  0x39   :  { %v206_v13 = vmax.f32 %v174_v61, 0.0  ;;  %v207_v2 = vmax.f32 %v175_v62, 0.0 }
  0x3a   :  { %1867 = vmatmul.mubr.bf16.gmra.mrb[12].mxu0 %v215_v1  ;;  %v1965_v1 = vld [vmem:[%s2355_s4 + $0x70] sm:$0xff]  }
  0x3b   :  { %1915 = vmatmul.mubr.bf16.gmra.mrb[12].mxu1 %v1958_v5  ;;  %1870 = vmatprep.mubr.bf16.mxu0 %v216_v6  ;;  %v223_v3 = vpack.c.bf16 %v207_v2, %v206_v13 }
  0x3c   :  { %1918 = vmatprep.mubr.bf16.mxu1 %v1959_v10 }
  0x42   :  { %1871 = vmatmul.mubr.bf16.gmra.mrb[16].mxu0 %v217_v25 }
  0x43   :  { %1919 = vmatmul.mubr.bf16.gmra.mrb[16].mxu1 %v1960_v29  ;;  %1874 = vmatprep.mubr.bf16.mxu0 %v218_v30 }
  0x44   :  { %1922 = vmatprep.mubr.bf16.mxu1 %v1961_v34 }
  0x4a   :  { %1875 = vmatmul.mubr.bf16.gmra.mrb[20].mxu0 %v219_v44 }
  0x4b   :  { %1923 = vmatmul.mubr.bf16.gmra.mrb[20].mxu1 %v1962_v49  ;;  %1878 = vmatprep.mubr.bf16.mxu0 %v220_v50 }
  0x4c   :  { %1926 = vmatprep.mubr.bf16.mxu1 %v1963_v53 }
  0x52   :  { %1879 = vmatmul.mubr.bf16.gmra.mrb[24].mxu0 %v221_v60 }
  0x53   :  { %1927 = vmatmul.mubr.bf16.gmra.mrb[24].mxu1 %v1964_v63  ;;  %1882 = vmatprep.mubr.bf16.mxu0 %v222_v0 }
  0x54   :  { %1930 = vmatprep.mubr.bf16.mxu1 %v1965_v1 }
  0x5a   :  { %1883 = vmatmul.mubr.bf16.gmra.mrb[28].mxu0 %v223_v3 }
  0x5b   :  { %1931 = vmatmul.mubr.bf16.gmra.mrb[28].mxu1 %v1966_v14 }
  0xf5   :  { %v1856_v5 = vpop.f32.mrb[0].mxu0 }
  0xf6   :  { %v1904_v6 = vpop.f32.mrb[0].mxu1  ;;  %v322_v7 = vpop.f32.mrb[1].mxu0  ;;  %v1162_v25 = vmul.f32 %v1856_v5, %v1856_v5 }
  0xf7   :  { %v675_v8 = vpop.f32.mrb[1].mxu1  ;;  %v1857_v9 = vpop.f32.mrb[2].mxu0  ;;  %v1160_v10 = vmul.f32 %v322_v7, %v322_v7  ;;  %v1273_v27 = vmul.f32 %v1904_v6, %v1904_v6 }
  0xf8   :  { %v1593_v11 = vpack.c.bf16 %v1857_v9, %v1856_v5  ;;  %v1905_v12 = vpop.f32.mrb[2].mxu1  ;;  %v325_v15 = vpop.f32.mrb[3].mxu0  ;;  %v1271_v16 = vmul.f32 %v675_v8, %v675_v8  ;;  %v1163_v31 = vmul.f32 %v1857_v9, %v1857_v9 }
  0xf9   :  { %v1673_v17 = vpack.c.bf16 %v1905_v12, %v1904_v6  ;;  %v1588_v18 = vpack.c.bf16 %v325_v15, %v322_v7  ;;  %v1123_v19 = vadd.f32 %v325_v15, %v322_v7  ;;  %v678_v20 = vpop.f32.mrb[3].mxu1  ;;  %v1161_v21 = vmul.f32 %v325_v15, %v325_v15 }
  0xfa   :  { %1760 = vst [vmem:[%s2358_s6 + $0x8] sm:$0xff] %v1593_v11   ;;  %v1668_v22 = vpack.c.bf16 %v678_v20, %v675_v8  ;;  %v1234_v23 = vadd.f32 %v678_v20, %v675_v8  ;;  %v1272_v24 = vmul.f32 %v678_v20, %v678_v20  ;;  %v1274_v34 = vmul.f32 %v1905_v12, %v1905_v12 }
  0xfb   :  { %1775 = vst [vmem:[%s2359_s7 + $0x8] sm:$0xff] %v1673_v17   ;;  %1589 = vst [vmem:[%s2358_s6] sm:$0xff] %v1588_v18   ;;  %v1124_v26 = vadd.f32 %v1856_v5, %v1123_v19  ;;  %v1192_v28 = vadd.f32 %v1161_v21, %v1160_v10 }
  0xfc   :  { %1669 = vst [vmem:[%s2359_s7] sm:$0xff] %v1668_v22   ;;  %v1235_v29 = vadd.f32 %v1904_v6, %v1234_v23  ;;  %v1303_v30 = vadd.f32 %v1272_v24, %v1271_v16 }
  0xfd   :  { %v1860_v32 = vpop.f32.mrb[4].mxu0  ;;  %v1125_v33 = vadd.f32 %v1857_v9, %v1124_v26  ;;  %v1193_v35 = vadd.f32 %v1192_v28, %v1162_v25 }
  0xfe   :  { %v1304_v36 = vadd.f32 %v1303_v30, %v1273_v27  ;;  %v1908_v37 = vpop.f32.mrb[4].mxu1  ;;  %v338_v38 = vpop.f32.mrb[5].mxu0  ;;  %v1236_v39 = vadd.f32 %v1905_v12, %v1235_v29  ;;  %v1166_v61 = vmul.f32 %v1860_v32, %v1860_v32 }
  0xff   :  { %v1126_v40 = vadd.f32 %v1125_v33, %v338_v38  ;;  %v1164_v41 = vmul.f32 %v338_v38, %v338_v38  ;;  %v691_v42 = vpop.f32.mrb[5].mxu1  ;;  %v1861_v43 = vpop.f32.mrb[6].mxu0  ;;  %v1194_v44 = vadd.f32 %v1193_v35, %v1163_v31  ;;  %v1277_v63 = vmul.f32 %v1908_v37, %v1908_v37 }
 0x100   :  { %v1237_v45 = vadd.f32 %v1236_v39, %v691_v42  ;;  %v1275_v46 = vmul.f32 %v691_v42, %v691_v42  ;;  %v1305_v47 = vadd.f32 %v1304_v36, %v1274_v34  ;;  %v1909_v48 = vpop.f32.mrb[6].mxu1  ;;  %v341_v49 = vpop.f32.mrb[7].mxu0  ;;  %v1603_v50 = vpack.c.bf16 %v1861_v43, %v1860_v32 }
 0x101   :  { %v1683_v51 = vpack.c.bf16 %v1909_v48, %v1908_v37  ;;  %v694_v52 = vpop.f32.mrb[7].mxu1  ;;  %v1195_v53 = vadd.f32 %v1194_v44, %v1164_v41  ;;  %v1598_v55 = vpack.c.bf16 %v341_v49, %v338_v38  ;;  %v1127_v56 = vadd.f32 %v1126_v40, %v341_v49 }
 0x102   :  { %v1306_v54 = vadd.f32 %v1305_v47, %v1275_v46  ;;  %1762 = vst [vmem:[%s2358_s6 + $0x18] sm:$0xff] %v1603_v50   ;;  %v1165_v57 = vmul.f32 %v341_v49, %v341_v49  ;;  %v1678_v58 = vpack.c.bf16 %v694_v52, %v691_v42  ;;  %v1238_v59 = vadd.f32 %v1237_v45, %v694_v52 }
 0x103   :  { %1777 = vst [vmem:[%s2359_s7 + $0x18] sm:$0xff] %v1683_v51   ;;  %v1276_v60 = vmul.f32 %v694_v52, %v694_v52  ;;  %1761 = vst [vmem:[%s2358_s6 + $0x10] sm:$0xff] %v1598_v55   ;;  %v1128_v62 = vadd.f32 %v1860_v32, %v1127_v56  ;;  %v1167_v3 = vmul.f32 %v1861_v43, %v1861_v43 }
 0x104   :  { %v1196_v0 = vadd.f32 %v1195_v53, %v1165_v57  ;;  %1776 = vst [vmem:[%s2359_s7 + $0x10] sm:$0xff] %v1678_v58   ;;  %v1239_v1 = vadd.f32 %v1908_v37, %v1238_v59  ;;  %v1278_v6 = vmul.f32 %v1909_v48, %v1909_v48 }
 0x105   :  { %v1307_v13 = vadd.f32 %v1306_v54, %v1276_v60  ;;  %v1864_v2 = vpop.f32.mrb[8].mxu0  ;;  %v1129_v5 = vadd.f32 %v1861_v43, %v1128_v62 }
 0x106   :  { %v1912_v14 = vpop.f32.mrb[8].mxu1  ;;  %v354_v4 = vpop.f32.mrb[9].mxu0  ;;  %v1197_v7 = vadd.f32 %v1196_v0, %v1166_v61  ;;  %v1240_v15 = vadd.f32 %v1909_v48, %v1239_v1  ;;  %v1170_v34 = vmul.f32 %v1864_v2, %v1864_v2 }
 0x107   :  { %v1308_v8 = vadd.f32 %v1307_v13, %v1277_v63  ;;  %v1168_v9 = vmul.f32 %v354_v4, %v354_v4  ;;  %v707_v10 = vpop.f32.mrb[9].mxu1  ;;  %v1865_v11 = vpop.f32.mrb[10].mxu0  ;;  %v1130_v12 = vadd.f32 %v1129_v5, %v354_v4  ;;  %v1281_v37 = vmul.f32 %v1912_v14, %v1912_v14 }
 0x108   :  { %v1279_v16 = vmul.f32 %v707_v10, %v707_v10  ;;  %v1613_v17 = vpack.c.bf16 %v1865_v11, %v1864_v2  ;;  %v1913_v18 = vpop.f32.mrb[10].mxu1  ;;  %v357_v19 = vpop.f32.mrb[11].mxu0  ;;  %v1198_v20 = vadd.f32 %v1197_v7, %v1167_v3  ;;  %v1241_v24 = vadd.f32 %v1240_v15, %v707_v10 }
 0x109   :  { %v1309_v21 = vadd.f32 %v1308_v8, %v1278_v6  ;;  %v1693_v22 = vpack.c.bf16 %v1913_v18, %v1912_v14  ;;  %v710_v23 = vpop.f32.mrb[11].mxu1  ;;  %v1608_v25 = vpack.c.bf16 %v357_v19, %v354_v4  ;;  %v1131_v26 = vadd.f32 %v1130_v12, %v357_v19 }
 0x10a   :  { %1764 = vst [vmem:[%s2358_s6 + $0x28] sm:$0xff] %v1613_v17   ;;  %v1199_v27 = vadd.f32 %v1198_v20, %v1168_v9  ;;  %v1169_v29 = vmul.f32 %v357_v19, %v357_v19  ;;  %v1688_v30 = vpack.c.bf16 %v710_v23, %v707_v10  ;;  %v1242_v32 = vadd.f32 %v1241_v24, %v710_v23 }
 0x10b   :  { %v1310_v28 = vadd.f32 %v1309_v21, %v1279_v16  ;;  %1779 = vst [vmem:[%s2359_s7 + $0x28] sm:$0xff] %v1693_v22   ;;  %1763 = vst [vmem:[%s2358_s6 + $0x20] sm:$0xff] %v1608_v25   ;;  %v1132_v31 = vadd.f32 %v1864_v2, %v1131_v26  ;;  %v1280_v33 = vmul.f32 %v710_v23, %v710_v23 }
 0x10c   :  { %v1200_v35 = vadd.f32 %v1199_v27, %v1169_v29  ;;  %1778 = vst [vmem:[%s2359_s7 + $0x20] sm:$0xff] %v1688_v30   ;;  %v1243_v38 = vadd.f32 %v1912_v14, %v1242_v32  ;;  %v1171_v43 = vmul.f32 %v1865_v11, %v1865_v11  ;;  %v1282_v44 = vmul.f32 %v1913_v18, %v1913_v18 }
 0x10d   :  { %v1868_v36 = vpop.f32.mrb[12].mxu0  ;;  %v1311_v39 = vadd.f32 %v1310_v28, %v1280_v33  ;;  %v1133_v42 = vadd.f32 %v1865_v11, %v1132_v31 }
 0x10e   :  { %v1916_v40 = vpop.f32.mrb[12].mxu1  ;;  %v370_v41 = vpop.f32.mrb[13].mxu0  ;;  %v1201_v45 = vadd.f32 %v1200_v35, %v1170_v34  ;;  %v1244_v51 = vadd.f32 %v1913_v18, %v1243_v38  ;;  %v1174_v14 = vmul.f32 %v1868_v36, %v1868_v36 }
 0x10f   :  { %v1172_v46 = vmul.f32 %v370_v41, %v370_v41  ;;  %v723_v47 = vpop.f32.mrb[13].mxu1  ;;  %v1869_v48 = vpop.f32.mrb[14].mxu0  ;;  %v1312_v49 = vadd.f32 %v1311_v39, %v1281_v37  ;;  %v1134_v50 = vadd.f32 %v1133_v42, %v370_v41  ;;  %v1285_v7 = vmul.f32 %v1916_v40, %v1916_v40 }
 0x110   :  { %v1283_v52 = vmul.f32 %v723_v47, %v723_v47  ;;  %v1917_v53 = vpop.f32.mrb[14].mxu1  ;;  %v373_v54 = vpop.f32.mrb[15].mxu0  ;;  %v1202_v55 = vadd.f32 %v1201_v45, %v1171_v43  ;;  %v1623_v56 = vpack.c.bf16 %v1869_v48, %v1868_v36  ;;  %v1245_v59 = vadd.f32 %v1244_v51, %v723_v47 }
 0x111   :  { %v1703_v57 = vpack.c.bf16 %v1917_v53, %v1916_v40  ;;  %v726_v58 = vpop.f32.mrb[15].mxu1  ;;  %v1313_v60 = vadd.f32 %v1312_v49, %v1282_v44  ;;  %v1618_v61 = vpack.c.bf16 %v373_v54, %v370_v41  ;;  %v1135_v63 = vadd.f32 %v1134_v50, %v373_v54 }
 0x112   :  { %v1203_v62 = vadd.f32 %v1202_v55, %v1172_v46  ;;  %1766 = vst [vmem:[%s2358_s6 + $0x38] sm:$0xff] %v1623_v56   ;;  %v1173_v0 = vmul.f32 %v373_v54, %v373_v54  ;;  %v1698_v1 = vpack.c.bf16 %v726_v58, %v723_v47  ;;  %v1246_v2 = vadd.f32 %v1245_v59, %v726_v58 }
 0x113   :  { %1781 = vst [vmem:[%s2359_s7 + $0x38] sm:$0xff] %v1703_v57   ;;  %v1314_v13 = vadd.f32 %v1313_v60, %v1283_v52  ;;  %1765 = vst [vmem:[%s2358_s6 + $0x30] sm:$0xff] %v1618_v61   ;;  %v1284_v3 = vmul.f32 %v726_v58, %v726_v58  ;;  %v1136_v4 = vadd.f32 %v1868_v36, %v1135_v63 }
 0x114   :  { %v1204_v5 = vadd.f32 %v1203_v62, %v1173_v0  ;;  %1780 = vst [vmem:[%s2359_s7 + $0x30] sm:$0xff] %v1698_v1   ;;  %v1175_v8 = vmul.f32 %v1869_v48, %v1869_v48  ;;  %v1247_v9 = vadd.f32 %v1916_v40, %v1246_v2  ;;  %v1286_v15 = vmul.f32 %v1917_v53, %v1917_v53 }
 0x115   :  { %v1872_v6 = vpop.f32.mrb[16].mxu0  ;;  %v1315_v10 = vadd.f32 %v1314_v13, %v1284_v3  ;;  %v1137_v17 = vadd.f32 %v1869_v48, %v1136_v4 }
 0x116   :  { %v1920_v11 = vpop.f32.mrb[16].mxu1  ;;  %v386_v12 = vpop.f32.mrb[17].mxu0  ;;  %v1205_v16 = vadd.f32 %v1204_v5, %v1174_v14  ;;  %v1248_v22 = vadd.f32 %v1917_v53, %v1247_v9  ;;  %v1178_v41 = vmul.f32 %v1872_v6, %v1872_v6 }
 0x117   :  { %v1176_v18 = vmul.f32 %v386_v12, %v386_v12  ;;  %v739_v19 = vpop.f32.mrb[17].mxu1  ;;  %v1873_v20 = vpop.f32.mrb[18].mxu0  ;;  %v1316_v21 = vadd.f32 %v1315_v10, %v1285_v7  ;;  %v1138_v27 = vadd.f32 %v1137_v17, %v386_v12  ;;  %v1289_v45 = vmul.f32 %v1920_v11, %v1920_v11 }
 0x118   :  { %v1287_v23 = vmul.f32 %v739_v19, %v739_v19  ;;  %v1633_v24 = vpack.c.bf16 %v1873_v20, %v1872_v6  ;;  %v1921_v25 = vpop.f32.mrb[18].mxu1  ;;  %v389_v26 = vpop.f32.mrb[19].mxu0  ;;  %v1206_v28 = vadd.f32 %v1205_v16, %v1175_v8  ;;  %v1249_v31 = vadd.f32 %v1248_v22, %v739_v19 }
 0x119   :  { %v1713_v29 = vpack.c.bf16 %v1921_v25, %v1920_v11  ;;  %v742_v30 = vpop.f32.mrb[19].mxu1  ;;  %v1317_v32 = vadd.f32 %v1316_v21, %v1286_v15  ;;  %v1628_v33 = vpack.c.bf16 %v389_v26, %v386_v12  ;;  %v1139_v35 = vadd.f32 %v1138_v27, %v389_v26 }
 0x11a   :  { %1768 = vst [vmem:[%s2358_s6 + $0x48] sm:$0xff] %v1633_v24   ;;  %v1207_v34 = vadd.f32 %v1206_v28, %v1176_v18  ;;  %v1177_v36 = vmul.f32 %v389_v26, %v389_v26  ;;  %v1708_v37 = vpack.c.bf16 %v742_v30, %v739_v19  ;;  %v1250_v39 = vadd.f32 %v1249_v31, %v742_v30 }
 0x11b   :  { %1783 = vst [vmem:[%s2359_s7 + $0x48] sm:$0xff] %v1713_v29   ;;  %v1318_v38 = vadd.f32 %v1317_v32, %v1287_v23  ;;  %1767 = vst [vmem:[%s2358_s6 + $0x40] sm:$0xff] %v1628_v33   ;;  %v1288_v40 = vmul.f32 %v742_v30, %v742_v30  ;;  %v1140_v42 = vadd.f32 %v1872_v6, %v1139_v35 }
 0x11c   :  { %v1208_v43 = vadd.f32 %v1207_v34, %v1177_v36  ;;  %1782 = vst [vmem:[%s2359_s7 + $0x40] sm:$0xff] %v1708_v37   ;;  %v1179_v46 = vmul.f32 %v1873_v20, %v1873_v20  ;;  %v1251_v47 = vadd.f32 %v1920_v11, %v1250_v39  ;;  %v1290_v51 = vmul.f32 %v1921_v25, %v1921_v25 }
 0x11d   :  { %v1876_v44 = vpop.f32.mrb[20].mxu0  ;;  %v1319_v48 = vadd.f32 %v1318_v38, %v1288_v40  ;;  %v1141_v53 = vadd.f32 %v1873_v20, %v1140_v42 }
 0x11e   :  { %v1924_v49 = vpop.f32.mrb[20].mxu1  ;;  %v402_v50 = vpop.f32.mrb[21].mxu0  ;;  %v1209_v52 = vadd.f32 %v1208_v43, %v1178_v41  ;;  %v1252_v58 = vadd.f32 %v1921_v25, %v1251_v47  ;;  %v1182_v11 = vmul.f32 %v1876_v44, %v1876_v44 }
 0x11f   :  { %v1180_v54 = vmul.f32 %v402_v50, %v402_v50  ;;  %v755_v55 = vpop.f32.mrb[21].mxu1  ;;  %v1877_v56 = vpop.f32.mrb[22].mxu0  ;;  %v1320_v57 = vadd.f32 %v1319_v48, %v1289_v45  ;;  %v1142_v63 = vadd.f32 %v1141_v53, %v402_v50  ;;  %v1293_v17 = vmul.f32 %v1924_v49, %v1924_v49 }
 0x120   :  { %v1291_v59 = vmul.f32 %v755_v55, %v755_v55  ;;  %v1643_v60 = vpack.c.bf16 %v1877_v56, %v1876_v44  ;;  %v1925_v61 = vpop.f32.mrb[22].mxu1  ;;  %v405_v62 = vpop.f32.mrb[23].mxu0  ;;  %v1210_v0 = vadd.f32 %v1209_v52, %v1179_v46  ;;  %v1253_v2 = vadd.f32 %v1252_v58, %v755_v55 }
 0x121   :  { %v1723_v1 = vpack.c.bf16 %v1925_v61, %v1924_v49  ;;  %v758_v13 = vpop.f32.mrb[23].mxu1  ;;  %v1321_v3 = vadd.f32 %v1320_v57, %v1290_v51  ;;  %v1638_v14 = vpack.c.bf16 %v405_v62, %v402_v50  ;;  %v1143_v5 = vadd.f32 %v1142_v63, %v405_v62 }
 0x122   :  { %1770 = vst [vmem:[%s2358_s6 + $0x58] sm:$0xff] %v1643_v60   ;;  %v1211_v4 = vadd.f32 %v1210_v0, %v1180_v54  ;;  %v1181_v6 = vmul.f32 %v405_v62, %v405_v62  ;;  %v1718_v7 = vpack.c.bf16 %v758_v13, %v755_v55  ;;  %v1254_v9 = vadd.f32 %v1253_v2, %v758_v13 }
 0x123   :  { %1785 = vst [vmem:[%s2359_s7 + $0x58] sm:$0xff] %v1723_v1   ;;  %v1322_v8 = vadd.f32 %v1321_v3, %v1291_v59  ;;  %1769 = vst [vmem:[%s2358_s6 + $0x50] sm:$0xff] %v1638_v14   ;;  %v1292_v10 = vmul.f32 %v758_v13, %v758_v13  ;;  %v1144_v12 = vadd.f32 %v1876_v44, %v1143_v5 }
 0x124   :  { %v1212_v15 = vadd.f32 %v1211_v4, %v1181_v6  ;;  %1784 = vst [vmem:[%s2359_s7 + $0x50] sm:$0xff] %v1718_v7   ;;  %v1183_v18 = vmul.f32 %v1877_v56, %v1877_v56  ;;  %v1255_v19 = vadd.f32 %v1924_v49, %v1254_v9  ;;  %v1294_v23 = vmul.f32 %v1925_v61, %v1925_v61 }
 0x125   :  { %v1880_v16 = vpop.f32.mrb[24].mxu0  ;;  %v1323_v20 = vadd.f32 %v1322_v8, %v1292_v10  ;;  %v1145_v25 = vadd.f32 %v1877_v56, %v1144_v12 }
 0x126   :  { %v1928_v21 = vpop.f32.mrb[24].mxu1  ;;  %v418_v22 = vpop.f32.mrb[25].mxu0  ;;  %v1213_v24 = vadd.f32 %v1212_v15, %v1182_v11  ;;  %v1256_v30 = vadd.f32 %v1925_v61, %v1255_v19  ;;  %v1186_v49 = vmul.f32 %v1880_v16, %v1880_v16 }
 0x127   :  { %v1184_v26 = vmul.f32 %v418_v22, %v418_v22  ;;  %v771_v27 = vpop.f32.mrb[25].mxu1  ;;  %v1881_v28 = vpop.f32.mrb[26].mxu0  ;;  %v1324_v29 = vadd.f32 %v1323_v20, %v1293_v17  ;;  %v1146_v35 = vadd.f32 %v1145_v25, %v418_v22  ;;  %v1297_v53 = vmul.f32 %v1928_v21, %v1928_v21 }
 0x128   :  { %v1295_v31 = vmul.f32 %v771_v27, %v771_v27  ;;  %v1653_v32 = vpack.c.bf16 %v1881_v28, %v1880_v16  ;;  %v1929_v33 = vpop.f32.mrb[26].mxu1  ;;  %v421_v34 = vpop.f32.mrb[27].mxu0  ;;  %v1214_v36 = vadd.f32 %v1213_v24, %v1183_v18  ;;  %v1257_v39 = vadd.f32 %v1256_v30, %v771_v27 }
 0x129   :  { %v1733_v37 = vpack.c.bf16 %v1929_v33, %v1928_v21  ;;  %v774_v38 = vpop.f32.mrb[27].mxu1  ;;  %v1325_v40 = vadd.f32 %v1324_v29, %v1294_v23  ;;  %v1648_v41 = vpack.c.bf16 %v421_v34, %v418_v22  ;;  %v1147_v43 = vadd.f32 %v1146_v35, %v421_v34 }
 0x12a   :  { %1772 = vst [vmem:[%s2358_s6 + $0x68] sm:$0xff] %v1653_v32   ;;  %v1215_v42 = vadd.f32 %v1214_v36, %v1184_v26  ;;  %v1185_v44 = vmul.f32 %v421_v34, %v421_v34  ;;  %v1728_v45 = vpack.c.bf16 %v774_v38, %v771_v27  ;;  %v1258_v47 = vadd.f32 %v1257_v39, %v774_v38 }
 0x12b   :  { %1787 = vst [vmem:[%s2359_s7 + $0x68] sm:$0xff] %v1733_v37   ;;  %v1326_v46 = vadd.f32 %v1325_v40, %v1295_v31  ;;  %1771 = vst [vmem:[%s2358_s6 + $0x60] sm:$0xff] %v1648_v41   ;;  %v1296_v48 = vmul.f32 %v774_v38, %v774_v38  ;;  %v1148_v50 = vadd.f32 %v1880_v16, %v1147_v43 }
 0x12c   :  { %v1216_v51 = vadd.f32 %v1215_v42, %v1185_v44  ;;  %1786 = vst [vmem:[%s2359_s7 + $0x60] sm:$0xff] %v1728_v45   ;;  %v1187_v54 = vmul.f32 %v1881_v28, %v1881_v28  ;;  %v1259_v55 = vadd.f32 %v1928_v21, %v1258_v47  ;;  %v1298_v59 = vmul.f32 %v1929_v33, %v1929_v33 }
 0x12d   :  { %v1884_v52 = vpop.f32.mrb[28].mxu0  ;;  %v1327_v56 = vadd.f32 %v1326_v46, %v1296_v48  ;;  %v1149_v61 = vadd.f32 %v1881_v28, %v1148_v50 }
 0x12e   :  { %v1932_v57 = vpop.f32.mrb[28].mxu1  ;;  %v434_v58 = vpop.f32.mrb[29].mxu0  ;;  %v1217_v60 = vadd.f32 %v1216_v51, %v1186_v49  ;;  %v1260_v13 = vadd.f32 %v1929_v33, %v1259_v55  ;;  %v1190_v21 = vmul.f32 %v1884_v52, %v1884_v52  ;;  %v1122_v55 = vld [vmem:[%s2356_s8] sm:$0x3] }
 0x12f   :  { %v1188_v62 = vmul.f32 %v434_v58, %v434_v58  ;;  %v787_v63 = vpop.f32.mrb[29].mxu1  ;;  %v1885_v0 = vpop.f32.mrb[30].mxu0  ;;  %v1328_v1 = vadd.f32 %v1327_v56, %v1297_v53  ;;  %v1150_v5 = vadd.f32 %v1149_v61, %v434_v58  ;;  %v1301_v24 = vmul.f32 %v1932_v57, %v1932_v57 }
 0x130   :  { %v1299_v2 = vmul.f32 %v787_v63, %v787_v63  ;;  %v1663_v3 = vpack.c.bf16 %v1885_v0, %v1884_v52  ;;  %v1933_v14 = vpop.f32.mrb[30].mxu1  ;;  %v437_v4 = vpop.f32.mrb[31].mxu0  ;;  %v1218_v6 = vadd.f32 %v1217_v60, %v1187_v54  ;;  %v1261_v9 = vadd.f32 %v1260_v13, %v787_v63 }
 0x131   :  { %v1743_v7 = vpack.c.bf16 %v1933_v14, %v1932_v57  ;;  %v790_v8 = vpop.f32.mrb[31].mxu1  ;;  %v1329_v10 = vadd.f32 %v1328_v1, %v1298_v59  ;;  %v1658_v11 = vpack.c.bf16 %v437_v4, %v434_v58  ;;  %v1151_v15 = vadd.f32 %v1150_v5, %v437_v4  ;;  %v1233_v58 = vld [vmem:[%s2357_s9] sm:$0x3] }
 0x132   :  { %1774 = vst [vmem:[%s2358_s6 + $0x78] sm:$0xff] %v1663_v3   ;;  %v1219_v12 = vadd.f32 %v1218_v6, %v1188_v62  ;;  %v1189_v16 = vmul.f32 %v437_v4, %v437_v4  ;;  %v1738_v17 = vpack.c.bf16 %v790_v8, %v787_v63  ;;  %v1262_v19 = vadd.f32 %v1261_v9, %v790_v8 }
 0x133   :  { %1789 = vst [vmem:[%s2359_s7 + $0x78] sm:$0xff] %v1743_v7   ;;  %v1330_v18 = vadd.f32 %v1329_v10, %v1299_v2  ;;  %1773 = vst [vmem:[%s2358_s6 + $0x70] sm:$0xff] %v1658_v11   ;;  %v1300_v20 = vmul.f32 %v790_v8, %v790_v8  ;;  %v1152_v22 = vadd.f32 %v1884_v52, %v1151_v15 }
 0x134   :  { %v1220_v23 = vadd.f32 %v1219_v12, %v1189_v16  ;;  %1788 = vst [vmem:[%s2359_s7 + $0x70] sm:$0xff] %v1738_v17   ;;  %v1263_v25 = vadd.f32 %v1932_v57, %v1262_v19  ;;  %v1191_v27 = vmul.f32 %v1885_v0, %v1885_v0  ;;  %v1302_v30 = vmul.f32 %v1933_v14, %v1933_v14 }
 0x135   :  { %v1331_v26 = vadd.f32 %v1330_v18, %v1300_v20  ;;  %v1153_v28 = vadd.f32 %v1885_v0, %v1152_v22 }
 0x136   :  { %v1221_v29 = vadd.f32 %v1220_v23, %v1190_v21  ;;  %v1264_v31 = vadd.f32 %v1933_v14, %v1263_v25 }
 0x137   :  { %v1332_v32 = vadd.f32 %v1331_v26, %v1301_v24  ;;  %v1154_v33 = vrot.slane %v1153_v28, 4 }
 0x138   :  { %v1222_v34 = vadd.f32 %v1221_v29, %v1191_v27  ;;  %v1265_v35 = vrot.slane %v1264_v31, 4 }
 0x139   :  { %v1333_v36 = vadd.f32 %v1332_v32, %v1302_v30  ;;  %v1155_v37 = vadd.f32 %v1154_v33, %v1153_v28 }
 0x13a   :  { %v1223_v38 = vrot.slane %v1222_v34, 4  ;;  %v1266_v39 = vadd.f32 %v1265_v35, %v1264_v31 }
 0x13b   :  { %v1334_v40 = vrot.slane %v1333_v36, 4  ;;  %v1156_v41 = vrot.slane %v1155_v37, 2 }
 0x13c   :  { %v1224_v42 = vadd.f32 %v1223_v38, %v1222_v34  ;;  %v1267_v43 = vrot.slane %v1266_v39, 2 }
 0x13d   :  { %v1335_v44 = vadd.f32 %v1334_v40, %v1333_v36  ;;  %v1157_v45 = vadd.f32 %v1156_v41, %v1155_v37 }
 0x13e   :  { %v1225_v46 = vrot.slane %v1224_v42, 2  ;;  %v1268_v47 = vadd.f32 %v1267_v43, %v1266_v39 }
 0x13f   :  { %v1336_v48 = vrot.slane %v1335_v44, 2  ;;  %v1158_v49 = vrot.slane %v1157_v45, 1 }
 0x140   :  { %v1226_v50 = vadd.f32 %v1225_v46, %v1224_v42  ;;  %v1269_v51 = vrot.slane %v1268_v47, 1 }
 0x141   :  { %v1337_v52 = vadd.f32 %v1336_v48, %v1335_v44  ;;  %v1159_v56 = vadd.f32 %v1158_v49, %v1157_v45 }
 0x142   :  { %v1227_v53 = vrot.slane %v1226_v50, 1  ;;  %v1270_v59 = vadd.f32 %v1269_v51, %v1268_v47 }
 0x143   :  { %v1338_v54 = vrot.slane %v1337_v52, 1 }
 0x144   :  { %v1228_v57 = vadd.f32 %v1227_v53, %v1226_v50 }
 0x145   :  { %v1339_v60 = vadd.f32 %v1338_v54, %v1337_v52 }
 0x146   :  { %v1230_v61 = vsel %vm1229_vm0, %v1159_v56, %v1228_v57 }
 0x147   :  { %v1231_v62 = vadd.f32 %v1230_v61, %v1122_v55  ;;  %v1340_v63 = vsel %vm1229_vm0, %v1270_v59, %v1339_v60 }
 0x148   :  { %v1341_v0 = vadd.f32 %v1340_v63, %v1233_v58 }
 0x149   :  { %1232 = vst [vmem:[%s2356_s8] sm:$0x3] %v1231_v62 }
 0x14a   :  { %1342 = vst [vmem:[%s2357_s9] sm:$0x3] %v1341_v0 }

</bundles_post_ra>
